<compile_context>
chip_gen: v5e
topology: v5e:2x2
jax: 0.10.0
libtpu: 0.0.40
codegen_flags: <defaults>
</compile_context>

<pallas_src>
import functools

import jax
import jax.numpy as jnp
from jax.experimental import pallas as pl
from jax.experimental.pallas import tpu as pltpu


LANES = 128           # full vreg lane width -> unmasked vector loads
TILE_ROWS = 1024      # rows per grid step  -> 512 KiB per f32 tile
TILE_ELEMS = TILE_ROWS * LANES


def _to_lane_dense(x):
    """Flatten, zero-pad to a whole number of tiles, reshape to (rows, 128)."""
    flat = x.reshape(-1)
    n = flat.shape[0]
    padded = ((n + TILE_ELEMS - 1) // TILE_ELEMS) * TILE_ELEMS
    if padded != n:
        flat = jnp.pad(flat, (0, padded - n))   # zeros don't perturb the sums
    return flat.reshape(padded // LANES, LANES)


def _fused_reg_kernel(pu_ref, qj_ref, wv_ref, pr_ref, lb_ref,
                      out_ref, acc_ref, *, n_tiles):
    t = pl.program_id(0)

    @pl.when(t == 0)
    def _init():
        acc_ref[...] = jnp.zeros_like(acc_ref)

    def _accum_sumsq(slot, x_f32):
        # (TILE_ROWS, 128) -> (TILE_ROWS//8, 8, 128); reducing the leading
        # (non-tiled) axis is pure VPU vector adds -- no per-tile XLU reduce.
        part = jnp.sum((x_f32 * x_f32).reshape(-1, 8, LANES), axis=0)
        acc_ref[slot] = acc_ref[slot] + part

    @pl.when(t < n_tiles[0])
    def _():
        _accum_sumsq(0, pu_ref[...].astype(jnp.float32))

    @pl.when(t < n_tiles[1])
    def _():
        _accum_sumsq(1, qj_ref[...].astype(jnp.float32))

    @pl.when(t < n_tiles[2])
    def _():
        _accum_sumsq(2, wv_ref[...].astype(jnp.float32))

    @pl.when(t < n_tiles[3])
    def _():
        d = pr_ref[...].astype(jnp.float32) - lb_ref[...].astype(jnp.float32)
        part = jnp.sum((d * d).reshape(-1, 8, LANES), axis=0)
        acc_ref[3] = acc_ref[3] + part

    @pl.when(t == pl.num_programs(0) - 1)
    def _finish():
        # single cross-lane reduction per quantity, once at the very end
        out_ref[0, 0] = jnp.sum(acc_ref[0])
        out_ref[0, 1] = jnp.sum(acc_ref[1])
        out_ref[0, 2] = jnp.sum(acc_ref[2])
        out_ref[0, 3] = jnp.sum(acc_ref[3])


def _fused_reduce(p_u, q_j, w_v, pred, label):
    """Returns [sumsq(p_u), sumsq(q_j), sumsq(w_v), sum((pred-label)^2)]."""
    pu = _to_lane_dense(p_u)
    qj = _to_lane_dense(q_j)
    wv = _to_lane_dense(w_v)
    pr = _to_lane_dense(pred)
    lb = _to_lane_dense(label)

    nts = (pu.shape[0] // TILE_ROWS,
           qj.shape[0] // TILE_ROWS,
           wv.shape[0] // TILE_ROWS,
           pr.shape[0] // TILE_ROWS)
    grid = max(nts)

    def in_spec(nt):
        # Clamp past-the-end steps to the last tile: same block index means the
        # pipeline skips the re-fetch; the matching pl.when skips the compute.
        return pl.BlockSpec(
            (TILE_ROWS, LANES),
            lambda t, _nt=nt: (jnp.minimum(t, _nt - 1), 0))

    out = pl.pallas_call(
        functools.partial(_fused_reg_kernel, n_tiles=nts),
        out_shape=jax.ShapeDtypeStruct((1, 4), jnp.float32),
        grid_spec=pltpu.PrefetchScalarGridSpec(
            num_scalar_prefetch=0,
            grid=(grid,),
            in_specs=[in_spec(nts[0]), in_spec(nts[1]), in_spec(nts[2]),
                      in_spec(nts[3]), in_spec(nts[3])],
            out_specs=pl.BlockSpec((1, 4), lambda t: (0, 0),
                                   memory_space=pltpu.SMEM),
            scratch_shapes=[pltpu.VMEM((4, 8, LANES), jnp.float32)]),
        compiler_params=pltpu.CompilerParams(
            dimension_semantics=("arbitrary",)),
    )(pu, qj, wv, pr, lb)
    return out[0]


# ---------------- Module wrapper ----------------------------------------------

class RegLoss:
    def __init__(self, lamda=0.5, lamda_t=0.45):
        self.lamda = lamda
        self.lamda_t = lamda_t  # unused in forward (matches the PyTorch module)

    def __call__(self, graph, params, link_pred, link_label):
        p_q = params['p_q']
        y_w = params['y_w']

        sums = _fused_reduce(p_q['user'], p_q['item'], y_w['user'],
                             link_pred, link_label)

        # torch.norm = Frobenius norm = sqrt(sum of squares)
        reg = self.lamda * (jnp.sqrt(sums[0]) + jnp.sqrt(sums[1])
                            + jnp.sqrt(sums[2]))
        link_loss = sums[3] / jnp.float32(link_pred.size)
        return (reg, link_loss)


# ---------------- Demo ---------------------------------------------------------

if __name__ == "__main__":
    key = jax.random.PRNGKey(0)
    k1, k2, k3, k4, k5 = jax.random.split(key, 5)

    n_users, n_items, hidden = 8, 8, 32
    batch = 16

    params = {
        'p_q': {
            'user': jax.random.normal(k1, (n_users, hidden), jnp.float32),
            'item': jax.random.normal(k2, (n_items, hidden), jnp.float32),
        },
        'y_w': {
            'user': jax.random.normal(k3, (n_users, hidden), jnp.float32),
        },
    }
    link_pred = jax.random.normal(k4, (batch,), jnp.float32)
    link_label = jax.random.normal(k5, (batch,), jnp.float32)

    loss_fn = RegLoss(lamda=0.5, lamda_t=0.45)
    reg, link_loss = loss_fn(graph=None, params=params,
                             link_pred=link_pred, link_label=link_label)
    jax.block_until_ready(reg)
    jax.block_until_ready(link_loss)

    # sanity check against pure-JAX reference
    ref_link = jnp.mean((link_pred - link_label) ** 2)
    ref_reg = 0.5 * (jnp.linalg.norm(params['p_q']['user'])
                     + jnp.linalg.norm(params['p_q']['item'])
                     + jnp.linalg.norm(params['y_w']['user']))
    assert jnp.allclose(link_loss, ref_link, rtol=1e-5, atol=1e-5)
    assert jnp.allclose(reg, ref_reg, rtol=1e-5, atol=1e-5)

    print("KERNEL_OK")
</pallas_src>

<mosaic_0001>
module attributes {stable_mosaic.version = 11 : i64} {
  func.func @_fused_reg_kernel(%arg0: i32, %arg1: memref<1024x128xf32, #tpu.memory_space<vmem>>, %arg2: memref<1024x128xf32, #tpu.memory_space<vmem>>, %arg3: memref<1024x128xf32, #tpu.memory_space<vmem>>, %arg4: memref<1024x128xf32, #tpu.memory_space<vmem>>, %arg5: memref<1024x128xf32, #tpu.memory_space<vmem>>, %arg6: memref<1x4xf32, #tpu.memory_space<smem>>, %arg7: memref<4x8x128xf32, #tpu.memory_space<vmem>>) attributes {dimension_semantics = [#tpu.dimension_semantics<arbitrary>], iteration_bounds = array<i64: 1>, scalar_prefetch = 0 : i64, scratch_operands = 1 : i64, tpu.core_type = #tpu.core_type<tc>, window_params = [{transform_indices = @transform_0, window_bounds = array<i64: 1024, 128>}, {transform_indices = @transform_1, window_bounds = array<i64: 1024, 128>}, {transform_indices = @transform_2, window_bounds = array<i64: 1024, 128>}, {transform_indices = @transform_3, window_bounds = array<i64: 1024, 128>}, {transform_indices = @transform_4, window_bounds = array<i64: 1024, 128>}, {transform_indices = @transform_5, window_bounds = array<i64: 1, 4>}]} {
    %c0_i32 = arith.constant 0 : i32
    %0 = arith.cmpi eq, %arg0, %c0_i32 : i32
    %1 = arith.extui %0 : i1 to i32
    %c0_i32_0 = arith.constant 0 : i32
    %2 = arith.cmpi ne, %1, %c0_i32_0 : i32
    scf.if %2 {
      %cst = arith.constant 0.000000e+00 : f32
      %18 = vector.broadcast %cst : f32 to vector<4x8x128xf32>
      %c0 = arith.constant 0 : index
      %c0_10 = arith.constant 0 : index
      %c0_11 = arith.constant 0 : index
      %19 = vector.load %arg7[%c0, %c0_10, %c0_11] : memref<4x8x128xf32, #tpu.memory_space<vmem>>, vector<4x8x128xf32>
      tpu.vector_store %arg7[%c0, %c0_10, %c0_11], %18 {strides = array<i32>} : memref<4x8x128xf32, #tpu.memory_space<vmem>>, vector<4x8x128xf32>,
    } else {
    }
    %c1_i32 = arith.constant 1 : i32
    %3 = arith.cmpi slt, %arg0, %c1_i32 : i32
    %4 = arith.extui %3 : i1 to i32
    %c0_i32_1 = arith.constant 0 : i32
    %5 = arith.cmpi ne, %4, %c0_i32_1 : i32
    scf.if %5 {
      %c0 = arith.constant 0 : index
      %c0_10 = arith.constant 0 : index
      %18 = vector.load %arg1[%c0, %c0_10] : memref<1024x128xf32, #tpu.memory_space<vmem>>, vector<1024x128xf32>
      %19 = arith.mulf %18, %18 : vector<1024x128xf32>
      %20 = vector.shape_cast %19 : vector<1024x128xf32> to vector<128x8x128xf32>
      %cst = arith.constant dense<0.000000e+00> : vector<8x128xf32>
      %21 = vector.multi_reduction <add>, %20, %cst [0] : vector<128x8x128xf32> to vector<8x128xf32>
      %c0_11 = arith.constant 0 : index
      %c0_12 = arith.constant 0 : index
      %c0_13 = arith.constant 0 : index
      %22 = vector.load %arg7[%c0_11, %c0_12, %c0_13] : memref<4x8x128xf32, #tpu.memory_space<vmem>>, vector<1x8x128xf32>
      %23 = vector.shape_cast %22 : vector<1x8x128xf32> to vector<8x128xf32>
      %24 = arith.addf %23, %21 : vector<8x128xf32>
      %c0_14 = arith.constant 0 : index
      %c0_15 = arith.constant 0 : index
      %c0_16 = arith.constant 0 : index
      %25 = vector.load %arg7[%c0_14, %c0_15, %c0_16] : memref<4x8x128xf32, #tpu.memory_space<vmem>>, vector<1x8x128xf32>
      %26 = vector.shape_cast %25 : vector<1x8x128xf32> to vector<8x128xf32>
      %27 = vector.shape_cast %24 : vector<8x128xf32> to vector<1x8x128xf32>
      tpu.vector_store %arg7[%c0_14, %c0_15, %c0_16], %27 {strides = array<i32>} : memref<4x8x128xf32, #tpu.memory_space<vmem>>, vector<1x8x128xf32>,
    } else {
    }
    %c1_i32_2 = arith.constant 1 : i32
    %6 = arith.cmpi slt, %arg0, %c1_i32_2 : i32
    %7 = arith.extui %6 : i1 to i32
    %c0_i32_3 = arith.constant 0 : i32
    %8 = arith.cmpi ne, %7, %c0_i32_3 : i32
    scf.if %8 {
      %c0 = arith.constant 0 : index
      %c0_10 = arith.constant 0 : index
      %18 = vector.load %arg2[%c0, %c0_10] : memref<1024x128xf32, #tpu.memory_space<vmem>>, vector<1024x128xf32>
      %19 = arith.mulf %18, %18 : vector<1024x128xf32>
      %20 = vector.shape_cast %19 : vector<1024x128xf32> to vector<128x8x128xf32>
      %cst = arith.constant dense<0.000000e+00> : vector<8x128xf32>
      %21 = vector.multi_reduction <add>, %20, %cst [0] : vector<128x8x128xf32> to vector<8x128xf32>
      %c1 = arith.constant 1 : index
      %c0_11 = arith.constant 0 : index
      %c0_12 = arith.constant 0 : index
      %22 = vector.load %arg7[%c1, %c0_11, %c0_12] : memref<4x8x128xf32, #tpu.memory_space<vmem>>, vector<1x8x128xf32>
      %23 = vector.shape_cast %22 : vector<1x8x128xf32> to vector<8x128xf32>
      %24 = arith.addf %23, %21 : vector<8x128xf32>
      %c1_13 = arith.constant 1 : index
      %c0_14 = arith.constant 0 : index
      %c0_15 = arith.constant 0 : index
      %25 = vector.load %arg7[%c1_13, %c0_14, %c0_15] : memref<4x8x128xf32, #tpu.memory_space<vmem>>, vector<1x8x128xf32>
      %26 = vector.shape_cast %25 : vector<1x8x128xf32> to vector<8x128xf32>
      %27 = vector.shape_cast %24 : vector<8x128xf32> to vector<1x8x128xf32>
      tpu.vector_store %arg7[%c1_13, %c0_14, %c0_15], %27 {strides = array<i32>} : memref<4x8x128xf32, #tpu.memory_space<vmem>>, vector<1x8x128xf32>,
    } else {
    }
    %c1_i32_4 = arith.constant 1 : i32
    %9 = arith.cmpi slt, %arg0, %c1_i32_4 : i32
    %10 = arith.extui %9 : i1 to i32
    %c0_i32_5 = arith.constant 0 : i32
    %11 = arith.cmpi ne, %10, %c0_i32_5 : i32
    scf.if %11 {
      %c0 = arith.constant 0 : index
      %c0_10 = arith.constant 0 : index
      %18 = vector.load %arg3[%c0, %c0_10] : memref<1024x128xf32, #tpu.memory_space<vmem>>, vector<1024x128xf32>
      %19 = arith.mulf %18, %18 : vector<1024x128xf32>
      %20 = vector.shape_cast %19 : vector<1024x128xf32> to vector<128x8x128xf32>
      %cst = arith.constant dense<0.000000e+00> : vector<8x128xf32>
      %21 = vector.multi_reduction <add>, %20, %cst [0] : vector<128x8x128xf32> to vector<8x128xf32>
      %c2 = arith.constant 2 : index
      %c0_11 = arith.constant 0 : index
      %c0_12 = arith.constant 0 : index
      %22 = vector.load %arg7[%c2, %c0_11, %c0_12] : memref<4x8x128xf32, #tpu.memory_space<vmem>>, vector<1x8x128xf32>
      %23 = vector.shape_cast %22 : vector<1x8x128xf32> to vector<8x128xf32>
      %24 = arith.addf %23, %21 : vector<8x128xf32>
      %c2_13 = arith.constant 2 : index
      %c0_14 = arith.constant 0 : index
      %c0_15 = arith.constant 0 : index
      %25 = vector.load %arg7[%c2_13, %c0_14, %c0_15] : memref<4x8x128xf32, #tpu.memory_space<vmem>>, vector<1x8x128xf32>
      %26 = vector.shape_cast %25 : vector<1x8x128xf32> to vector<8x128xf32>
      %27 = vector.shape_cast %24 : vector<8x128xf32> to vector<1x8x128xf32>
      tpu.vector_store %arg7[%c2_13, %c0_14, %c0_15], %27 {strides = array<i32>} : memref<4x8x128xf32, #tpu.memory_space<vmem>>, vector<1x8x128xf32>,
    } else {
    }
    %c1_i32_6 = arith.constant 1 : i32
    %12 = arith.cmpi slt, %arg0, %c1_i32_6 : i32
    %13 = arith.extui %12 : i1 to i32
    %c0_i32_7 = arith.constant 0 : i32
    %14 = arith.cmpi ne, %13, %c0_i32_7 : i32
    scf.if %14 {
      %c0 = arith.constant 0 : index
      %c0_10 = arith.constant 0 : index
      %18 = vector.load %arg4[%c0, %c0_10] : memref<1024x128xf32, #tpu.memory_space<vmem>>, vector<1024x128xf32>
      %c0_11 = arith.constant 0 : index
      %c0_12 = arith.constant 0 : index
      %19 = vector.load %arg5[%c0_11, %c0_12] : memref<1024x128xf32, #tpu.memory_space<vmem>>, vector<1024x128xf32>
      %20 = arith.subf %18, %19 : vector<1024x128xf32>
      %21 = arith.mulf %20, %20 : vector<1024x128xf32>
      %22 = vector.shape_cast %21 : vector<1024x128xf32> to vector<128x8x128xf32>
      %cst = arith.constant dense<0.000000e+00> : vector<8x128xf32>
      %23 = vector.multi_reduction <add>, %22, %cst [0] : vector<128x8x128xf32> to vector<8x128xf32>
      %c3 = arith.constant 3 : index
      %c0_13 = arith.constant 0 : index
      %c0_14 = arith.constant 0 : index
      %24 = vector.load %arg7[%c3, %c0_13, %c0_14] : memref<4x8x128xf32, #tpu.memory_space<vmem>>, vector<1x8x128xf32>
      %25 = vector.shape_cast %24 : vector<1x8x128xf32> to vector<8x128xf32>
      %26 = arith.addf %25, %23 : vector<8x128xf32>
      %c3_15 = arith.constant 3 : index
      %c0_16 = arith.constant 0 : index
      %c0_17 = arith.constant 0 : index
      %27 = vector.load %arg7[%c3_15, %c0_16, %c0_17] : memref<4x8x128xf32, #tpu.memory_space<vmem>>, vector<1x8x128xf32>
      %28 = vector.shape_cast %27 : vector<1x8x128xf32> to vector<8x128xf32>
      %29 = vector.shape_cast %26 : vector<8x128xf32> to vector<1x8x128xf32>
      tpu.vector_store %arg7[%c3_15, %c0_16, %c0_17], %29 {strides = array<i32>} : memref<4x8x128xf32, #tpu.memory_space<vmem>>, vector<1x8x128xf32>,
    } else {
    }
    %c0_i32_8 = arith.constant 0 : i32
    %15 = arith.cmpi eq, %arg0, %c0_i32_8 : i32
    %16 = arith.extui %15 : i1 to i32
    %c0_i32_9 = arith.constant 0 : i32
    %17 = arith.cmpi ne, %16, %c0_i32_9 : i32
    scf.if %17 {
      %c0 = arith.constant 0 : index
      %c0_10 = arith.constant 0 : index
      %c0_11 = arith.constant 0 : index
      %18 = vector.load %arg7[%c0, %c0_10, %c0_11] : memref<4x8x128xf32, #tpu.memory_space<vmem>>, vector<1x8x128xf32>
      %19 = vector.shape_cast %18 : vector<1x8x128xf32> to vector<8x128xf32>
      %20 = vector.shape_cast %19 : vector<8x128xf32> to vector<1x8x128xf32>
      %cst = arith.constant dense<0.000000e+00> : vector<1xf32>
      %21 = vector.multi_reduction <add>, %20, %cst [1, 2] : vector<1x8x128xf32> to vector<1xf32>
      %22 = vector.shape_cast %21 : vector<1xf32> to vector<1x1x1xf32>
      %23 = vector.extract %22[0, 0, 0] : f32 from vector<1x1x1xf32>
      %c0_12 = arith.constant 0 : index
      %c0_13 = arith.constant 0 : index
      %24 = memref.load %arg6[%c0_12, %c0_13] : memref<1x4xf32, #tpu.memory_space<smem>>
      memref.store %23, %arg6[%c0_12, %c0_13] : memref<1x4xf32, #tpu.memory_space<smem>>
      %c1 = arith.constant 1 : index
      %c0_14 = arith.constant 0 : index
      %c0_15 = arith.constant 0 : index
      %25 = vector.load %arg7[%c1, %c0_14, %c0_15] : memref<4x8x128xf32, #tpu.memory_space<vmem>>, vector<1x8x128xf32>
      %26 = vector.shape_cast %25 : vector<1x8x128xf32> to vector<8x128xf32>
      %27 = vector.shape_cast %26 : vector<8x128xf32> to vector<1x8x128xf32>
      %cst_16 = arith.constant dense<0.000000e+00> : vector<1xf32>
      %28 = vector.multi_reduction <add>, %27, %cst_16 [1, 2] : vector<1x8x128xf32> to vector<1xf32>
      %29 = vector.shape_cast %28 : vector<1xf32> to vector<1x1x1xf32>
      %30 = vector.extract %29[0, 0, 0] : f32 from vector<1x1x1xf32>
      %c0_17 = arith.constant 0 : index
      %c1_18 = arith.constant 1 : index
      %31 = memref.load %arg6[%c0_17, %c1_18] : memref<1x4xf32, #tpu.memory_space<smem>>
      memref.store %30, %arg6[%c0_17, %c1_18] : memref<1x4xf32, #tpu.memory_space<smem>>
      %c2 = arith.constant 2 : index
      %c0_19 = arith.constant 0 : index
      %c0_20 = arith.constant 0 : index
      %32 = vector.load %arg7[%c2, %c0_19, %c0_20] : memref<4x8x128xf32, #tpu.memory_space<vmem>>, vector<1x8x128xf32>
      %33 = vector.shape_cast %32 : vector<1x8x128xf32> to vector<8x128xf32>
      %34 = vector.shape_cast %33 : vector<8x128xf32> to vector<1x8x128xf32>
      %cst_21 = arith.constant dense<0.000000e+00> : vector<1xf32>
      %35 = vector.multi_reduction <add>, %34, %cst_21 [1, 2] : vector<1x8x128xf32> to vector<1xf32>
      %36 = vector.shape_cast %35 : vector<1xf32> to vector<1x1x1xf32>
      %37 = vector.extract %36[0, 0, 0] : f32 from vector<1x1x1xf32>
      %c0_22 = arith.constant 0 : index
      %c2_23 = arith.constant 2 : index
      %38 = memref.load %arg6[%c0_22, %c2_23] : memref<1x4xf32, #tpu.memory_space<smem>>
      memref.store %37, %arg6[%c0_22, %c2_23] : memref<1x4xf32, #tpu.memory_space<smem>>
      %c3 = arith.constant 3 : index
      %c0_24 = arith.constant 0 : index
      %c0_25 = arith.constant 0 : index
      %39 = vector.load %arg7[%c3, %c0_24, %c0_25] : memref<4x8x128xf32, #tpu.memory_space<vmem>>, vector<1x8x128xf32>
      %40 = vector.shape_cast %39 : vector<1x8x128xf32> to vector<8x128xf32>
      %41 = vector.shape_cast %40 : vector<8x128xf32> to vector<1x8x128xf32>
      %cst_26 = arith.constant dense<0.000000e+00> : vector<1xf32>
      %42 = vector.multi_reduction <add>, %41, %cst_26 [1, 2] : vector<1x8x128xf32> to vector<1xf32>
      %43 = vector.shape_cast %42 : vector<1xf32> to vector<1x1x1xf32>
      %44 = vector.extract %43[0, 0, 0] : f32 from vector<1x1x1xf32>
      %c0_27 = arith.constant 0 : index
      %c3_28 = arith.constant 3 : index
      %45 = memref.load %arg6[%c0_27, %c3_28] : memref<1x4xf32, #tpu.memory_space<smem>>
      memref.store %44, %arg6[%c0_27, %c3_28] : memref<1x4xf32, #tpu.memory_space<smem>>
    } else {
    }
    return
  }
  func.func @transform_0(%arg0: i32) -> (i32, i32) {
    %c0_i32 = arith.constant 0 : i32
    %0 = arith.minsi %arg0, %c0_i32 : i32
    %c0_i32_0 = arith.constant 0 : i32
    %c0_i32_1 = arith.constant 0 : i32
    return %0, %c0_i32_0 : i32, i32
  }
  func.func @transform_1(%arg0: i32) -> (i32, i32) {
    %c0_i32 = arith.constant 0 : i32
    %0 = arith.minsi %arg0, %c0_i32 : i32
    %c0_i32_0 = arith.constant 0 : i32
    %c0_i32_1 = arith.constant 0 : i32
    return %0, %c0_i32_0 : i32, i32
  }
  func.func @transform_2(%arg0: i32) -> (i32, i32) {
    %c0_i32 = arith.constant 0 : i32
    %0 = arith.minsi %arg0, %c0_i32 : i32
    %c0_i32_0 = arith.constant 0 : i32
    %c0_i32_1 = arith.constant 0 : i32
    return %0, %c0_i32_0 : i32, i32
  }
  func.func @transform_3(%arg0: i32) -> (i32, i32) {
    %c0_i32 = arith.constant 0 : i32
    %0 = arith.minsi %arg0, %c0_i32 : i32
    %c0_i32_0 = arith.constant 0 : i32
    %c0_i32_1 = arith.constant 0 : i32
    return %0, %c0_i32_0 : i32, i32
  }
  func.func @transform_4(%arg0: i32) -> (i32, i32) {
    %c0_i32 = arith.constant 0 : i32
    %0 = arith.minsi %arg0, %c0_i32 : i32
    %c0_i32_0 = arith.constant 0 : i32
    %c0_i32_1 = arith.constant 0 : i32
    return %0, %c0_i32_0 : i32, i32
  }
  func.func @transform_5(%arg0: i32) -> (i32, i32) {
    %c0_i32 = arith.constant 0 : i32
    %c0_i32_0 = arith.constant 0 : i32
    %c0_i32_1 = arith.constant 0 : i32
    return %c0_i32, %c0_i32_0 : i32, i32
  }
}

</mosaic_0001>

<bundles_post_ra>
// kernel: tpu_custom_call.1
= control target key start
LH: loop header
LB: loop body
LE: loop exit
PB: predicated region body
PF: predicated region fallthrough
CT: control target
= control target key end

     0   :  { %10 = vsyncpa [#allocation4], 0  ;;  %s2465_s0 = inlined_call_operand.hbm [shape: f32[1024,128], index: 0, kind: input, shape index: {}]   ;;  %s2466_s1 = inlined_call_operand.hbm [shape: f32[1024,128], index: 1, kind: input, shape index: {}]   ;;  %s2467_s2 = inlined_call_operand.hbm [shape: f32[1024,128], index: 2, kind: input, shape index: {}]   ;;  %s2468_s3 = inlined_call_operand.hbm [shape: f32[1024,128], index: 3, kind: input, shape index: {}]   ;;  %s2469_s4 = inlined_call_operand.hbm [shape: f32[1024,128], index: 4, kind: input, shape index: {}]   ;;  %s2470_s5 = inlined_call_operand.hbm [shape: f32[1,4], index: 5, kind: output, shape index: {}]  }
   0x1   :  { %11 = vsyncpa [#allocation7], 0 }
   0x2   :  { %12 = vsyncpa [#allocation10], 0 }
   0x3   :  { %13 = vsyncpa [#allocation5], 0  ;;  %s31_s20 = sshll.u32 %s2466_s1, 4  ;;  %s2142_s21 = smov [#allocation6]   ;;  %s32_s20 = int_to_ptr.hbm [resolvable:$true] %s31_s20 }
   0x4   :  { %s33_s22 = sshll.u32 %s2142_s21, 4  ;;  %s57_s25 = sshll.u32 %s2468_s3, 4  ;;  %s34_s22 = int_to_ptr.vmem [resolvable:$true] %s33_s22  ;;  %s58_s25 = int_to_ptr.hbm [resolvable:$true] %s57_s25 }
   0x5   :  { %s2143_s26 = smov 128   ;;  %s2144_s27 = smov 8  }
   0x6   :  { %39 = dma.hbm_to_vmem [thread:$0]  %s32_s20, 16384, %s34_s22, [#allocation7], %s2143_s26, %s2143_s26, %s2144_s27  }
   0x7   :  { %s2145_s28 = smov [#allocation9]   ;;  %s18_s7 = sshll.u32 %s2465_s0, 4  ;;  %s19_s7 = int_to_ptr.hbm [resolvable:$true] %s18_s7 }
   0x8   :  { %s59_s29 = sshll.u32 %s2145_s28, 4  ;;  %s44_s9 = sshll.u32 %s2467_s2, 4  ;;  %s60_s29 = int_to_ptr.vmem [resolvable:$true] %s59_s29  ;;  %s45_s9 = int_to_ptr.hbm [resolvable:$true] %s44_s9 }
   0x9   :  { %65 = dma.hbm_to_vmem [thread:$0]  %s58_s25, 16384, %s60_s29, [#allocation10], %s2143_s26, %s2143_s26, %s2144_s27  }
   0xa   :  { %s2146_s10 = smov [#allocation3]   ;;  %s2147_s3 = smov [#allocation8]  }
   0xb   :  { %s20_s11 = sshll.u32 %s2146_s10, 4  ;;  %s46_s12 = sshll.u32 %s2147_s3, 4  ;;  %s21_s11 = int_to_ptr.vmem [resolvable:$true] %s20_s11  ;;  %s47_s12 = int_to_ptr.vmem [resolvable:$true] %s46_s12 }
   0xc   :  { %26 = dma.hbm_to_vmem [thread:$0]  %s19_s7, 16384, %s21_s11, [#allocation4], %s2143_s26, %s2143_s26, %s2144_s27  }
   0xd   :  { %s70_s15 = sshll.u32 %s2469_s4, 4  ;;  %s2148_s0 = smov [#allocation11]   ;;  %s71_s15 = int_to_ptr.hbm [resolvable:$true] %s70_s15 }
   0xe   :  { %52 = dma.hbm_to_vmem [thread:$0]  %s45_s9, 16384, %s47_s12, [#allocation7], %s2143_s26, %s2143_s26, %s2144_s27  }
   0xf   :  { %s72_s16 = sshll.u32 %s2148_s0, 4  ;;  %s73_s16 = int_to_ptr.vmem [resolvable:$true] %s72_s16 }
  0x10   :  { %78 = dma.hbm_to_vmem [thread:$0]  %s71_s15, 16384, %s73_s16, [#allocation10], %s2143_s26, %s2143_s26, %s2144_s27  }
  0x11   :  { %2134 = dma.done.wait [#allocation4], 16384  }
  0x12   :  { %2135 = vsyncadd [#allocation4], 4294950912 }
  0x13   :  { %2136 = dma.done.wait [#allocation7], 32768  }
  0x14   :  { %2137 = vsyncadd [#allocation7], 4294934528 }
  0x15   :  { %2138 = dma.done.wait [#allocation10], 32768  }
  0x16   :  { %2139 = vsyncadd [#allocation10], 4294934528  ;;  %v884_v0 = vld [vmem:[#allocation8] sm:$0xff]  ;;  %v885_v1 = vld [vmem:[#allocation8 + $0x8] sm:$0xff]  ;;  %s1973_s18 = sshll.u32 %s2470_s5, 4  ;;  %s2149_s22 = smov [#allocation12]   ;;  %s1974_s18 = int_to_ptr.hbm [resolvable:$true] %s1973_s18 }
  0x17   :  { %v886_v2 = vld [vmem:[#allocation8 + $0x10] sm:$0xff]  ;;  %v887_v3 = vld [vmem:[#allocation8 + $0x18] sm:$0xff]  ;;  %v1012_v4 = vmul.f32 %v884_v0, %v884_v0  ;;  %v1013_v5 = vmul.f32 %v885_v1, %v885_v1  ;;  %v888_v9 = vld [vmem:[#allocation8 + $0x20] sm:$0xff] }
  0x18   :  { %v1014_v6 = vmul.f32 %v886_v2, %v886_v2  ;;  %v1015_v7 = vmul.f32 %v887_v3, %v887_v3  ;;  %v1016_v11 = vmul.f32 %v888_v9, %v888_v9  ;;  %v889_v13 = vld [vmem:[#allocation8 + $0x28] sm:$0xff]  ;;  %v890_v14 = vld [vmem:[#allocation8 + $0x30] sm:$0xff]  ;;  %v891_v17 = vld [vmem:[#allocation8 + $0x38] sm:$0xff] }
  0x19   :  { %v1140_v8 = vadd.f32 %v1013_v5, %v1012_v4  ;;  %v1017_v15 = vmul.f32 %v889_v13, %v889_v13  ;;  %v1018_v18 = vmul.f32 %v890_v14, %v890_v14  ;;  %v892_v19 = vld [vmem:[#allocation8 + $0x40] sm:$0xff]  ;;  %v1019_v20 = vmul.f32 %v891_v17, %v891_v17  ;;  %v893_v22 = vld [vmem:[#allocation8 + $0x48] sm:$0xff]  ;;  %v894_v25 = vld [vmem:[#allocation8 + $0x50] sm:$0xff] }
  0x1a   :  { %v1020_v23 = vmul.f32 %v892_v19, %v892_v19  ;;  %v1021_v26 = vmul.f32 %v893_v22, %v893_v22  ;;  %v895_v28 = vld [vmem:[#allocation8 + $0x58] sm:$0xff]  ;;  %v1022_v29 = vmul.f32 %v894_v25, %v894_v25  ;;  %v896_v31 = vld [vmem:[#allocation8 + $0x60] sm:$0xff]  ;;  %v897_v34 = vld [vmem:[#allocation8 + $0x68] sm:$0xff] }
  0x1b   :  { %v1141_v10 = vadd.f32 %v1140_v8, %v1014_v6  ;;  %v1023_v32 = vmul.f32 %v895_v28, %v895_v28  ;;  %v1024_v35 = vmul.f32 %v896_v31, %v896_v31  ;;  %v898_v37 = vld [vmem:[#allocation8 + $0x70] sm:$0xff]  ;;  %v1025_v38 = vmul.f32 %v897_v34, %v897_v34  ;;  %v899_v40 = vld [vmem:[#allocation8 + $0x78] sm:$0xff]  ;;  %v900_v43 = vld [vmem:[#allocation8 + $0x80] sm:$0xff] }
  0x1c   :  { %v1026_v41 = vmul.f32 %v898_v37, %v898_v37  ;;  %v1027_v44 = vmul.f32 %v899_v40, %v899_v40  ;;  %v901_v46 = vld [vmem:[#allocation8 + $0x88] sm:$0xff]  ;;  %v1028_v47 = vmul.f32 %v900_v43, %v900_v43  ;;  %v902_v49 = vld [vmem:[#allocation8 + $0x90] sm:$0xff]  ;;  %v903_v52 = vld [vmem:[#allocation8 + $0x98] sm:$0xff] }
  0x1d   :  { %v1142_v12 = vadd.f32 %v1141_v10, %v1015_v7  ;;  %v1029_v50 = vmul.f32 %v901_v46, %v901_v46  ;;  %v1030_v53 = vmul.f32 %v902_v49, %v902_v49  ;;  %v904_v55 = vld [vmem:[#allocation8 + $0xa0] sm:$0xff]  ;;  %v1031_v56 = vmul.f32 %v903_v52, %v903_v52  ;;  %v905_v58 = vld [vmem:[#allocation8 + $0xa8] sm:$0xff]  ;;  %v906_v61 = vld [vmem:[#allocation8 + $0xb0] sm:$0xff] }
  0x1e   :  { %v1032_v59 = vmul.f32 %v904_v55, %v904_v55  ;;  %v111_v62 = vld [vmem:[#allocation3] sm:$0xff]  ;;  %v1033_v63 = vmul.f32 %v905_v58, %v905_v58  ;;  %v112_v1 = vld [vmem:[#allocation3 + $0x8] sm:$0xff]  ;;  %v113_v2 = vld [vmem:[#allocation3 + $0x10] sm:$0xff]  ;;  %v1034_v8 = vmul.f32 %v906_v61, %v906_v61 }
  0x1f   :  { %v1143_v16 = vadd.f32 %v1142_v12, %v1016_v11  ;;  %v114_v3 = vld [vmem:[#allocation3 + $0x18] sm:$0xff]  ;;  %v239_v4 = vmul.f32 %v111_v62, %v111_v62  ;;  %v240_v6 = vmul.f32 %v112_v1, %v112_v1  ;;  %v241_v7 = vmul.f32 %v113_v2, %v113_v2  ;;  %v115_v10 = vld [vmem:[#allocation3 + $0x20] sm:$0xff]  ;;  %v909_v17 = vld [vmem:[#allocation8 + $0xc8] sm:$0xff] }
  0x20   :  { %v907_v5 = vld [vmem:[#allocation8 + $0xb8] sm:$0xff]  ;;  %v908_v11 = vld [vmem:[#allocation8 + $0xc0] sm:$0xff]  ;;  %v242_v12 = vmul.f32 %v114_v3, %v114_v3  ;;  %v117_v22 = vld [vmem:[#allocation3 + $0x30] sm:$0xff] }
  0x21   :  { %v1144_v21 = vadd.f32 %v1143_v16, %v1017_v15  ;;  %v367_v13 = vadd.f32 %v240_v6, %v239_v4  ;;  %v1035_v14 = vmul.f32 %v907_v5, %v907_v5  ;;  %v116_v16 = vld [vmem:[#allocation3 + $0x28] sm:$0xff]  ;;  %v118_v28 = vld [vmem:[#allocation3 + $0x38] sm:$0xff]  ;;  %v245_v31 = vmul.f32 %v117_v22, %v117_v22  ;;  %v914_v34 = vld [vmem:[#allocation8 + $0xf0] sm:$0xff] }
  0x22   :  { %v119_v37 = vld [vmem:[#allocation3 + $0x40] sm:$0xff]  ;;  %v917_v40 = vld [vmem:[#allocation8 + $0x108] sm:$0xff]  ;;  %v918_v43 = vld [vmem:[#allocation8 + $0x110] sm:$0xff] }
  0x23   :  { %v1145_v24 = vadd.f32 %v1144_v21, %v1018_v18  ;;  %v243_v18 = vmul.f32 %v115_v10, %v115_v10  ;;  %v368_v19 = vadd.f32 %v367_v13, %v241_v7  ;;  %v921_v49 = vld [vmem:[#allocation8 + $0x128] sm:$0xff]  ;;  %v926_v61 = vld [vmem:[#allocation8 + $0x150] sm:$0xff]  ;;  %v927_v62 = vld [vmem:[#allocation8 + $0x158] sm:$0xff]  ;;  %v2199_v5 = vmul.f32 %v917_v40, %v917_v40 }
  0x24   :  { %v928_v3 = vld [vmem:[#allocation8 + $0x160] sm:$0xff]  ;;  %v929_v4 = vld [vmem:[#allocation8 + $0x168] sm:$0xff]  ;;  %v2201_v6 = vmul.f32 %v918_v43, %v918_v43  ;;  %v930_v10 = vld [vmem:[#allocation8 + $0x170] sm:$0xff] }
  0x25   :  { %v1146_v27 = vadd.f32 %v1145_v24, %v1019_v20  ;;  %v1036_v20 = vmul.f32 %v908_v11, %v908_v11  ;;  %v244_v24 = vmul.f32 %v116_v16, %v116_v16  ;;  %v369_v25 = vadd.f32 %v368_v19, %v242_v12  ;;  %v931_v11 = vld [vmem:[#allocation8 + $0x178] sm:$0xff]  ;;  %v932_v12 = vld [vmem:[#allocation8 + $0x180] sm:$0xff]  ;;  %v942_v40 = vld [vmem:[#allocation8 + $0x1d0] sm:$0xff] }
  0x27   :  { %v1147_v30 = vadd.f32 %v1146_v27, %v1020_v23  ;;  %v910_v23 = vld [vmem:[#allocation8 + $0xd0] sm:$0xff] }
  0x29   :  { %v1148_v33 = vadd.f32 %v1147_v30, %v1021_v26  ;;  %v1037_v26 = vmul.f32 %v909_v17, %v909_v17  ;;  %v912_v30 = vld [vmem:[#allocation8 + $0xe0] sm:$0xff]  ;;  %v933_v17 = vld [vmem:[#allocation8 + $0x188] sm:$0xff] }
  0x2a   :  { %v1040_v55 = vmul.f32 %v912_v30, %v912_v30 }
  0x2b   :  { %v1149_v36 = vadd.f32 %v1148_v33, %v1022_v29  ;;  %v911_v29 = vld [vmem:[#allocation8 + $0xd8] sm:$0xff]  ;;  %v913_v33 = vld [vmem:[#allocation8 + $0xe8] sm:$0xff] }
  0x2d   :  { %v1150_v39 = vadd.f32 %v1149_v36, %v1023_v32  ;;  %v370_v32 = vadd.f32 %v369_v25, %v243_v18  ;;  %v934_v18 = vld [vmem:[#allocation8 + $0x190] sm:$0xff]  ;;  %v936_v25 = vld [vmem:[#allocation8 + $0x1a0] sm:$0xff] }
  0x2f   :  { %v1151_v42 = vadd.f32 %v1150_v39, %v1024_v35  ;;  %v1038_v35 = vmul.f32 %v910_v23, %v910_v23  ;;  %v916_v39 = vld [vmem:[#allocation8 + $0x100] sm:$0xff] }
  0x30   :  { %v123_v23 = vld [vmem:[#allocation3 + $0x60] sm:$0xff] }
  0x31   :  { %v1152_v45 = vadd.f32 %v1151_v42, %v1025_v38  ;;  %v915_v38 = vld [vmem:[#allocation8 + $0xf8] sm:$0xff]  ;;  %v371_v42 = vadd.f32 %v370_v32, %v244_v24  ;;  %v251_v43 = vmul.f32 %v123_v23, %v123_v23 }
  0x32   :  { %v935_v24 = vld [vmem:[#allocation8 + $0x198] sm:$0xff] }
  0x33   :  { %v1153_v48 = vadd.f32 %v1152_v45, %v1026_v41  ;;  %v246_v41 = vmul.f32 %v118_v28, %v118_v28  ;;  %v1039_v45 = vmul.f32 %v911_v29, %v911_v29  ;;  %v372_v52 = vadd.f32 %v371_v42, %v245_v31  ;;  %v938_v31 = vld [vmem:[#allocation8 + $0x1b0] sm:$0xff]  ;;  %v939_v32 = vld [vmem:[#allocation8 + $0x1b8] sm:$0xff] }
  0x34   :  { %v2217_v28 = vmul.f32 %v926_v61, %v926_v61  ;;  %v2227_v42 = vmul.f32 %v931_v11, %v931_v11  ;;  %v949_v61 = vld [vmem:[#allocation8 + $0x208] sm:$0xff] }
  0x35   :  { %v1154_v51 = vadd.f32 %v1153_v48, %v1027_v44  ;;  %v919_v44 = vld [vmem:[#allocation8 + $0x118] sm:$0xff]  ;;  %v920_v48 = vld [vmem:[#allocation8 + $0x120] sm:$0xff]  ;;  %v373_v2 = vadd.f32 %v372_v52, %v246_v41  ;;  %v2225_v41 = vmul.f32 %v930_v10, %v930_v10  ;;  %v945_v52 = vld [vmem:[#allocation8 + $0x1e8] sm:$0xff] }
  0x36   :  { %v2203_v7 = vmul.f32 %v919_v44, %v919_v44  ;;  %v2205_v13 = vmul.f32 %v920_v48, %v920_v48  ;;  %v2231_v48 = vmul.f32 %v933_v17, %v933_v17  ;;  %v2250_v17 = vmul.f32 %v942_v40, %v942_v40 }
  0x37   :  { %v1155_v54 = vadd.f32 %v1154_v51, %v1028_v47  ;;  %v120_v47 = vld [vmem:[#allocation3 + $0x48] sm:$0xff]  ;;  %v247_v51 = vmul.f32 %v119_v37, %v119_v37 }
  0x38   :  { %v248_v1 = vmul.f32 %v120_v47, %v120_v47  ;;  %v124_v37 = vld [vmem:[#allocation3 + $0x68] sm:$0xff]  ;;  %v2229_v47 = vmul.f32 %v932_v12, %v932_v12 }
  0x39   :  { %v1156_v57 = vadd.f32 %v1155_v54, %v1029_v50  ;;  %v922_v50 = vld [vmem:[#allocation8 + $0x130] sm:$0xff]  ;;  %v924_v54 = vld [vmem:[#allocation8 + $0x140] sm:$0xff]  ;;  %v374_v16 = vadd.f32 %v373_v2, %v247_v51  ;;  %v2243_v2 = vmul.f32 %v939_v32, %v939_v32 }
  0x3a   :  { %v2209_v19 = vmul.f32 %v922_v50, %v922_v50  ;;  %v125_v51 = vld [vmem:[#allocation3 + $0x70] sm:$0xff]  ;;  %v1399_v32 = vld [vmem:[#allocation11] sm:$0xff] }
  0x3b   :  { %v1157_v60 = vadd.f32 %v1156_v57, %v1030_v53  ;;  %v923_v53 = vld [vmem:[#allocation8 + $0x138] sm:$0xff]  ;;  %v1042_v57 = vmul.f32 %v914_v34, %v914_v34  ;;  %v375_v30 = vadd.f32 %v374_v16, %v248_v1  ;;  %v2221_v34 = vmul.f32 %v928_v3, %v928_v3  ;;  %v953_v16 = vld [vmem:[#allocation8 + $0x228] sm:$0xff] }
  0x3c   :  { %v2241_v1 = vmul.f32 %v938_v31, %v938_v31  ;;  %v126_v3 = vld [vmem:[#allocation3 + $0x78] sm:$0xff]  ;;  %v253_v12 = vmul.f32 %v125_v51, %v125_v51  ;;  %v1272_v31 = vld [vmem:[#allocation9 + $0x8] sm:$0xff] }
  0x3d   :  { %v1158_v0 = vadd.f32 %v1157_v60, %v1031_v56  ;;  %v1041_v56 = vmul.f32 %v913_v33, %v913_v33  ;;  %v925_v60 = vld [vmem:[#allocation8 + $0x148] sm:$0xff]  ;;  %v2219_v33 = vmul.f32 %v927_v62, %v927_v62 }
  0x3f   :  { %v1159_v9 = vadd.f32 %v1158_v0, %v1032_v59  ;;  %v121_v59 = vld [vmem:[#allocation3 + $0x50] sm:$0xff]  ;;  %v2197_v0 = vmul.f32 %v916_v39, %v916_v39  ;;  %v941_v39 = vld [vmem:[#allocation8 + $0x1c8] sm:$0xff] }
  0x40   :  { %v2248_v11 = vmul.f32 %v941_v39, %v941_v39 }
  0x41   :  { %v1160_v15 = vadd.f32 %v1159_v9, %v1033_v63  ;;  %v2195_v63 = vmul.f32 %v915_v38, %v915_v38  ;;  %v122_v9 = vld [vmem:[#allocation3 + $0x58] sm:$0xff]  ;;  %v940_v38 = vld [vmem:[#allocation8 + $0x1c0] sm:$0xff] }
  0x42   :  { %v250_v29 = vmul.f32 %v122_v9, %v122_v9  ;;  %v952_v9 = vld [vmem:[#allocation8 + $0x220] sm:$0xff]  ;;  %v2246_v10 = vmul.f32 %v940_v38, %v940_v38  ;;  %v955_v38 = vld [vmem:[#allocation8 + $0x238] sm:$0xff] }
  0x43   :  { %v1161_v21 = vadd.f32 %v1160_v15, %v1034_v8  ;;  %v249_v15 = vmul.f32 %v121_v59, %v121_v59 }
  0x45   :  { %v1162_v27 = vadd.f32 %v1161_v21, %v1035_v14  ;;  %v2207_v14 = vmul.f32 %v921_v49, %v921_v49  ;;  %v2213_v21 = vmul.f32 %v924_v54, %v924_v54  ;;  %v376_v44 = vadd.f32 %v375_v30, %v249_v15  ;;  %v947_v54 = vld [vmem:[#allocation8 + $0x1f8] sm:$0xff] }
  0x46   :  { %v2233_v49 = vmul.f32 %v934_v18, %v934_v18  ;;  %v2261_v39 = vmul.f32 %v947_v54, %v947_v54  ;;  %v2272_v54 = vmul.f32 %v952_v9, %v952_v9 }
  0x47   :  { %v1163_v36 = vadd.f32 %v1162_v27, %v1036_v20  ;;  %v2211_v20 = vmul.f32 %v923_v53, %v923_v53  ;;  %v2215_v27 = vmul.f32 %v925_v60, %v925_v60  ;;  %v946_v53 = vld [vmem:[#allocation8 + $0x1f0] sm:$0xff]  ;;  %v377_v59 = vadd.f32 %v376_v44, %v250_v29  ;;  %v948_v60 = vld [vmem:[#allocation8 + $0x200] sm:$0xff]  ;;  %v128_v44 = vld [vmem:[#allocation3 + $0x88] sm:$0xff] }
  0x48   :  { %v254_v29 = vmul.f32 %v126_v3, %v126_v3  ;;  %v2263_v40 = vmul.f32 %v948_v60, %v948_v60 }
  0x49   :  { %v1164_v46 = vadd.f32 %v1163_v36, %v1037_v26  ;;  %v937_v26 = vld [vmem:[#allocation8 + $0x1a8] sm:$0xff]  ;;  %v378_v15 = vadd.f32 %v377_v59, %v251_v43  ;;  %v2265_v43 = vmul.f32 %v949_v61, %v949_v61  ;;  %v129_v61 = vld [vmem:[#allocation3 + $0x90] sm:$0xff] }
  0x4a   :  { %v2239_v62 = vmul.f32 %v937_v26, %v937_v26  ;;  %v2259_v26 = vmul.f32 %v946_v53, %v946_v53  ;;  %v1273_v53 = vld [vmem:[#allocation9 + $0x10] sm:$0xff]  ;;  %v957_v59 = vld [vmem:[#allocation8 + $0x248] sm:$0xff] }
  0x4b   :  { %v1165_v58 = vadd.f32 %v1164_v46, %v1038_v35  ;;  %v2223_v35 = vmul.f32 %v929_v4, %v929_v4  ;;  %v944_v46 = vld [vmem:[#allocation8 + $0x1e0] sm:$0xff]  ;;  %v950_v4 = vld [vmem:[#allocation8 + $0x210] sm:$0xff]  ;;  %2471 = vst [vmem:[#allocation17_spill] sm:$0xff] %v2265_v43 }
  0x4d   :  { %v1166_v8 = vadd.f32 %v1165_v58, %v1039_v45  ;;  %v943_v45 = vld [vmem:[#allocation8 + $0x1d8] sm:$0xff]  ;;  %v252_v58 = vmul.f32 %v124_v37, %v124_v37  ;;  %v954_v37 = vld [vmem:[#allocation8 + $0x230] sm:$0xff] }
  0x4e   :  { %v2252_v18 = vmul.f32 %v943_v45, %v943_v45  ;;  %v956_v45 = vld [vmem:[#allocation8 + $0x240] sm:$0xff] }
  0x4f   :  { %v1167_v22 = vadd.f32 %v1166_v8, %v1040_v55  ;;  %v2235_v55 = vmul.f32 %v935_v24, %v935_v24  ;;  %v951_v8 = vld [vmem:[#allocation8 + $0x218] sm:$0xff]  ;;  %v1271_v24 = vld [vmem:[#allocation9] sm:$0xff]  ;;  %v379_v30 = vadd.f32 %v378_v15, %v252_v58  ;;  %v1401_v58 = vld [vmem:[#allocation11 + $0x10] sm:$0xff]  ;;  %v2281_v43 = vmul.f32 %v956_v45, %v956_v45 }
  0x50   :  { %v1527_v3 = vsub.f32 %v1271_v24, %v1399_v32  ;;  %v961_v24 = vld [vmem:[#allocation8 + $0x268] sm:$0xff]  ;;  %v257_v32 = vmul.f32 %v129_v61, %v129_v61  ;;  %v964_v61 = vld [vmem:[#allocation8 + $0x280] sm:$0xff] }
  0x51   :  { %v1168_v36 = vadd.f32 %v1167_v22, %v1041_v56  ;;  %v2237_v56 = vmul.f32 %v936_v25, %v936_v25  ;;  %v2254_v22 = vmul.f32 %v944_v46, %v944_v46  ;;  %v2257_v25 = vmul.f32 %v945_v52, %v945_v52  ;;  %2476 = vst [vmem:[#allocation22_spill] sm:$0xff] %v2281_v43 }
  0x52   :  { %v2268_v46 = vmul.f32 %v950_v4, %v950_v4  ;;  %v380_v52 = vadd.f32 %v379_v30, %v253_v12  ;;  %v256_v4 = vmul.f32 %v128_v44, %v128_v44  ;;  %v959_v12 = vld [vmem:[#allocation8 + $0x258] sm:$0xff]  ;;  %v960_v30 = vld [vmem:[#allocation8 + $0x260] sm:$0xff]  ;;  %v962_v44 = vld [vmem:[#allocation8 + $0x270] sm:$0xff]  ;;  %v1655_v43 = vmul.f32 %v1527_v3, %v1527_v3 }
  0x53   :  { %v1169_v50 = vadd.f32 %v1168_v36, %v1042_v57  ;;  %v1400_v36 = vld [vmem:[#allocation11 + $0x8] sm:$0xff] }
  0x54   :  { %2472 = vst [vmem:[#allocation18_spill] sm:$0xff] %v2268_v46  ;;  %v1528_v15 = vsub.f32 %v1272_v31, %v1400_v36  ;;  %v2279_v46 = vmul.f32 %v955_v38, %v955_v38  ;;  %v2284_v31 = vmul.f32 %v957_v59, %v957_v59 }
  0x55   :  { %v1170_v57 = vadd.f32 %v1169_v50, %v2195_v63  ;;  %v127_v63 = vld [vmem:[#allocation3 + $0x80] sm:$0xff]  ;;  %v2270_v50 = vmul.f32 %v951_v8, %v951_v8  ;;  %v381_v8 = vadd.f32 %v380_v52, %v254_v29  ;;  %v963_v52 = vld [vmem:[#allocation8 + $0x278] sm:$0xff] }
  0x56   :  { %v255_v51 = vmul.f32 %v127_v63, %v127_v63  ;;  %v1402_v63 = vld [vmem:[#allocation11 + $0x18] sm:$0xff]  ;;  %2475 = vst [vmem:[#allocation21_spill] sm:$0xff] %v2279_v46  ;;  %v1275_v29 = vld [vmem:[#allocation9 + $0x20] sm:$0xff]  ;;  %v2298_v3 = vmul.f32 %v963_v52, %v963_v52 }
  0x57   :  { %v1171_v23 = vadd.f32 %v1170_v57, %v2197_v0  ;;  %2473 = vst [vmem:[#allocation19_spill] sm:$0xff] %v2270_v50  ;;  %v958_v57 = vld [vmem:[#allocation8 + $0x250] sm:$0xff]  ;;  %v1274_v50 = vld [vmem:[#allocation9 + $0x18] sm:$0xff]  ;;  %v131_v46 = vld [vmem:[#allocation3 + $0xa0] sm:$0xff] }
  0x58   :  { %2477 = vst [vmem:[#allocation23_spill] sm:$0xff] %v2284_v31  ;;  %v382_v36 = vadd.f32 %v381_v8, %v255_v51  ;;  %v1530_v45 = vsub.f32 %v1274_v50, %v1402_v63  ;;  %v965_v51 = vld [vmem:[#allocation8 + $0x288] sm:$0xff]  ;;  %v2293_v8 = vmul.f32 %v961_v24, %v961_v24  ;;  %v2296_v50 = vmul.f32 %v962_v44, %v962_v44  ;;  %v1278_v44 = vld [vmem:[#allocation9 + $0x38] sm:$0xff] }
  0x59   :  { %v1172_v0 = vadd.f32 %v1171_v23, %v2199_v5  ;;  %v2275_v5 = vmul.f32 %v953_v16, %v953_v16  ;;  %v2277_v23 = vmul.f32 %v954_v37, %v954_v37  ;;  %v2286_v16 = vmul.f32 %v958_v57, %v958_v57  ;;  %v1403_v37 = vld [vmem:[#allocation11 + $0x20] sm:$0xff]  ;;  %v1276_v57 = vld [vmem:[#allocation9 + $0x28] sm:$0xff]  ;;  %2483 = vst [vmem:[#allocation29_spill] sm:$0xff] %v2298_v3  ;;  %v1406_v52 = vld [vmem:[#allocation11 + $0x38] sm:$0xff] }
  0x5a   :  { %v383_v59 = vadd.f32 %v382_v36, %v256_v4  ;;  %2481 = vst [vmem:[#allocation27_spill] sm:$0xff] %v2293_v8  ;;  %v132_v31 = vld [vmem:[#allocation3 + $0xa8] sm:$0xff]  ;;  %v966_v4 = vld [vmem:[#allocation8 + $0x290] sm:$0xff]  ;;  %v1658_v8 = vmul.f32 %v1530_v45, %v1530_v45 }
  0x5b   :  { %v1173_v60 = vadd.f32 %v1172_v0, %v2201_v6  ;;  %2474 = vst [vmem:[#allocation20_spill] sm:$0xff] %v2277_v23  ;;  %v130_v6 = vld [vmem:[#allocation3 + $0x98] sm:$0xff]  ;;  %v1529_v0 = vsub.f32 %v1273_v53, %v1401_v58  ;;  %v1656_v23 = vmul.f32 %v1528_v15, %v1528_v15  ;;  %v2291_v53 = vmul.f32 %v960_v30, %v960_v30  ;;  %v1405_v30 = vld [vmem:[#allocation11 + $0x30] sm:$0xff] }
  0x5c   :  { %2478 = vst [vmem:[#allocation24_spill] sm:$0xff] %v2286_v16  ;;  %v258_v58 = vmul.f32 %v130_v6, %v130_v6  ;;  %v259_v15 = vmul.f32 %v131_v46, %v131_v46  ;;  %v384_v63 = vadd.f32 %v383_v59, %v257_v32  ;;  %v967_v6 = vld [vmem:[#allocation8 + $0x298] sm:$0xff]  ;;  %v968_v46 = vld [vmem:[#allocation8 + $0x2a0] sm:$0xff]  ;;  %v969_v32 = vld [vmem:[#allocation8 + $0x2a8] sm:$0xff] }
  0x5d   :  { %v1174_v9 = vadd.f32 %v1173_v60, %v2203_v7  ;;  %v2289_v7 = vmul.f32 %v959_v12, %v959_v12  ;;  %2480 = vst [vmem:[#allocation26_spill] sm:$0xff] %v2291_v53  ;;  %v1404_v60 = vld [vmem:[#allocation11 + $0x28] sm:$0xff]  ;;  %v1277_v12 = vld [vmem:[#allocation9 + $0x30] sm:$0xff]  ;;  %v134_v59 = vld [vmem:[#allocation3 + $0xb8] sm:$0xff]  ;;  %v2308_v45 = vmul.f32 %v967_v6, %v967_v6 }
  0x5e   :  { %2482 = vst [vmem:[#allocation28_spill] sm:$0xff] %v2296_v50  ;;  %v133_v53 = vld [vmem:[#allocation3 + $0xb0] sm:$0xff]  ;;  %v1532_v24 = vsub.f32 %v1276_v57, %v1404_v60  ;;  %v1533_v3 = vsub.f32 %v1277_v12, %v1405_v30  ;;  %v1279_v57 = vld [vmem:[#allocation9 + $0x40] sm:$0xff]  ;;  %v1280_v12 = vld [vmem:[#allocation9 + $0x48] sm:$0xff] }
  0x5f   :  { %v1175_v38 = vadd.f32 %v1174_v9, %v2205_v13  ;;  %2479 = vst [vmem:[#allocation25_spill] sm:$0xff] %v2289_v7  ;;  %v1531_v13 = vsub.f32 %v1275_v29, %v1403_v37  ;;  %v1657_v9 = vmul.f32 %v1529_v0, %v1529_v0  ;;  %v1783_v7 = vadd.f32 %v1656_v23, %v1655_v43  ;;  %v1407_v60 = vld [vmem:[#allocation11 + $0x40] sm:$0xff]  ;;  %v1408_v30 = vld [vmem:[#allocation11 + $0x48] sm:$0xff] }
  0x60   :  { %v2303_v29 = vmul.f32 %v965_v51, %v965_v51  ;;  %v260_v0 = vmul.f32 %v132_v31, %v132_v31  ;;  %v385_v37 = vadd.f32 %v384_v63, %v258_v58  ;;  %2485 = vst [vmem:[#allocation31_spill] sm:$0xff] %v2308_v45  ;;  %v261_v43 = vmul.f32 %v133_v53, %v133_v53  ;;  %v970_v31 = vld [vmem:[#allocation8 + $0x2b0] sm:$0xff]  ;;  %v971_v58 = vld [vmem:[#allocation8 + $0x2b8] sm:$0xff]  ;;  %v135_v51 = vld [vmem:[#allocation3 + $0xc0] sm:$0xff] }
  0x61   :  { %v1176_v16 = vadd.f32 %v1175_v38, %v2207_v14  ;;  %v2301_v14 = vmul.f32 %v964_v61, %v964_v61  ;;  %v1659_v50 = vmul.f32 %v1531_v13, %v1531_v13  ;;  %v1534_v63 = vsub.f32 %v1278_v44, %v1406_v52  ;;  %v972_v53 = vld [vmem:[#allocation8 + $0x2c0] sm:$0xff]  ;;  %v136_v6 = vld [vmem:[#allocation3 + $0xc8] sm:$0xff]  ;;  %v1281_v52 = vld [vmem:[#allocation9 + $0x50] sm:$0xff] }
  0x62   :  { %2484 = vst [vmem:[#allocation30_spill] sm:$0xff] %v2303_v29  ;;  %v386_v23 = vadd.f32 %v385_v37, %v259_v15  ;;  %v1660_v29 = vmul.f32 %v1532_v24, %v1532_v24  ;;  %v2313_v13 = vmul.f32 %v969_v32, %v969_v32  ;;  %v973_v15 = vld [vmem:[#allocation8 + $0x2c8] sm:$0xff]  ;;  %v1535_v37 = vsub.f32 %v1279_v57, %v1407_v60  ;;  %v974_v32 = vld [vmem:[#allocation8 + $0x2d0] sm:$0xff]  ;;  %v1282_v60 = vld [vmem:[#allocation9 + $0x58] sm:$0xff] }
  0x63   :  { %v1177_v36 = vadd.f32 %v1176_v16, %v2209_v19  ;;  %v1784_v19 = vadd.f32 %v1783_v7, %v1657_v9  ;;  %v2306_v16 = vmul.f32 %v966_v4, %v966_v4  ;;  %v262_v7 = vmul.f32 %v134_v59, %v134_v59 }
  0x64   :  { %2486 = vst [vmem:[#allocation32_spill] sm:$0xff] %v2313_v13  ;;  %v387_v9 = vadd.f32 %v386_v23, %v260_v0  ;;  %v1661_v45 = vmul.f32 %v1533_v3, %v1533_v3  ;;  %v2318_v24 = vmul.f32 %v971_v58, %v971_v58  ;;  %v975_v0 = vld [vmem:[#allocation8 + $0x2d8] sm:$0xff]  ;;  %v1536_v23 = vsub.f32 %v1280_v12, %v1408_v30  ;;  %v976_v58 = vld [vmem:[#allocation8 + $0x2e0] sm:$0xff] }
  0x65   :  { %v1178_v38 = vadd.f32 %v1177_v36, %v2211_v20  ;;  %v1785_v20 = vadd.f32 %v1784_v19, %v1658_v8  ;;  %v2311_v36 = vmul.f32 %v968_v46, %v968_v46  ;;  %v263_v8 = vmul.f32 %v135_v51, %v135_v51  ;;  %v1409_v46 = vld [vmem:[#allocation11 + $0x50] sm:$0xff]  ;;  %v1283_v30 = vld [vmem:[#allocation9 + $0x60] sm:$0xff] }
  0x66   :  { %2487 = vst [vmem:[#allocation33_spill] sm:$0xff] %v2318_v24  ;;  %v388_v44 = vadd.f32 %v387_v9, %v261_v43  ;;  %v137_v19 = vld [vmem:[#allocation3 + $0xd0] sm:$0xff]  ;;  %v1662_v13 = vmul.f32 %v1534_v63, %v1534_v63  ;;  %v2323_v3 = vmul.f32 %v973_v15, %v973_v15  ;;  %v977_v43 = vld [vmem:[#allocation8 + $0x2e8] sm:$0xff]  ;;  %v1537_v9 = vsub.f32 %v1281_v52, %v1409_v46 }
  0x67   :  { %v1179_v61 = vadd.f32 %v1178_v38, %v2213_v21  ;;  %v1786_v21 = vadd.f32 %v1785_v20, %v1659_v50  ;;  %v2316_v38 = vmul.f32 %v970_v31, %v970_v31  ;;  %v264_v50 = vmul.f32 %v136_v6, %v136_v6  ;;  %v1410_v31 = vld [vmem:[#allocation11 + $0x58] sm:$0xff]  ;;  %v978_v15 = vld [vmem:[#allocation8 + $0x2f0] sm:$0xff]  ;;  %v1284_v46 = vld [vmem:[#allocation9 + $0x68] sm:$0xff] }
  0x68   :  { %2488 = vst [vmem:[#allocation34_spill] sm:$0xff] %v2323_v3  ;;  %v389_v57 = vadd.f32 %v388_v44, %v262_v7  ;;  %v138_v20 = vld [vmem:[#allocation3 + $0xd8] sm:$0xff]  ;;  %v1663_v24 = vmul.f32 %v1535_v37, %v1535_v37  ;;  %v2328_v63 = vmul.f32 %v975_v0, %v975_v0  ;;  %v1538_v44 = vsub.f32 %v1282_v60, %v1410_v31  ;;  %v980_v0 = vld [vmem:[#allocation8 + $0x300] sm:$0xff]  ;;  %v1285_v31 = vld [vmem:[#allocation9 + $0x70] sm:$0xff] }
  0x69   :  { %v1180_v4 = vadd.f32 %v1179_v61, %v2215_v27  ;;  %v1787_v27 = vadd.f32 %v1786_v21, %v1660_v29  ;;  %v2321_v61 = vmul.f32 %v972_v53, %v972_v53  ;;  %v265_v29 = vmul.f32 %v137_v19, %v137_v19  ;;  %v1411_v53 = vld [vmem:[#allocation11 + $0x60] sm:$0xff]  ;;  %v979_v7 = vld [vmem:[#allocation8 + $0x2f8] sm:$0xff] }
  0x6a   :  { %2489 = vst [vmem:[#allocation35_spill] sm:$0xff] %v2328_v63  ;;  %v390_v12 = vadd.f32 %v389_v57, %v263_v8  ;;  %v139_v21 = vld [vmem:[#allocation3 + $0xe0] sm:$0xff]  ;;  %v1664_v3 = vmul.f32 %v1536_v23, %v1536_v23  ;;  %v2333_v37 = vmul.f32 %v977_v43, %v977_v43  ;;  %v981_v8 = vld [vmem:[#allocation8 + $0x308] sm:$0xff]  ;;  %v1539_v57 = vsub.f32 %v1283_v30, %v1411_v53  ;;  %v982_v43 = vld [vmem:[#allocation8 + $0x310] sm:$0xff] }
  0x6b   :  { %v1181_v59 = vadd.f32 %v1180_v4, %v2217_v28  ;;  %v1788_v28 = vadd.f32 %v1787_v27, %v1661_v45  ;;  %v2326_v4 = vmul.f32 %v974_v32, %v974_v32  ;;  %v266_v45 = vmul.f32 %v138_v20, %v138_v20  ;;  %v1412_v32 = vld [vmem:[#allocation11 + $0x68] sm:$0xff]  ;;  %v1286_v53 = vld [vmem:[#allocation9 + $0x78] sm:$0xff] }
  0x6c   :  { %2490 = vst [vmem:[#allocation36_spill] sm:$0xff] %v2333_v37  ;;  %v391_v52 = vadd.f32 %v390_v12, %v264_v50  ;;  %v140_v27 = vld [vmem:[#allocation3 + $0xe8] sm:$0xff]  ;;  %v1665_v63 = vmul.f32 %v1537_v9, %v1537_v9  ;;  %v2338_v23 = vmul.f32 %v979_v7, %v979_v7  ;;  %v983_v50 = vld [vmem:[#allocation8 + $0x318] sm:$0xff]  ;;  %v1540_v12 = vsub.f32 %v1284_v46, %v1412_v32  ;;  %v984_v7 = vld [vmem:[#allocation8 + $0x320] sm:$0xff] }
  0x6d   :  { %v1182_v51 = vadd.f32 %v1181_v59, %v2219_v33  ;;  %v1789_v33 = vadd.f32 %v1788_v28, %v1662_v13  ;;  %v2331_v59 = vmul.f32 %v976_v58, %v976_v58  ;;  %v267_v13 = vmul.f32 %v139_v21, %v139_v21  ;;  %v1413_v58 = vld [vmem:[#allocation11 + $0x70] sm:$0xff]  ;;  %v1287_v32 = vld [vmem:[#allocation9 + $0x80] sm:$0xff] }
  0x6e   :  { %2491 = vst [vmem:[#allocation37_spill] sm:$0xff] %v2338_v23  ;;  %v392_v60 = vadd.f32 %v391_v52, %v265_v29  ;;  %v141_v28 = vld [vmem:[#allocation3 + $0xf0] sm:$0xff]  ;;  %v1666_v37 = vmul.f32 %v1538_v44, %v1538_v44  ;;  %v2343_v9 = vmul.f32 %v981_v8, %v981_v8  ;;  %v985_v29 = vld [vmem:[#allocation8 + $0x328] sm:$0xff]  ;;  %v1541_v52 = vsub.f32 %v1285_v31, %v1413_v58 }
  0x6f   :  { %v1183_v6 = vadd.f32 %v1182_v51, %v2221_v34  ;;  %v1790_v34 = vadd.f32 %v1789_v33, %v1663_v24  ;;  %v2336_v51 = vmul.f32 %v978_v15, %v978_v15  ;;  %v268_v24 = vmul.f32 %v140_v27, %v140_v27  ;;  %v1414_v15 = vld [vmem:[#allocation11 + $0x78] sm:$0xff]  ;;  %v986_v8 = vld [vmem:[#allocation8 + $0x330] sm:$0xff]  ;;  %v1288_v58 = vld [vmem:[#allocation9 + $0x88] sm:$0xff] }
  0x70   :  { %2492 = vst [vmem:[#allocation38_spill] sm:$0xff] %v2343_v9  ;;  %v393_v30 = vadd.f32 %v392_v60, %v266_v45  ;;  %v142_v33 = vld [vmem:[#allocation3 + $0xf8] sm:$0xff]  ;;  %v1667_v23 = vmul.f32 %v1539_v57, %v1539_v57  ;;  %v2348_v44 = vmul.f32 %v983_v50, %v983_v50  ;;  %v1542_v60 = vsub.f32 %v1286_v53, %v1414_v15  ;;  %v988_v50 = vld [vmem:[#allocation8 + $0x340] sm:$0xff]  ;;  %v1289_v15 = vld [vmem:[#allocation9 + $0x90] sm:$0xff] }
  0x71   :  { %v1184_v19 = vadd.f32 %v1183_v6, %v2223_v35  ;;  %v1791_v35 = vadd.f32 %v1790_v34, %v1664_v3  ;;  %v2341_v6 = vmul.f32 %v980_v0, %v980_v0  ;;  %v269_v3 = vmul.f32 %v141_v28, %v141_v28  ;;  %v1415_v0 = vld [vmem:[#allocation11 + $0x80] sm:$0xff]  ;;  %v987_v45 = vld [vmem:[#allocation8 + $0x338] sm:$0xff] }
  0x72   :  { %2493 = vst [vmem:[#allocation39_spill] sm:$0xff] %v2348_v44  ;;  %v394_v46 = vadd.f32 %v393_v30, %v267_v13  ;;  %v143_v34 = vld [vmem:[#allocation3 + $0x100] sm:$0xff]  ;;  %v1668_v9 = vmul.f32 %v1540_v12, %v1540_v12  ;;  %v2353_v57 = vmul.f32 %v985_v29, %v985_v29  ;;  %v989_v13 = vld [vmem:[#allocation8 + $0x348] sm:$0xff]  ;;  %v1543_v30 = vsub.f32 %v1287_v32, %v1415_v0  ;;  %v145_v29 = vld [vmem:[#allocation3 + $0x110] sm:$0xff] }
  0x73   :  { %v1185_v20 = vadd.f32 %v1184_v19, %v2225_v41  ;;  %v1792_v41 = vadd.f32 %v1791_v35, %v1665_v63  ;;  %v2346_v19 = vmul.f32 %v982_v43, %v982_v43  ;;  %v270_v63 = vmul.f32 %v142_v33, %v142_v33  ;;  %v1416_v43 = vld [vmem:[#allocation11 + $0x88] sm:$0xff]  ;;  %v1290_v0 = vld [vmem:[#allocation9 + $0x98] sm:$0xff] }
  0x74   :  { %2494 = vst [vmem:[#allocation40_spill] sm:$0xff] %v2353_v57  ;;  %v395_v31 = vadd.f32 %v394_v46, %v268_v24  ;;  %v144_v35 = vld [vmem:[#allocation3 + $0x108] sm:$0xff]  ;;  %v1669_v44 = vmul.f32 %v1541_v52, %v1541_v52  ;;  %v2358_v12 = vmul.f32 %v987_v45, %v987_v45  ;;  %v1544_v33 = vsub.f32 %v1288_v58, %v1416_v43  ;;  %v497_v57 = vld [vmem:[#allocation6] sm:$0xff]  ;;  %v990_v45 = vld [vmem:[#allocation8 + $0x350] sm:$0xff] }
  0x75   :  { %v1186_v21 = vadd.f32 %v1185_v20, %v2227_v42  ;;  %v1793_v42 = vadd.f32 %v1792_v41, %v1666_v37  ;;  %v2351_v20 = vmul.f32 %v984_v7, %v984_v7  ;;  %v271_v37 = vmul.f32 %v143_v34, %v143_v34  ;;  %v1417_v7 = vld [vmem:[#allocation11 + $0x90] sm:$0xff]  ;;  %v146_v34 = vld [vmem:[#allocation3 + $0x118] sm:$0xff]  ;;  %v1291_v43 = vld [vmem:[#allocation9 + $0xa0] sm:$0xff] }
  0x76   :  { %2495 = vst [vmem:[#allocation41_spill] sm:$0xff] %v2358_v12  ;;  %v396_v53 = vadd.f32 %v395_v31, %v269_v3  ;;  %v1670_v41 = vmul.f32 %v1542_v60, %v1542_v60  ;;  %v2363_v52 = vmul.f32 %v989_v13, %v989_v13  ;;  %v499_v58 = vld [vmem:[#allocation6 + $0x10] sm:$0xff]  ;;  %v273_v60 = vmul.f32 %v145_v29, %v145_v29 }
  0x77   :  { %v1187_v27 = vadd.f32 %v1186_v21, %v2229_v47  ;;  %v1794_v47 = vadd.f32 %v1793_v42, %v1667_v23  ;;  %v2356_v21 = vmul.f32 %v986_v8, %v986_v8  ;;  %v272_v23 = vmul.f32 %v144_v35, %v144_v35  ;;  %v1418_v8 = vld [vmem:[#allocation11 + $0x98] sm:$0xff]  ;;  %v147_v35 = vld [vmem:[#allocation3 + $0x120] sm:$0xff] }
  0x78   :  { %2497 = vst [vmem:[#allocation43_spill] sm:$0xff] %v2363_v52  ;;  %v397_v32 = vadd.f32 %v396_v53, %v270_v63  ;;  %v1545_v42 = vsub.f32 %v1289_v15, %v1417_v7  ;;  %v1546_v63 = vsub.f32 %v1290_v0, %v1418_v8  ;;  %v1672_v53 = vmul.f32 %v1544_v33, %v1544_v33  ;;  %v1293_v0 = vld [vmem:[#allocation9 + $0xb0] sm:$0xff] }
  0x79   :  { %v1188_v28 = vadd.f32 %v1187_v27, %v2231_v48  ;;  %v1795_v46 = vadd.f32 %v1794_v47, %v1668_v9  ;;  %v498_v48 = vld [vmem:[#allocation6 + $0x8] sm:$0xff]  ;;  %v2361_v27 = vmul.f32 %v988_v50, %v988_v50  ;;  %v625_v50 = vmul.f32 %v497_v57, %v497_v57  ;;  %v1421_v33 = vld [vmem:[#allocation11 + $0xb0] sm:$0xff] }
  0x7a   :  { %v398_v9 = vadd.f32 %v397_v32, %v271_v37  ;;  %v626_v47 = vmul.f32 %v498_v48, %v498_v48  ;;  %v2367_v12 = vmul.f32 %v990_v45, %v990_v45  ;;  %v627_v7 = vmul.f32 %v499_v58, %v499_v58  ;;  %v501_v48 = vld [vmem:[#allocation6 + $0x20] sm:$0xff]  ;;  %v502_v58 = vld [vmem:[#allocation6 + $0x28] sm:$0xff] }
  0x7b   :  { %v1189_v24 = vadd.f32 %v1188_v28, %v2233_v49  ;;  %2496 = vst [vmem:[#allocation42_spill] sm:$0xff] %v2361_v27  ;;  %v1671_v49 = vmul.f32 %v1543_v30, %v1543_v30  ;;  %v1796_v31 = vadd.f32 %v1795_v46, %v1669_v44  ;;  %v1419_v28 = vld [vmem:[#allocation11 + $0xa0] sm:$0xff]  ;;  %v500_v27 = vld [vmem:[#allocation6 + $0x18] sm:$0xff]  ;;  %v1292_v30 = vld [vmem:[#allocation9 + $0xa8] sm:$0xff]  ;;  %v1673_v57 = vmul.f32 %v1545_v42, %v1545_v42 }
  0x7c   :  { %v399_v15 = vadd.f32 %v398_v9, %v272_v23  ;;  %v1420_v44 = vld [vmem:[#allocation11 + $0xa8] sm:$0xff]  ;;  %v1547_v29 = vsub.f32 %v1291_v43, %v1419_v28  ;;  %v753_v8 = vadd.f32 %v626_v47, %v625_v50  ;;  %v1422_v43 = vld [vmem:[#allocation11 + $0xb8] sm:$0xff]  ;;  %v629_v42 = vmul.f32 %v501_v48, %v501_v48  ;;  %v503_v50 = vld [vmem:[#allocation6 + $0x30] sm:$0xff] }
  0x7d   :  { %v1190_v3 = vadd.f32 %v1189_v24, %v2235_v55  ;;  %v1797_v52 = vadd.f32 %v1796_v31, %v1670_v41  ;;  %v274_v55 = vmul.f32 %v146_v34, %v146_v34  ;;  %v148_v24 = vld [vmem:[#allocation3 + $0x128] sm:$0xff]  ;;  %v628_v41 = vmul.f32 %v500_v27, %v500_v27 }
  0x7e   :  { %v400_v32 = vadd.f32 %v399_v15, %v273_v60  ;;  %v1548_v23 = vsub.f32 %v1292_v30, %v1420_v44  ;;  %v1674_v34 = vmul.f32 %v1546_v63, %v1546_v63  ;;  %v276_v9 = vmul.f32 %v148_v24, %v148_v24  ;;  %v150_v60 = vld [vmem:[#allocation3 + $0x138] sm:$0xff]  ;;  %v1295_v15 = vld [vmem:[#allocation9 + $0xc0] sm:$0xff] }
  0x7f   :  { %v1191_v13 = vadd.f32 %v1190_v3, %v2237_v56  ;;  %v1798_v46 = vadd.f32 %v1797_v52, %v1671_v49  ;;  %v275_v56 = vmul.f32 %v147_v35, %v147_v35  ;;  %v149_v3 = vld [vmem:[#allocation3 + $0x130] sm:$0xff]  ;;  %v754_v52 = vadd.f32 %v753_v8, %v627_v7  ;;  %v1423_v30 = vld [vmem:[#allocation11 + $0xc0] sm:$0xff]  ;;  %v504_v7 = vld [vmem:[#allocation6 + $0x38] sm:$0xff] }
  0x80   :  { %v1549_v28 = vsub.f32 %v1293_v0, %v1421_v33  ;;  %v1675_v35 = vmul.f32 %v1547_v29, %v1547_v29  ;;  %v277_v47 = vmul.f32 %v149_v3, %v149_v3  ;;  %v630_v63 = vmul.f32 %v502_v58, %v502_v58  ;;  %v1424_v0 = vld [vmem:[#allocation11 + $0xc8] sm:$0xff]  ;;  %v1297_v58 = vld [vmem:[#allocation9 + $0xd0] sm:$0xff] }
  0x81   :  { %v1192_v37 = vadd.f32 %v1191_v13, %v2239_v62  ;;  %v1799_v31 = vadd.f32 %v1798_v46, %v1672_v53  ;;  %v401_v62 = vadd.f32 %v400_v32, %v274_v55  ;;  %v1294_v13 = vld [vmem:[#allocation9 + $0xb8] sm:$0xff]  ;;  %v755_v53 = vadd.f32 %v754_v52, %v628_v41  ;;  %v151_v55 = vld [vmem:[#allocation3 + $0x140] sm:$0xff]  ;;  %v1296_v32 = vld [vmem:[#allocation9 + $0xc8] sm:$0xff] }
  0x82   :  { %v1676_v24 = vmul.f32 %v1548_v23, %v1548_v23  ;;  %v278_v48 = vmul.f32 %v150_v60, %v150_v60  ;;  %v631_v29 = vmul.f32 %v503_v50, %v503_v50  ;;  %v1551_v8 = vsub.f32 %v1295_v15, %v1423_v30  ;;  %v505_v41 = vld [vmem:[#allocation6 + $0x40] sm:$0xff]  ;;  %v1426_v50 = vld [vmem:[#allocation11 + $0xd8] sm:$0xff] }
  0x83   :  { %v1193_v45 = vadd.f32 %v1192_v37, %v2241_v1  ;;  %v1800_v27 = vadd.f32 %v1799_v31, %v1673_v57  ;;  %v402_v1 = vadd.f32 %v401_v62, %v275_v56  ;;  %v1550_v37 = vsub.f32 %v1294_v13, %v1422_v43  ;;  %v152_v56 = vld [vmem:[#allocation3 + $0x148] sm:$0xff]  ;;  %v1425_v62 = vld [vmem:[#allocation11 + $0xd0] sm:$0xff] }
  0x84   :  { %v756_v57 = vadd.f32 %v755_v53, %v629_v42  ;;  %v279_v31 = vmul.f32 %v151_v55, %v151_v55  ;;  %v632_v23 = vmul.f32 %v504_v7, %v504_v7  ;;  %v1552_v43 = vsub.f32 %v1296_v32, %v1424_v0  ;;  %v506_v42 = vld [vmem:[#allocation6 + $0x48] sm:$0xff]  ;;  %v1299_v55 = vld [vmem:[#allocation9 + $0xe0] sm:$0xff] }
  0x85   :  { %v1194_v49 = vadd.f32 %v1193_v45, %v2243_v2  ;;  %v1801_v46 = vadd.f32 %v1800_v27, %v1674_v34  ;;  %v403_v2 = vadd.f32 %v402_v1, %v276_v9  ;;  %v1677_v45 = vmul.f32 %v1549_v28, %v1549_v28  ;;  %v153_v9 = vld [vmem:[#allocation3 + $0x150] sm:$0xff]  ;;  %v1298_v27 = vld [vmem:[#allocation9 + $0xd8] sm:$0xff] }
  0x86   :  { %v757_v34 = vadd.f32 %v756_v57, %v630_v63  ;;  %v1678_v52 = vmul.f32 %v1550_v37, %v1550_v37  ;;  %v280_v60 = vmul.f32 %v152_v56, %v152_v56  ;;  %v633_v28 = vmul.f32 %v505_v41, %v505_v41  ;;  %v507_v63 = vld [vmem:[#allocation6 + $0x50] sm:$0xff]  ;;  %v1428_v56 = vld [vmem:[#allocation11 + $0xe8] sm:$0xff] }
  0x87   :  { %v1195_v44 = vadd.f32 %v1194_v49, %v2246_v10  ;;  %v1802_v3 = vadd.f32 %v1801_v46, %v1675_v35  ;;  %v404_v10 = vadd.f32 %v403_v2, %v277_v47  ;;  %v154_v47 = vld [vmem:[#allocation3 + $0x158] sm:$0xff]  ;;  %v1553_v15 = vsub.f32 %v1297_v58, %v1425_v62  ;;  %v1427_v46 = vld [vmem:[#allocation11 + $0xe0] sm:$0xff]  ;;  %v156_v41 = vld [vmem:[#allocation3 + $0x168] sm:$0xff] }
  0x88   :  { %v758_v35 = vadd.f32 %v757_v34, %v631_v29  ;;  %v1679_v30 = vmul.f32 %v1551_v8, %v1551_v8  ;;  %v634_v37 = vmul.f32 %v506_v42, %v506_v42  ;;  %v1554_v2 = vsub.f32 %v1298_v27, %v1426_v50  ;;  %v508_v29 = vld [vmem:[#allocation6 + $0x58] sm:$0xff]  ;;  %v509_v62 = vld [vmem:[#allocation6 + $0x60] sm:$0xff]  ;;  %v1301_v34 = vld [vmem:[#allocation9 + $0xf0] sm:$0xff] }
  0x89   :  { %v1196_v33 = vadd.f32 %v1195_v44, %v2248_v11  ;;  %v1803_v49 = vadd.f32 %v1802_v3, %v1676_v24  ;;  %v405_v11 = vadd.f32 %v404_v10, %v278_v48  ;;  %v281_v44 = vmul.f32 %v153_v9, %v153_v9  ;;  %v155_v48 = vld [vmem:[#allocation3 + $0x160] sm:$0xff]  ;;  %v510_v27 = vld [vmem:[#allocation6 + $0x68] sm:$0xff] }
  0x8a   :  { %v759_v24 = vadd.f32 %v758_v35, %v632_v23  ;;  %v1680_v32 = vmul.f32 %v1552_v43, %v1552_v43  ;;  %v282_v57 = vmul.f32 %v154_v47, %v154_v47  ;;  %v635_v8 = vmul.f32 %v507_v63, %v507_v63  ;;  %v1430_v35 = vld [vmem:[#allocation11 + $0xf8] sm:$0xff] }
  0x8b   :  { %v1197_v13 = vadd.f32 %v1196_v33, %v2250_v17  ;;  %v1804_v53 = vadd.f32 %v1803_v49, %v1677_v45  ;;  %v406_v17 = vadd.f32 %v405_v11, %v279_v31  ;;  %v1300_v33 = vld [vmem:[#allocation9 + $0xe8] sm:$0xff]  ;;  %v1555_v31 = vsub.f32 %v1299_v55, %v1427_v46  ;;  %v157_v49 = vld [vmem:[#allocation3 + $0x170] sm:$0xff]  ;;  %v1303_v46 = vld [vmem:[#allocation9 + $0x100] sm:$0xff] }
  0x8c   :  { %v760_v45 = vadd.f32 %v759_v24, %v633_v28  ;;  %v1681_v10 = vmul.f32 %v1553_v15, %v1553_v15  ;;  %v283_v23 = vmul.f32 %v155_v48, %v155_v48  ;;  %v636_v9 = vmul.f32 %v508_v29, %v508_v29  ;;  %v1302_v28 = vld [vmem:[#allocation9 + $0xf8] sm:$0xff] }
  0x8d   :  { %v1198_v1 = vadd.f32 %v1197_v13, %v2252_v18  ;;  %v1805_v0 = vadd.f32 %v1804_v53, %v1678_v52  ;;  %v407_v18 = vadd.f32 %v406_v17, %v280_v60  ;;  %v1429_v13 = vld [vmem:[#allocation11 + $0xf0] sm:$0xff]  ;;  %v1556_v42 = vsub.f32 %v1300_v33, %v1428_v56  ;;  %v1304_v33 = vld [vmem:[#allocation9 + $0x108] sm:$0xff] }
  0x8e   :  { %v761_v43 = vadd.f32 %v760_v45, %v634_v37  ;;  %v1682_v60 = vmul.f32 %v1554_v2, %v1554_v2  ;;  %v284_v50 = vmul.f32 %v156_v41, %v156_v41  ;;  %v1557_v53 = vsub.f32 %v1301_v34, %v1429_v13  ;;  %v511_v17 = vld [vmem:[#allocation6 + $0x70] sm:$0xff]  ;;  %v1431_v37 = vld [vmem:[#allocation11 + $0x100] sm:$0xff]  ;;  %v1432_v56 = vld [vmem:[#allocation11 + $0x108] sm:$0xff] }
  0x8f   :  { %v1199_v7 = vadd.f32 %v1198_v1, %v2254_v22  ;;  %v1806_v58 = vadd.f32 %v1805_v0, %v1679_v30  ;;  %v408_v22 = vadd.f32 %v407_v18, %v281_v44  ;;  %v637_v1 = vmul.f32 %v509_v62, %v509_v62  ;;  %v158_v30 = vld [vmem:[#allocation3 + $0x178] sm:$0xff]  ;;  %v159_v2 = vld [vmem:[#allocation3 + $0x180] sm:$0xff]  ;;  %v1305_v34 = vld [vmem:[#allocation9 + $0x110] sm:$0xff] }
  0x90   :  { %v762_v47 = vadd.f32 %v761_v43, %v635_v8  ;;  %v1683_v63 = vmul.f32 %v1555_v31, %v1555_v31  ;;  %v285_v55 = vmul.f32 %v157_v49, %v157_v49  ;;  %v638_v24 = vmul.f32 %v510_v27, %v510_v27  ;;  %v160_v31 = vld [vmem:[#allocation3 + $0x188] sm:$0xff]  ;;  %v1433_v13 = vld [vmem:[#allocation11 + $0x110] sm:$0xff] }
  0x91   :  { %v1200_v3 = vadd.f32 %v1199_v7, %v2257_v25  ;;  %v1807_v11 = vadd.f32 %v1806_v58, %v1680_v32  ;;  %v409_v25 = vadd.f32 %v408_v22, %v282_v57  ;;  %v1558_v32 = vsub.f32 %v1302_v28, %v1430_v35  ;;  %v512_v57 = vld [vmem:[#allocation6 + $0x78] sm:$0xff] }
  0x92   :  { %v763_v7 = vadd.f32 %v762_v47, %v636_v9  ;;  %v1684_v0 = vmul.f32 %v1556_v42, %v1556_v42  ;;  %v286_v18 = vmul.f32 %v158_v30, %v158_v30  ;;  %v639_v8 = vmul.f32 %v511_v17, %v511_v17  ;;  %v161_v42 = vld [vmem:[#allocation3 + $0x190] sm:$0xff]  ;;  %v1306_v35 = vld [vmem:[#allocation9 + $0x118] sm:$0xff] }
  0x93   :  { %v1201_v52 = vadd.f32 %v1200_v3, %v2259_v26  ;;  %v1808_v44 = vadd.f32 %v1807_v11, %v1681_v10  ;;  %v410_v26 = vadd.f32 %v409_v25, %v283_v23  ;;  %v2498_v3 = vld [vmem:[#allocation17_spill] sm:$0xff]  ;;  %v1559_v10 = vsub.f32 %v1303_v46, %v1431_v37  ;;  %v2500_v30 = vld [vmem:[#allocation19_spill] sm:$0xff] }
  0x94   :  { %v764_v45 = vadd.f32 %v763_v7, %v637_v1  ;;  %v1685_v58 = vmul.f32 %v1557_v53, %v1557_v53  ;;  %v513_v23 = vld [vmem:[#allocation6 + $0x80] sm:$0xff]  ;;  %v287_v22 = vmul.f32 %v159_v2, %v159_v2  ;;  %v640_v9 = vmul.f32 %v512_v57, %v512_v57  ;;  %v1434_v1 = vld [vmem:[#allocation11 + $0x118] sm:$0xff] }
  0x95   :  { %v1202_v15 = vadd.f32 %v1201_v52, %v2261_v39  ;;  %v1809_v29 = vadd.f32 %v1808_v44, %v1682_v60  ;;  %v411_v39 = vadd.f32 %v410_v26, %v284_v50  ;;  %v2499_v52 = vld [vmem:[#allocation18_spill] sm:$0xff]  ;;  %v1560_v60 = vsub.f32 %v1304_v33, %v1432_v56  ;;  %v515_v26 = vld [vmem:[#allocation6 + $0x90] sm:$0xff]  ;;  %v1435_v7 = vld [vmem:[#allocation11 + $0x120] sm:$0xff] }
  0x96   :  { %v765_v43 = vadd.f32 %v764_v45, %v638_v24  ;;  %v1686_v11 = vmul.f32 %v1558_v32, %v1558_v32  ;;  %v514_v50 = vld [vmem:[#allocation6 + $0x88] sm:$0xff]  ;;  %v288_v25 = vmul.f32 %v160_v31, %v160_v31  ;;  %v641_v47 = vmul.f32 %v513_v23, %v513_v23  ;;  %v1307_v24 = vld [vmem:[#allocation9 + $0x120] sm:$0xff] }
  0x97   :  { %v1203_v48 = vadd.f32 %v1202_v15, %v2263_v40  ;;  %v1810_v62 = vadd.f32 %v1809_v29, %v1683_v63  ;;  %v412_v40 = vadd.f32 %v411_v39, %v285_v55  ;;  %v162_v63 = vld [vmem:[#allocation3 + $0x198] sm:$0xff]  ;;  %v1561_v44 = vsub.f32 %v1305_v34, %v1433_v13  ;;  %v1436_v45 = vld [vmem:[#allocation11 + $0x128] sm:$0xff]  ;;  %v1309_v34 = vld [vmem:[#allocation9 + $0x130] sm:$0xff] }
  0x98   :  { %v766_v15 = vadd.f32 %v765_v43, %v639_v8  ;;  %v1687_v17 = vmul.f32 %v1559_v10, %v1559_v10  ;;  %v289_v46 = vmul.f32 %v161_v42, %v161_v42  ;;  %v1562_v29 = vsub.f32 %v1306_v35, %v1434_v1  ;;  %v516_v39 = vld [vmem:[#allocation6 + $0x98] sm:$0xff]  ;;  %v1308_v8 = vld [vmem:[#allocation9 + $0x128] sm:$0xff]  ;;  %v1437_v13 = vld [vmem:[#allocation11 + $0x130] sm:$0xff] }
  0x99   :  { %v1204_v41 = vadd.f32 %v1203_v48, %v2498_v3  ;;  %v1811_v27 = vadd.f32 %v1810_v62, %v1684_v0  ;;  %v413_v28 = vadd.f32 %v412_v40, %v286_v18  ;;  %v642_v48 = vmul.f32 %v514_v50, %v514_v50  ;;  %v163_v0 = vld [vmem:[#allocation3 + $0x1a0] sm:$0xff]  ;;  %v164_v10 = vld [vmem:[#allocation3 + $0x1a8] sm:$0xff]  ;;  %v165_v42 = vld [vmem:[#allocation3 + $0x1b0] sm:$0xff] }
  0x9a   :  { %v767_v2 = vadd.f32 %v766_v15, %v640_v9  ;;  %v1688_v57 = vmul.f32 %v1560_v60, %v1560_v60  ;;  %v290_v33 = vmul.f32 %v162_v63, %v162_v63  ;;  %v643_v3 = vmul.f32 %v515_v26, %v515_v26  ;;  %v518_v50 = vld [vmem:[#allocation6 + $0xa8] sm:$0xff]  ;;  %v1438_v35 = vld [vmem:[#allocation11 + $0x138] sm:$0xff]  ;;  %v2502_v15 = vld [vmem:[#allocation21_spill] sm:$0xff] }
  0x9b   :  { %v1205_v49 = vadd.f32 %v1204_v41, %v2499_v52  ;;  %v1812_v55 = vadd.f32 %v1811_v27, %v1685_v58  ;;  %v414_v37 = vadd.f32 %v413_v28, %v287_v22  ;;  %v1563_v58 = vsub.f32 %v1307_v24, %v1435_v7  ;;  %v517_v22 = vld [vmem:[#allocation6 + $0xa0] sm:$0xff]  ;;  %v2501_v52 = vld [vmem:[#allocation20_spill] sm:$0xff] }
  0x9c   :  { %v768_v41 = vadd.f32 %v767_v2, %v641_v47  ;;  %v1689_v62 = vmul.f32 %v1561_v44, %v1561_v44  ;;  %v291_v40 = vmul.f32 %v163_v0, %v163_v0  ;;  %v644_v9 = vmul.f32 %v516_v39, %v516_v39  ;;  %v1310_v28 = vld [vmem:[#allocation9 + $0x138] sm:$0xff]  ;;  %v1439_v24 = vld [vmem:[#allocation11 + $0x140] sm:$0xff]  ;;  %v2503_v2 = vld [vmem:[#allocation22_spill] sm:$0xff] }
  0x9d   :  { %v1206_v53 = vadd.f32 %v1205_v49, %v2500_v30  ;;  %v1813_v18 = vadd.f32 %v1812_v55, %v1686_v11  ;;  %v415_v56 = vadd.f32 %v414_v37, %v288_v25  ;;  %v1564_v60 = vsub.f32 %v1308_v8, %v1436_v45  ;;  %v519_v55 = vld [vmem:[#allocation6 + $0xb0] sm:$0xff]  ;;  %v1311_v37 = vld [vmem:[#allocation9 + $0x140] sm:$0xff]  ;;  %v520_v39 = vld [vmem:[#allocation6 + $0xb8] sm:$0xff] }
  0x9e   :  { %v769_v43 = vadd.f32 %v768_v41, %v642_v48  ;;  %v1690_v11 = vmul.f32 %v1562_v29, %v1562_v29  ;;  %v292_v25 = vmul.f32 %v164_v10, %v164_v10  ;;  %v645_v1 = vmul.f32 %v517_v22, %v517_v22  ;;  %v167_v0 = vld [vmem:[#allocation3 + $0x1c0] sm:$0xff]  ;;  %v1312_v8 = vld [vmem:[#allocation9 + $0x148] sm:$0xff] }
  0x9f   :  { %v1207_v32 = vadd.f32 %v1206_v53, %v2272_v54  ;;  %v1814_v23 = vadd.f32 %v1813_v18, %v1687_v17  ;;  %v416_v54 = vadd.f32 %v415_v56, %v289_v46  ;;  %v166_v53 = vld [vmem:[#allocation3 + $0x1b8] sm:$0xff]  ;;  %v1565_v63 = vsub.f32 %v1309_v34, %v1437_v13  ;;  %v1440_v45 = vld [vmem:[#allocation11 + $0x148] sm:$0xff]  ;;  %v1313_v13 = vld [vmem:[#allocation9 + $0x150] sm:$0xff] }
  0xa0   :  { %v770_v47 = vadd.f32 %v769_v43, %v643_v3  ;;  %v1691_v44 = vmul.f32 %v1563_v58, %v1563_v58  ;;  %v293_v26 = vmul.f32 %v165_v42, %v165_v42  ;;  %v646_v7 = vmul.f32 %v518_v50, %v518_v50  ;;  %v168_v58 = vld [vmem:[#allocation3 + $0x1c8] sm:$0xff] }
  0xa1   :  { %v1208_v31 = vadd.f32 %v1207_v32, %v2275_v5  ;;  %v1815_v27 = vadd.f32 %v1814_v23, %v1688_v57  ;;  %v417_v5 = vadd.f32 %v416_v54, %v290_v33  ;;  %v1566_v29 = vsub.f32 %v1310_v28, %v1438_v35  ;;  %v1314_v35 = vld [vmem:[#allocation9 + $0x158] sm:$0xff] }
  0xa2   :  { %v771_v48 = vadd.f32 %v770_v47, %v644_v9  ;;  %v1692_v57 = vmul.f32 %v1564_v60, %v1564_v60  ;;  %v294_v33 = vmul.f32 %v166_v53, %v166_v53  ;;  %v647_v3 = vmul.f32 %v519_v55, %v519_v55  ;;  %v1441_v9 = vld [vmem:[#allocation11 + $0x150] sm:$0xff] }
  0xa3   :  { %v1209_v49 = vadd.f32 %v1208_v31, %v2501_v52  ;;  %v1816_v17 = vadd.f32 %v1815_v27, %v1689_v62  ;;  %v418_v46 = vadd.f32 %v417_v5, %v291_v40  ;;  %v2504_v31 = vld [vmem:[#allocation23_spill] sm:$0xff]  ;;  %v1567_v62 = vsub.f32 %v1311_v37, %v1439_v24  ;;  %v521_v40 = vld [vmem:[#allocation6 + $0xc0] sm:$0xff] }
  0xa4   :  { %v772_v41 = vadd.f32 %v771_v48, %v645_v1  ;;  %v1693_v23 = vmul.f32 %v1565_v63, %v1565_v63  ;;  %v295_v54 = vmul.f32 %v167_v0, %v167_v0  ;;  %v648_v43 = vmul.f32 %v520_v39, %v520_v39  ;;  %v169_v60 = vld [vmem:[#allocation3 + $0x1d0] sm:$0xff]  ;;  %v1442_v1 = vld [vmem:[#allocation11 + $0x158] sm:$0xff]  ;;  %v1315_v24 = vld [vmem:[#allocation9 + $0x160] sm:$0xff] }
  0xa5   :  { %v1210_v30 = vadd.f32 %v1209_v49, %v2502_v15  ;;  %v1817_v18 = vadd.f32 %v1816_v17, %v1690_v11  ;;  %v419_v56 = vadd.f32 %v418_v46, %v292_v25  ;;  %v2505_v49 = vld [vmem:[#allocation24_spill] sm:$0xff]  ;;  %v1568_v11 = vsub.f32 %v1312_v8, %v1440_v45  ;;  %v522_v25 = vld [vmem:[#allocation6 + $0xc8] sm:$0xff] }
  0xa6   :  { %v773_v52 = vadd.f32 %v772_v41, %v646_v7  ;;  %v1694_v27 = vmul.f32 %v1566_v29, %v1566_v29  ;;  %v296_v5 = vmul.f32 %v168_v58, %v168_v58  ;;  %v649_v47 = vmul.f32 %v521_v40, %v521_v40  ;;  %v170_v63 = vld [vmem:[#allocation3 + $0x1d8] sm:$0xff]  ;;  %v1443_v7 = vld [vmem:[#allocation11 + $0x160] sm:$0xff]  ;;  %v1316_v45 = vld [vmem:[#allocation9 + $0x168] sm:$0xff] }
  0xa7   :  { %v1211_v32 = vadd.f32 %v1210_v30, %v2503_v2  ;;  %v1818_v22 = vadd.f32 %v1817_v18, %v1691_v44  ;;  %v420_v34 = vadd.f32 %v419_v56, %v293_v26  ;;  %v2506_v30 = vld [vmem:[#allocation25_spill] sm:$0xff]  ;;  %v1569_v44 = vsub.f32 %v1313_v13, %v1441_v9  ;;  %v523_v26 = vld [vmem:[#allocation6 + $0xd0] sm:$0xff] }
  0xa8   :  { %v774_v15 = vadd.f32 %v773_v52, %v647_v3  ;;  %v1695_v17 = vmul.f32 %v1567_v62, %v1567_v62  ;;  %v297_v46 = vmul.f32 %v169_v60, %v169_v60  ;;  %v650_v48 = vmul.f32 %v522_v25, %v522_v25  ;;  %v171_v29 = vld [vmem:[#allocation3 + $0x1e0] sm:$0xff]  ;;  %v1444_v3 = vld [vmem:[#allocation11 + $0x168] sm:$0xff]  ;;  %v1317_v9 = vld [vmem:[#allocation9 + $0x170] sm:$0xff] }
  0xa9   :  { %v1212_v10 = vadd.f32 %v1211_v32, %v2504_v31  ;;  %v1819_v50 = vadd.f32 %v1818_v22, %v1692_v57  ;;  %v421_v28 = vadd.f32 %v420_v34, %v294_v33  ;;  %v2507_v32 = vld [vmem:[#allocation26_spill] sm:$0xff]  ;;  %v1570_v57 = vsub.f32 %v1314_v35, %v1442_v1  ;;  %v524_v33 = vld [vmem:[#allocation6 + $0xd8] sm:$0xff] }
  0xaa   :  { %v775_v2 = vadd.f32 %v774_v15, %v648_v43  ;;  %v1696_v18 = vmul.f32 %v1568_v11, %v1568_v11  ;;  %v298_v56 = vmul.f32 %v170_v63, %v170_v63  ;;  %v651_v41 = vmul.f32 %v523_v26, %v523_v26  ;;  %v172_v62 = vld [vmem:[#allocation3 + $0x1e8] sm:$0xff]  ;;  %v1445_v43 = vld [vmem:[#allocation11 + $0x170] sm:$0xff]  ;;  %v1318_v1 = vld [vmem:[#allocation9 + $0x178] sm:$0xff] }
  0xab   :  { %v1213_v42 = vadd.f32 %v1212_v10, %v2505_v49  ;;  %v1820_v55 = vadd.f32 %v1819_v50, %v1693_v23  ;;  %v422_v37 = vadd.f32 %v421_v28, %v295_v54  ;;  %v2508_v10 = vld [vmem:[#allocation27_spill] sm:$0xff]  ;;  %v1571_v23 = vsub.f32 %v1315_v24, %v1443_v7  ;;  %v525_v54 = vld [vmem:[#allocation6 + $0xe0] sm:$0xff] }
  0xac   :  { %v776_v31 = vadd.f32 %v775_v2, %v649_v47  ;;  %v1697_v22 = vmul.f32 %v1569_v44, %v1569_v44  ;;  %v299_v34 = vmul.f32 %v171_v29, %v171_v29  ;;  %v652_v52 = vmul.f32 %v524_v33, %v524_v33  ;;  %v173_v11 = vld [vmem:[#allocation3 + $0x1f0] sm:$0xff]  ;;  %v1446_v47 = vld [vmem:[#allocation11 + $0x178] sm:$0xff]  ;;  %v1319_v7 = vld [vmem:[#allocation9 + $0x180] sm:$0xff] }
  0xad   :  { %v1214_v53 = vadd.f32 %v1213_v42, %v2506_v30  ;;  %v1821_v39 = vadd.f32 %v1820_v55, %v1694_v27  ;;  %v423_v8 = vadd.f32 %v422_v37, %v296_v5  ;;  %v2509_v42 = vld [vmem:[#allocation28_spill] sm:$0xff]  ;;  %v1572_v27 = vsub.f32 %v1316_v45, %v1444_v3  ;;  %v526_v5 = vld [vmem:[#allocation6 + $0xe8] sm:$0xff]  ;;  %v175_v29 = vld [vmem:[#allocation3 + $0x200] sm:$0xff] }
  0xae   :  { %v777_v49 = vadd.f32 %v776_v31, %v650_v48  ;;  %v1698_v50 = vmul.f32 %v1570_v57, %v1570_v57  ;;  %v300_v28 = vmul.f32 %v172_v62, %v172_v62  ;;  %v653_v15 = vmul.f32 %v525_v54, %v525_v54  ;;  %v174_v44 = vld [vmem:[#allocation3 + $0x1f8] sm:$0xff]  ;;  %v1447_v48 = vld [vmem:[#allocation11 + $0x180] sm:$0xff]  ;;  %v1320_v45 = vld [vmem:[#allocation9 + $0x188] sm:$0xff] }
  0xaf   :  { %v1215_v0 = vadd.f32 %v1214_v53, %v2507_v32  ;;  %v1822_v40 = vadd.f32 %v1821_v39, %v1695_v17  ;;  %v424_v13 = vadd.f32 %v423_v8, %v297_v46  ;;  %v2510_v53 = vld [vmem:[#allocation29_spill] sm:$0xff]  ;;  %v1573_v17 = vsub.f32 %v1317_v9, %v1445_v43  ;;  %v527_v46 = vld [vmem:[#allocation6 + $0xf0] sm:$0xff]  ;;  %v528_v33 = vld [vmem:[#allocation6 + $0xf8] sm:$0xff] }
  0xb0   :  { %v778_v30 = vadd.f32 %v777_v49, %v651_v41  ;;  %v1699_v55 = vmul.f32 %v1571_v23, %v1571_v23  ;;  %v301_v37 = vmul.f32 %v173_v11, %v173_v11  ;;  %v654_v2 = vmul.f32 %v526_v5, %v526_v5  ;;  %v1448_v3 = vld [vmem:[#allocation11 + $0x188] sm:$0xff]  ;;  %v529_v54 = vld [vmem:[#allocation6 + $0x100] sm:$0xff]  ;;  %v1449_v9 = vld [vmem:[#allocation11 + $0x190] sm:$0xff] }
  0xb1   :  { %v1216_v58 = vadd.f32 %v1215_v0, %v2508_v10  ;;  %v1823_v25 = vadd.f32 %v1822_v40, %v1696_v18  ;;  %v425_v35 = vadd.f32 %v424_v13, %v298_v56  ;;  %v1574_v57 = vsub.f32 %v1318_v1, %v1446_v47  ;;  %v2511_v10 = vld [vmem:[#allocation30_spill] sm:$0xff]  ;;  %v1321_v13 = vld [vmem:[#allocation9 + $0x190] sm:$0xff] }
  0xb2   :  { %v779_v32 = vadd.f32 %v778_v30, %v652_v52  ;;  %v1700_v18 = vmul.f32 %v1572_v27, %v1572_v27  ;;  %v302_v56 = vmul.f32 %v174_v44, %v174_v44  ;;  %v655_v41 = vmul.f32 %v527_v46, %v527_v46  ;;  %v176_v62 = vld [vmem:[#allocation3 + $0x208] sm:$0xff]  ;;  %v1323_v46 = vld [vmem:[#allocation9 + $0x1a0] sm:$0xff] }
  0xb3   :  { %v1217_v60 = vadd.f32 %v1216_v58, %v2509_v42  ;;  %v1824_v26 = vadd.f32 %v1823_v25, %v1697_v22  ;;  %v426_v24 = vadd.f32 %v425_v35, %v299_v34  ;;  %v1575_v23 = vsub.f32 %v1319_v7, %v1447_v48  ;;  %v177_v42 = vld [vmem:[#allocation3 + $0x210] sm:$0xff]  ;;  %v1450_v35 = vld [vmem:[#allocation11 + $0x198] sm:$0xff] }
  0xb4   :  { %v780_v31 = vadd.f32 %v779_v32, %v653_v15  ;;  %v1701_v22 = vmul.f32 %v1573_v17, %v1573_v17  ;;  %v303_v34 = vmul.f32 %v175_v29, %v175_v29  ;;  %v656_v43 = vmul.f32 %v528_v33, %v528_v33  ;;  %v2512_v15 = vld [vmem:[#allocation31_spill] sm:$0xff]  ;;  %v1324_v33 = vld [vmem:[#allocation9 + $0x1a8] sm:$0xff] }
  0xb5   :  { %v1218_v63 = vadd.f32 %v1217_v60, %v2510_v53  ;;  %v1825_v39 = vadd.f32 %v1824_v26, %v1698_v50  ;;  %v427_v8 = vadd.f32 %v426_v24, %v300_v28  ;;  %v1576_v60 = vsub.f32 %v1320_v45, %v1448_v3  ;;  %v530_v50 = vld [vmem:[#allocation6 + $0x108] sm:$0xff]  ;;  %v1322_v28 = vld [vmem:[#allocation9 + $0x198] sm:$0xff] }
  0xb6   :  { %v781_v52 = vadd.f32 %v780_v31, %v654_v2  ;;  %v1702_v11 = vmul.f32 %v1574_v57, %v1574_v57  ;;  %v304_v25 = vmul.f32 %v176_v62, %v176_v62  ;;  %v657_v1 = vmul.f32 %v529_v54, %v529_v54  ;;  %v178_v53 = vld [vmem:[#allocation3 + $0x218] sm:$0xff]  ;;  %v179_v2 = vld [vmem:[#allocation3 + $0x220] sm:$0xff]  ;;  %v180_v31 = vld [vmem:[#allocation3 + $0x228] sm:$0xff] }
  0xb7   :  { %v1219_v0 = vadd.f32 %v1218_v63, %v2301_v14  ;;  %v1826_v40 = vadd.f32 %v1825_v39, %v1699_v55  ;;  %v428_v14 = vadd.f32 %v427_v8, %v301_v37  ;;  %v1577_v63 = vsub.f32 %v1321_v13, %v1449_v9  ;;  %v531_v55 = vld [vmem:[#allocation6 + $0x110] sm:$0xff]  ;;  %v1451_v37 = vld [vmem:[#allocation11 + $0x1a0] sm:$0xff]  ;;  %v532_v57 = vld [vmem:[#allocation6 + $0x118] sm:$0xff] }
  0xb8   :  { %v782_v47 = vadd.f32 %v781_v52, %v655_v41  ;;  %v1703_v44 = vmul.f32 %v1575_v23, %v1575_v23  ;;  %v305_v26 = vmul.f32 %v177_v42, %v177_v42  ;;  %v658_v24 = vmul.f32 %v530_v50, %v530_v50  ;;  %v2513_v3 = vld [vmem:[#allocation32_spill] sm:$0xff]  ;;  %v533_v23 = vld [vmem:[#allocation6 + $0x120] sm:$0xff]  ;;  %v1453_v54 = vld [vmem:[#allocation11 + $0x1b0] sm:$0xff] }
  0xb9   :  { %v1220_v58 = vadd.f32 %v1219_v0, %v2511_v10  ;;  %v1827_v27 = vadd.f32 %v1826_v40, %v1700_v18  ;;  %v429_v5 = vadd.f32 %v428_v14, %v302_v56  ;;  %v1578_v32 = vsub.f32 %v1322_v28, %v1450_v35  ;;  %v1452_v56 = vld [vmem:[#allocation11 + $0x1a8] sm:$0xff]  ;;  %v1325_v40 = vld [vmem:[#allocation9 + $0x1b0] sm:$0xff]  ;;  %v1454_v50 = vld [vmem:[#allocation11 + $0x1b8] sm:$0xff] }
  0xba   :  { %v783_v7 = vadd.f32 %v782_v47, %v656_v43  ;;  %v1704_v0 = vmul.f32 %v1576_v60, %v1576_v60  ;;  %v306_v18 = vmul.f32 %v178_v53, %v178_v53  ;;  %v659_v8 = vmul.f32 %v531_v55, %v531_v55  ;;  %v181_v9 = vld [vmem:[#allocation3 + $0x230] sm:$0xff]  ;;  %v534_v42 = vld [vmem:[#allocation6 + $0x128] sm:$0xff]  ;;  %v2514_v28 = vld [vmem:[#allocation33_spill] sm:$0xff] }
  0xbb   :  { %v1221_v49 = vadd.f32 %v1220_v58, %v2306_v16  ;;  %v1828_v17 = vadd.f32 %v1827_v27, %v1701_v22  ;;  %v430_v16 = vadd.f32 %v429_v5, %v303_v34  ;;  %v1579_v10 = vsub.f32 %v1323_v46, %v1451_v37  ;;  %v1326_v27 = vld [vmem:[#allocation9 + $0x1b8] sm:$0xff]  ;;  %v535_v53 = vld [vmem:[#allocation6 + $0x130] sm:$0xff]  ;;  %v183_v46 = vld [vmem:[#allocation3 + $0x240] sm:$0xff] }
  0xbc   :  { %v784_v45 = vadd.f32 %v783_v7, %v657_v1  ;;  %v1705_v58 = vmul.f32 %v1577_v63, %v1577_v63  ;;  %v307_v22 = vmul.f32 %v179_v2, %v179_v2  ;;  %v660_v34 = vmul.f32 %v532_v57, %v532_v57  ;;  %v182_v1 = vld [vmem:[#allocation3 + $0x238] sm:$0xff] }
  0xbd   :  { %v1222_v30 = vadd.f32 %v1221_v49, %v2512_v15  ;;  %v1829_v29 = vadd.f32 %v1828_v17, %v1702_v11  ;;  %v431_v39 = vadd.f32 %v430_v16, %v304_v25  ;;  %v1580_v43 = vsub.f32 %v1324_v33, %v1452_v56  ;;  %v1455_v17 = vld [vmem:[#allocation11 + $0x1c0] sm:$0xff]  ;;  %v184_v56 = vld [vmem:[#allocation3 + $0x248] sm:$0xff] }
  0xbe   :  { %v785_v14 = vadd.f32 %v784_v45, %v658_v24  ;;  %v1706_v52 = vmul.f32 %v1578_v32, %v1578_v32  ;;  %v308_v60 = vmul.f32 %v180_v31, %v180_v31  ;;  %v661_v25 = vmul.f32 %v533_v23, %v533_v23 }
  0xbf   :  { %v1223_v48 = vadd.f32 %v1222_v30, %v2311_v36  ;;  %v1830_v62 = vadd.f32 %v1829_v29, %v1703_v44  ;;  %v432_v36 = vadd.f32 %v431_v39, %v305_v26  ;;  %v1581_v47 = vsub.f32 %v1325_v40, %v1453_v54  ;;  %v1327_v44 = vld [vmem:[#allocation9 + $0x1c0] sm:$0xff]  ;;  %v1456_v29 = vld [vmem:[#allocation11 + $0x1c8] sm:$0xff] }
  0xc0   :  { %v786_v5 = vadd.f32 %v785_v14, %v659_v8  ;;  %v1707_v15 = vmul.f32 %v1579_v10, %v1579_v10  ;;  %v309_v63 = vmul.f32 %v181_v9, %v181_v9  ;;  %v662_v55 = vmul.f32 %v534_v42, %v534_v42  ;;  %v2515_v39 = vld [vmem:[#allocation34_spill] sm:$0xff]  ;;  %v1329_v10 = vld [vmem:[#allocation9 + $0x1d0] sm:$0xff] }
  0xc1   :  { %v1224_v41 = vadd.f32 %v1223_v48, %v2513_v3  ;;  %v1831_v49 = vadd.f32 %v1830_v62, %v1704_v0  ;;  %v433_v11 = vadd.f32 %v432_v36, %v306_v18  ;;  %v1582_v37 = vsub.f32 %v1326_v27, %v1454_v50  ;;  %v536_v48 = vld [vmem:[#allocation6 + $0x138] sm:$0xff]  ;;  %v1328_v0 = vld [vmem:[#allocation9 + $0x1c8] sm:$0xff]  ;;  %v185_v36 = vld [vmem:[#allocation3 + $0x250] sm:$0xff] }
  0xc2   :  { %v787_v26 = vadd.f32 %v786_v5, %v660_v34  ;;  %v1708_v24 = vmul.f32 %v1580_v43, %v1580_v43  ;;  %v310_v2 = vmul.f32 %v182_v1, %v182_v1  ;;  %v663_v57 = vmul.f32 %v535_v53, %v535_v53  ;;  %v538_v14 = vld [vmem:[#allocation6 + $0x148] sm:$0xff]  ;;  %v1330_v43 = vld [vmem:[#allocation9 + $0x1d8] sm:$0xff]  ;;  %v1331_v1 = vld [vmem:[#allocation9 + $0x1e0] sm:$0xff] }
  0xc3   :  { %v1225_v13 = vadd.f32 %v1224_v41, %v2316_v38  ;;  %v1832_v30 = vadd.f32 %v1831_v49, %v1705_v58  ;;  %v434_v38 = vadd.f32 %v433_v11, %v307_v22  ;;  %v1583_v8 = vsub.f32 %v1327_v44, %v1455_v17  ;;  %v537_v41 = vld [vmem:[#allocation6 + $0x140] sm:$0xff]  ;;  %v1457_v58 = vld [vmem:[#allocation11 + $0x1d0] sm:$0xff]  ;;  %v186_v27 = vld [vmem:[#allocation3 + $0x258] sm:$0xff] }
  0xc4   :  { %v788_v18 = vadd.f32 %v787_v26, %v661_v25  ;;  %v1709_v45 = vmul.f32 %v1581_v47, %v1581_v47  ;;  %v311_v31 = vmul.f32 %v183_v46, %v183_v46  ;;  %v664_v62 = vmul.f32 %v536_v48, %v536_v48  ;;  %v1459_v47 = vld [vmem:[#allocation11 + $0x1e0] sm:$0xff]  ;;  %v1332_v46 = vld [vmem:[#allocation9 + $0x1e8] sm:$0xff]  ;;  %v2517_v48 = vld [vmem:[#allocation36_spill] sm:$0xff] }
  0xc5   :  { %v1226_v35 = vadd.f32 %v1225_v13, %v2514_v28  ;;  %v1833_v7 = vadd.f32 %v1832_v30, %v1706_v52  ;;  %v435_v32 = vadd.f32 %v434_v38, %v308_v60  ;;  %v1584_v40 = vsub.f32 %v1328_v0, %v1456_v29  ;;  %v1458_v52 = vld [vmem:[#allocation11 + $0x1d8] sm:$0xff]  ;;  %v2516_v60 = vld [vmem:[#allocation35_spill] sm:$0xff] }
  0xc6   :  { %v789_v23 = vadd.f32 %v788_v18, %v662_v55  ;;  %v1710_v54 = vmul.f32 %v1582_v37, %v1582_v37  ;;  %v312_v13 = vmul.f32 %v184_v56, %v184_v56  ;;  %v665_v49 = vmul.f32 %v537_v41, %v537_v41  ;;  %v539_v28 = vld [vmem:[#allocation6 + $0x150] sm:$0xff]  ;;  %v540_v55 = vld [vmem:[#allocation6 + $0x158] sm:$0xff]  ;;  %v1460_v37 = vld [vmem:[#allocation11 + $0x1e8] sm:$0xff] }
  0xc7   :  { %v1227_v16 = vadd.f32 %v1226_v35, %v2321_v61  ;;  %v1834_v3 = vadd.f32 %v1833_v7, %v1707_v15  ;;  %v436_v61 = vadd.f32 %v435_v32, %v309_v63  ;;  %v1585_v50 = vsub.f32 %v1329_v10, %v1457_v58  ;;  %v187_v63 = vld [vmem:[#allocation3 + $0x260] sm:$0xff]  ;;  %v188_v32 = vld [vmem:[#allocation3 + $0x268] sm:$0xff]  ;;  %v1461_v56 = vld [vmem:[#allocation11 + $0x1f0] sm:$0xff] }
  0xc8   :  { %v790_v42 = vadd.f32 %v789_v23, %v663_v57  ;;  %v1711_v25 = vmul.f32 %v1583_v8, %v1583_v8  ;;  %v313_v35 = vmul.f32 %v185_v36, %v185_v36  ;;  %v666_v15 = vmul.f32 %v538_v14, %v538_v14  ;;  %v541_v18 = vld [vmem:[#allocation6 + $0x160] sm:$0xff]  ;;  %v189_v41 = vld [vmem:[#allocation3 + $0x270] sm:$0xff]  ;;  %v542_v58 = vld [vmem:[#allocation6 + $0x168] sm:$0xff] }
  0xc9   :  { %v1228_v33 = vadd.f32 %v1227_v16, %v2515_v39  ;;  %v1835_v34 = vadd.f32 %v1834_v3, %v1708_v24  ;;  %v437_v9 = vadd.f32 %v436_v61, %v310_v2  ;;  %v1586_v38 = vsub.f32 %v1330_v43, %v1458_v52  ;;  %v1462_v36 = vld [vmem:[#allocation11 + $0x1f8] sm:$0xff] }
  0xca   :  { %v791_v30 = vadd.f32 %v790_v42, %v664_v62  ;;  %v1712_v44 = vmul.f32 %v1584_v40, %v1584_v40  ;;  %v314_v26 = vmul.f32 %v186_v27, %v186_v27  ;;  %v667_v24 = vmul.f32 %v539_v28, %v539_v28 }
  0xcb   :  { %v1229_v22 = vadd.f32 %v1228_v33, %v2326_v4  ;;  %v1836_v5 = vadd.f32 %v1835_v34, %v1709_v45  ;;  %v438_v4 = vadd.f32 %v437_v9, %v311_v31  ;;  %v1587_v0 = vsub.f32 %v1331_v1, %v1459_v47  ;;  %v1333_v33 = vld [vmem:[#allocation9 + $0x1f0] sm:$0xff]  ;;  %v2518_v34 = vld [vmem:[#allocation37_spill] sm:$0xff]  ;;  %v544_v1 = vld [vmem:[#allocation6 + $0x178] sm:$0xff] }
  0xcc   :  { %v792_v7 = vadd.f32 %v791_v30, %v665_v49  ;;  %v1713_v29 = vmul.f32 %v1585_v50, %v1585_v50  ;;  %v315_v39 = vmul.f32 %v187_v63, %v187_v63  ;;  %v668_v8 = vmul.f32 %v540_v55, %v540_v55  ;;  %v543_v49 = vld [vmem:[#allocation6 + $0x170] sm:$0xff]  ;;  %v1336_v30 = vld [vmem:[#allocation9 + $0x208] sm:$0xff] }
  0xcd   :  { %v1230_v11 = vadd.f32 %v1229_v22, %v2516_v60  ;;  %v1837_v17 = vadd.f32 %v1836_v5, %v1710_v54  ;;  %v439_v16 = vadd.f32 %v438_v4, %v312_v13  ;;  %v1588_v31 = vsub.f32 %v1332_v46, %v1460_v37  ;;  %v1334_v22 = vld [vmem:[#allocation9 + $0x1f8] sm:$0xff]  ;;  %v1335_v60 = vld [vmem:[#allocation9 + $0x200] sm:$0xff]  ;;  %v192_v55 = vld [vmem:[#allocation3 + $0x288] sm:$0xff] }
  0xce   :  { %v793_v45 = vadd.f32 %v792_v7, %v666_v15  ;;  %v1714_v61 = vmul.f32 %v1586_v38, %v1586_v38  ;;  %v316_v62 = vmul.f32 %v188_v32, %v188_v32  ;;  %v669_v40 = vmul.f32 %v541_v18, %v541_v18  ;;  %v190_v13 = vld [vmem:[#allocation3 + $0x278] sm:$0xff]  ;;  %v191_v5 = vld [vmem:[#allocation3 + $0x280] sm:$0xff]  ;;  %v1337_v7 = vld [vmem:[#allocation9 + $0x210] sm:$0xff] }
  0xcf   :  { %v1231_v53 = vadd.f32 %v1230_v11, %v2331_v59  ;;  %v1838_v57 = vadd.f32 %v1837_v17, %v1711_v25  ;;  %v440_v59 = vadd.f32 %v439_v16, %v313_v35  ;;  %v1589_v9 = vsub.f32 %v1333_v33, %v1461_v56  ;;  %v1463_v11 = vld [vmem:[#allocation11 + $0x200] sm:$0xff] }
  0xd0   :  { %v794_v54 = vadd.f32 %v793_v45, %v667_v24  ;;  %v1715_v43 = vmul.f32 %v1587_v0, %v1587_v0  ;;  %v317_v42 = vmul.f32 %v189_v41, %v189_v41  ;;  %v670_v27 = vmul.f32 %v542_v58, %v542_v58  ;;  %v545_v37 = vld [vmem:[#allocation6 + $0x180] sm:$0xff]  ;;  %v1466_v45 = vld [vmem:[#allocation11 + $0x218] sm:$0xff] }
  0xd1   :  { %v1232_v2 = vadd.f32 %v1231_v53, %v2517_v48  ;;  %v1839_v10 = vadd.f32 %v1838_v57, %v1712_v44  ;;  %v441_v23 = vadd.f32 %v440_v59, %v314_v26  ;;  %v1590_v28 = vsub.f32 %v1334_v22, %v1462_v36  ;;  %v1464_v53 = vld [vmem:[#allocation11 + $0x208] sm:$0xff]  ;;  %v1465_v48 = vld [vmem:[#allocation11 + $0x210] sm:$0xff] }
  0xd2   :  { %v795_v50 = vadd.f32 %v794_v54, %v668_v8  ;;  %v1716_v35 = vmul.f32 %v1588_v31, %v1588_v31  ;;  %v318_v47 = vmul.f32 %v190_v13, %v190_v13  ;;  %v671_v63 = vmul.f32 %v543_v49, %v543_v49  ;;  %v2519_v44 = vld [vmem:[#allocation38_spill] sm:$0xff]  ;;  %v1338_v8 = vld [vmem:[#allocation9 + $0x218] sm:$0xff]  ;;  %v2520_v31 = vld [vmem:[#allocation39_spill] sm:$0xff] }
  0xd3   :  { %v1233_v3 = vadd.f32 %v1232_v2, %v2336_v51  ;;  %v1840_v52 = vadd.f32 %v1839_v10, %v1713_v29  ;;  %v442_v51 = vadd.f32 %v441_v23, %v315_v39  ;;  %v1591_v26 = vsub.f32 %v1335_v60, %v1463_v11  ;;  %v193_v29 = vld [vmem:[#allocation3 + $0x290] sm:$0xff]  ;;  %v546_v59 = vld [vmem:[#allocation6 + $0x188] sm:$0xff]  ;;  %v194_v10 = vld [vmem:[#allocation3 + $0x298] sm:$0xff] }
  0xd4   :  { %v796_v38 = vadd.f32 %v795_v50, %v669_v40  ;;  %v1717_v16 = vmul.f32 %v1589_v9, %v1589_v9  ;;  %v319_v24 = vmul.f32 %v191_v5, %v191_v5  ;;  %v672_v2 = vmul.f32 %v544_v1, %v544_v1  ;;  %v547_v22 = vld [vmem:[#allocation6 + $0x190] sm:$0xff]  ;;  %v1339_v40 = vld [vmem:[#allocation9 + $0x220] sm:$0xff]  ;;  %v1340_v11 = vld [vmem:[#allocation9 + $0x228] sm:$0xff] }
  0xd5   :  { %v1234_v14 = vadd.f32 %v1233_v3, %v2518_v34  ;;  %v1841_v4 = vadd.f32 %v1840_v52, %v1714_v61  ;;  %v443_v15 = vadd.f32 %v442_v51, %v316_v62  ;;  %v1592_v57 = vsub.f32 %v1336_v30, %v1464_v53  ;;  %v1467_v54 = vld [vmem:[#allocation11 + $0x220] sm:$0xff]  ;;  %v2521_v5 = vld [vmem:[#allocation40_spill] sm:$0xff]  ;;  %v1341_v53 = vld [vmem:[#allocation9 + $0x230] sm:$0xff] }
  0xd6   :  { %v797_v32 = vadd.f32 %v796_v38, %v670_v27  ;;  %v1718_v18 = vmul.f32 %v1590_v28, %v1590_v28  ;;  %v320_v33 = vmul.f32 %v192_v55, %v192_v55  ;;  %v673_v3 = vmul.f32 %v545_v37, %v545_v37  ;;  %v195_v9 = vld [vmem:[#allocation3 + $0x2a0] sm:$0xff]  ;;  %v1468_v27 = vld [vmem:[#allocation11 + $0x228] sm:$0xff] }
  0xd7   :  { %v1235_v25 = vadd.f32 %v1234_v14, %v2341_v6  ;;  %v1842_v46 = vadd.f32 %v1841_v4, %v1715_v43  ;;  %v444_v6 = vadd.f32 %v443_v15, %v317_v42  ;;  %v1593_v58 = vsub.f32 %v1337_v7, %v1465_v48  ;;  %v548_v42 = vld [vmem:[#allocation6 + $0x198] sm:$0xff]  ;;  %v549_v15 = vld [vmem:[#allocation6 + $0x1a0] sm:$0xff] }
  0xd8   :  { %v798_v41 = vadd.f32 %v797_v32, %v671_v63  ;;  %v1719_v62 = vmul.f32 %v1591_v26, %v1591_v26  ;;  %v321_v36 = vmul.f32 %v193_v29, %v193_v29  ;;  %v674_v34 = vmul.f32 %v546_v59, %v546_v59  ;;  %v1469_v63 = vld [vmem:[#allocation11 + $0x230] sm:$0xff]  ;;  %v1342_v7 = vld [vmem:[#allocation9 + $0x238] sm:$0xff] }
  0xd9   :  { %v1236_v17 = vadd.f32 %v1235_v25, %v2519_v44  ;;  %v1843_v39 = vadd.f32 %v1842_v46, %v1716_v35  ;;  %v445_v56 = vadd.f32 %v444_v6, %v318_v47  ;;  %v1594_v43 = vsub.f32 %v1338_v8, %v1466_v45  ;;  %v196_v35 = vld [vmem:[#allocation3 + $0x2a8] sm:$0xff]  ;;  %v197_v26 = vld [vmem:[#allocation3 + $0x2b0] sm:$0xff]  ;;  %v1470_v48 = vld [vmem:[#allocation11 + $0x238] sm:$0xff] }
  0xda   :  { %v799_v14 = vadd.f32 %v798_v41, %v672_v2  ;;  %v1720_v52 = vmul.f32 %v1592_v57, %v1592_v57  ;;  %v322_v51 = vmul.f32 %v194_v10, %v194_v10  ;;  %v675_v50 = vmul.f32 %v547_v22, %v547_v22  ;;  %v198_v57 = vld [vmem:[#allocation3 + $0x2b8] sm:$0xff]  ;;  %v1343_v45 = vld [vmem:[#allocation9 + $0x240] sm:$0xff] }
  0xdb   :  { %v1237_v0 = vadd.f32 %v1236_v17, %v2346_v19  ;;  %v1844_v23 = vadd.f32 %v1843_v39, %v1717_v16  ;;  %v446_v19 = vadd.f32 %v445_v56, %v319_v24  ;;  %v1595_v4 = vsub.f32 %v1339_v40, %v1467_v54  ;;  %v991_v17 = vld [vmem:[#allocation8 + $0x358] sm:$0xff]  ;;  %v1344_v40 = vld [vmem:[#allocation9 + $0x248] sm:$0xff] }
  0xdc   :  { %v800_v25 = vadd.f32 %v799_v14, %v673_v3  ;;  %v1721_v1 = vmul.f32 %v1593_v58, %v1593_v58  ;;  %v323_v30 = vmul.f32 %v195_v9, %v195_v9  ;;  %v676_v38 = vmul.f32 %v548_v42, %v548_v42  ;;  %v1471_v3 = vld [vmem:[#allocation11 + $0x240] sm:$0xff]  ;;  %v1472_v54 = vld [vmem:[#allocation11 + $0x248] sm:$0xff] }
  0xdd   :  { %v1238_v61 = vadd.f32 %v1237_v0, %v2520_v31  ;;  %v1845_v49 = vadd.f32 %v1844_v23, %v1718_v18  ;;  %v447_v60 = vadd.f32 %v446_v19, %v320_v33  ;;  %v1596_v16 = vsub.f32 %v1340_v11, %v1468_v27  ;;  %v2522_v0 = vld [vmem:[#allocation41_spill] sm:$0xff]  ;;  %v550_v33 = vld [vmem:[#allocation6 + $0x1a8] sm:$0xff]  ;;  %v994_v11 = vld [vmem:[#allocation8 + $0x370] sm:$0xff] }
  0xde   :  { %v801_v44 = vadd.f32 %v800_v25, %v674_v34  ;;  %v1722_v46 = vmul.f32 %v1594_v43, %v1594_v43  ;;  %v324_v24 = vmul.f32 %v196_v35, %v196_v35  ;;  %v677_v2 = vmul.f32 %v549_v15, %v549_v15  ;;  %v992_v31 = vld [vmem:[#allocation8 + $0x360] sm:$0xff]  ;;  %v200_v43 = vld [vmem:[#allocation3 + $0x2c8] sm:$0xff]  ;;  %v1345_v35 = vld [vmem:[#allocation9 + $0x250] sm:$0xff] }
  0xdf   :  { %v1239_v13 = vadd.f32 %v1238_v61, %v2351_v20  ;;  %v1846_v47 = vadd.f32 %v1845_v49, %v1719_v62  ;;  %v448_v20 = vadd.f32 %v447_v60, %v321_v36  ;;  %v1597_v18 = vsub.f32 %v1341_v53, %v1469_v63  ;;  %v2523_v61 = vld [vmem:[#allocation42_spill] sm:$0xff]  ;;  %v199_v58 = vld [vmem:[#allocation3 + $0x2c0] sm:$0xff] }
  0xe0   :  { %v802_v32 = vadd.f32 %v801_v44, %v675_v50  ;;  %v1723_v39 = vmul.f32 %v1595_v4, %v1595_v4  ;;  %v1119_v56 = vmul.f32 %v991_v17, %v991_v17  ;;  %v325_v8 = vmul.f32 %v197_v26, %v197_v26  ;;  %v993_v60 = vld [vmem:[#allocation8 + $0x368] sm:$0xff]  ;;  %v1473_v4 = vld [vmem:[#allocation11 + $0x250] sm:$0xff] }
  0xe1   :  { %v1240_v28 = vadd.f32 %v1239_v13, %v2521_v5  ;;  %v1847_v37 = vadd.f32 %v1846_v47, %v1720_v52  ;;  %v449_v6 = vadd.f32 %v448_v20, %v322_v51  ;;  %v1598_v62 = vsub.f32 %v1342_v7, %v1470_v48  ;;  %v2524_v13 = vld [vmem:[#allocation43_spill] sm:$0xff] }
  0xe2   :  { %v803_v41 = vadd.f32 %v802_v32, %v676_v38  ;;  %v1724_v23 = vmul.f32 %v1596_v16, %v1596_v16  ;;  %v326_v36 = vmul.f32 %v198_v57, %v198_v57  ;;  %v678_v34 = vmul.f32 %v550_v33, %v550_v33  ;;  %v551_v51 = vld [vmem:[#allocation6 + $0x1b0] sm:$0xff]  ;;  %v1474_v57 = vld [vmem:[#allocation11 + $0x258] sm:$0xff] }
  0xe3   :  { %v1241_v55 = vadd.f32 %v1240_v28, %v2356_v21  ;;  %v1848_v59 = vadd.f32 %v1847_v37, %v1721_v1  ;;  %v450_v21 = vadd.f32 %v449_v6, %v323_v30  ;;  %v1599_v52 = vsub.f32 %v1343_v45, %v1471_v3  ;;  %v201_v28 = vld [vmem:[#allocation3 + $0x2d0] sm:$0xff]  ;;  %v995_v30 = vld [vmem:[#allocation8 + $0x378] sm:$0xff]  ;;  %v996_v37 = vld [vmem:[#allocation8 + $0x380] sm:$0xff] }
  0xe4   :  { %v804_v14 = vadd.f32 %v803_v41, %v677_v2  ;;  %v1725_v49 = vmul.f32 %v1597_v18, %v1597_v18  ;;  %v1120_v27 = vmul.f32 %v992_v31, %v992_v31  ;;  %v327_v50 = vmul.f32 %v199_v58, %v199_v58  ;;  %v999_v33 = vld [vmem:[#allocation8 + $0x398] sm:$0xff]  ;;  %v1000_v3 = vld [vmem:[#allocation8 + $0x3a0] sm:$0xff] }
  0xe5   :  { %v1242_v29 = vadd.f32 %v1241_v55, %v2522_v0  ;;  %v1849_v22 = vadd.f32 %v1848_v59, %v1722_v46  ;;  %v451_v19 = vadd.f32 %v450_v21, %v324_v24  ;;  %v1600_v1 = vsub.f32 %v1344_v40, %v1472_v54  ;;  %v202_v55 = vld [vmem:[#allocation3 + $0x2d8] sm:$0xff]  ;;  %v997_v24 = vld [vmem:[#allocation8 + $0x388] sm:$0xff]  ;;  %v203_v0 = vld [vmem:[#allocation3 + $0x2e0] sm:$0xff] }
  0xe6   :  { %v1726_v47 = vmul.f32 %v1598_v62, %v1598_v62  ;;  %v328_v20 = vmul.f32 %v200_v43, %v200_v43  ;;  %v679_v63 = vmul.f32 %v551_v51, %v551_v51  ;;  %v805_v38 = vadd.f32 %v804_v14, %v678_v34  ;;  %v552_v46 = vld [vmem:[#allocation6 + $0x1b8] sm:$0xff]  ;;  %v998_v59 = vld [vmem:[#allocation8 + $0x390] sm:$0xff]  ;;  %v553_v62 = vld [vmem:[#allocation6 + $0x1c0] sm:$0xff] }
  0xe7   :  { %v1243_v10 = vadd.f32 %v1242_v29, %v2523_v61  ;;  %v1850_v42 = vadd.f32 %v1849_v22, %v1723_v39  ;;  %v452_v25 = vadd.f32 %v451_v19, %v325_v8  ;;  %v1121_v44 = vmul.f32 %v993_v60, %v993_v60  ;;  %v1346_v29 = vld [vmem:[#allocation9 + $0x258] sm:$0xff]  ;;  %v1347_v19 = vld [vmem:[#allocation9 + $0x260] sm:$0xff]  ;;  %v1002_v14 = vld [vmem:[#allocation8 + $0x3b0] sm:$0xff] }
  0xe8   :  { %v1727_v26 = vmul.f32 %v1599_v52, %v1599_v52  ;;  %v329_v6 = vmul.f32 %v201_v28, %v201_v28  ;;  %v1601_v48 = vsub.f32 %v1345_v35, %v1473_v4  ;;  %v1123_v2 = vmul.f32 %v995_v30, %v995_v30  ;;  %v1475_v40 = vld [vmem:[#allocation11 + $0x260] sm:$0xff]  ;;  %v205_v52 = vld [vmem:[#allocation3 + $0x2f0] sm:$0xff]  ;;  %v206_v4 = vld [vmem:[#allocation3 + $0x2f8] sm:$0xff] }
  0xe9   :  { %v1244_v9 = vadd.f32 %v1243_v10, %v2524_v13  ;;  %v1851_v15 = vadd.f32 %v1850_v42, %v1724_v23  ;;  %v453_v53 = vadd.f32 %v452_v25, %v326_v36  ;;  %v1728_v18 = vmul.f32 %v1600_v1, %v1600_v1  ;;  %v204_v10 = vld [vmem:[#allocation3 + $0x2e8] sm:$0xff]  ;;  %v1003_v42 = vld [vmem:[#allocation8 + $0x3b8] sm:$0xff]  ;;  %v1004_v51 = vld [vmem:[#allocation8 + $0x3c0] sm:$0xff] }
  0xea   :  { %v680_v21 = vmul.f32 %v552_v46, %v552_v46  ;;  %v806_v45 = vadd.f32 %v805_v38, %v679_v63  ;;  %v1124_v41 = vmul.f32 %v996_v37, %v996_v37  ;;  %v1125_v31 = vmul.f32 %v997_v24, %v997_v24  ;;  %v1001_v23 = vld [vmem:[#allocation8 + $0x3a8] sm:$0xff]  ;;  %v1349_v63 = vld [vmem:[#allocation9 + $0x270] sm:$0xff]  ;;  %v207_v37 = vld [vmem:[#allocation3 + $0x300] sm:$0xff] }
  0xeb   :  { %v1245_v5 = vadd.f32 %v1244_v9, %v2367_v12  ;;  %v1852_v16 = vadd.f32 %v1851_v15, %v1725_v49  ;;  %v1122_v12 = vmul.f32 %v994_v11, %v994_v11  ;;  %v454_v7 = vadd.f32 %v453_v53, %v327_v50  ;;  %v1348_v1 = vld [vmem:[#allocation9 + $0x268] sm:$0xff]  ;;  %v1477_v38 = vld [vmem:[#allocation11 + $0x270] sm:$0xff] }
  0xec   :  { %v331_v22 = vmul.f32 %v203_v0, %v203_v0  ;;  %v1602_v54 = vsub.f32 %v1346_v29, %v1474_v57  ;;  %v1729_v34 = vmul.f32 %v1601_v48, %v1601_v48  ;;  %v1126_v13 = vmul.f32 %v998_v59, %v998_v59  ;;  %v1005_v30 = vld [vmem:[#allocation8 + $0x3c8] sm:$0xff]  ;;  %v1478_v48 = vld [vmem:[#allocation11 + $0x278] sm:$0xff] }
  0xed   :  { %v1246_v17 = vadd.f32 %v1245_v5, %v1119_v56  ;;  %v1853_v39 = vadd.f32 %v1852_v16, %v1726_v47  ;;  %v330_v56 = vmul.f32 %v202_v55, %v202_v55  ;;  %v455_v8 = vadd.f32 %v454_v7, %v328_v20  ;;  %v1476_v47 = vld [vmem:[#allocation11 + $0x268] sm:$0xff]  ;;  %v1006_v55 = vld [vmem:[#allocation8 + $0x3d0] sm:$0xff]  ;;  %v1350_v7 = vld [vmem:[#allocation9 + $0x278] sm:$0xff] }
  0xee   :  { %v2423_v9 = vmul.f32 %v999_v33, %v999_v33  ;;  %v332_v60 = vmul.f32 %v204_v10, %v204_v10  ;;  %v681_v50 = vmul.f32 %v553_v62, %v553_v62  ;;  %v807_v25 = vadd.f32 %v806_v45, %v680_v21  ;;  %v1007_v29 = vld [vmem:[#allocation8 + $0x3d8] sm:$0xff]  ;;  %v208_v59 = vld [vmem:[#allocation3 + $0x308] sm:$0xff]  ;;  %v1351_v45 = vld [vmem:[#allocation9 + $0x280] sm:$0xff] }
  0xef   :  { %v1247_v32 = vadd.f32 %v1246_v17, %v1120_v27  ;;  %v1854_v58 = vadd.f32 %v1853_v39, %v1727_v26  ;;  %v456_v36 = vadd.f32 %v455_v8, %v329_v6  ;;  %v554_v27 = vld [vmem:[#allocation6 + $0x1c8] sm:$0xff]  ;;  %v2425_v5 = vmul.f32 %v1000_v3, %v1000_v3  ;;  %v1479_v3 = vld [vmem:[#allocation11 + $0x280] sm:$0xff]  ;;  %v209_v62 = vld [vmem:[#allocation3 + $0x310] sm:$0xff] }
  0xf0   :  { %v2427_v28 = vmul.f32 %v1001_v23, %v1001_v23  ;;  %v1603_v15 = vsub.f32 %v1347_v19, %v1475_v40  ;;  %v333_v20 = vmul.f32 %v205_v52, %v205_v52  ;;  %v2429_v26 = vmul.f32 %v1002_v14, %v1002_v14  ;;  %v1352_v40 = vld [vmem:[#allocation9 + $0x288] sm:$0xff] }
  0xf1   :  { %v1248_v61 = vadd.f32 %v1247_v32, %v1121_v44  ;;  %v1855_v49 = vadd.f32 %v1854_v58, %v1728_v18  ;;  %v457_v11 = vadd.f32 %v456_v36, %v330_v56  ;;  %v1730_v44 = vmul.f32 %v1602_v54, %v1602_v54  ;;  %v555_v32 = vld [vmem:[#allocation6 + $0x1d0] sm:$0xff]  ;;  %v1008_v56 = vld [vmem:[#allocation8 + $0x3e0] sm:$0xff]  ;;  %v1480_v54 = vld [vmem:[#allocation11 + $0x288] sm:$0xff] }
  0xf2   :  { %v2431_v16 = vmul.f32 %v1003_v42, %v1003_v42  ;;  %v682_v24 = vmul.f32 %v554_v27, %v554_v27  ;;  %v808_v0 = vadd.f32 %v807_v25, %v681_v50  ;;  %v2433_v57 = vmul.f32 %v1004_v51, %v1004_v51  ;;  %v210_v51 = vld [vmem:[#allocation3 + $0x318] sm:$0xff]  ;;  %v1353_v50 = vld [vmem:[#allocation9 + $0x290] sm:$0xff] }
  0xf3   :  { %v1249_v43 = vadd.f32 %v1248_v61, %v1122_v12  ;;  %v458_v53 = vadd.f32 %v457_v11, %v331_v22  ;;  %v1856_v17 = vadd.f32 %v1855_v49, %v1729_v34  ;;  %v334_v12 = vmul.f32 %v206_v4, %v206_v4  ;;  %v556_v34 = vld [vmem:[#allocation6 + $0x1d8] sm:$0xff]  ;;  %v1481_v25 = vld [vmem:[#allocation11 + $0x290] sm:$0xff] }
  0xf4   :  { %v2435_v18 = vmul.f32 %v1005_v30, %v1005_v30  ;;  %v1605_v33 = vsub.f32 %v1349_v63, %v1477_v38  ;;  %v335_v8 = vmul.f32 %v207_v37, %v207_v37  ;;  %v2437_v10 = vmul.f32 %v1006_v55, %v1006_v55  ;;  %v1354_v38 = vld [vmem:[#allocation9 + $0x298] sm:$0xff] }
  0xf5   :  { %v1250_v35 = vadd.f32 %v1249_v43, %v1123_v2  ;;  %v459_v6 = vadd.f32 %v458_v53, %v332_v60  ;;  %v1604_v2 = vsub.f32 %v1348_v1, %v1476_v47  ;;  %v1857_v61 = vadd.f32 %v1856_v17, %v1730_v44  ;;  %v1009_v43 = vld [vmem:[#allocation8 + $0x3e8] sm:$0xff]  ;;  %v211_v47 = vld [vmem:[#allocation3 + $0x320] sm:$0xff]  ;;  %v1482_v44 = vld [vmem:[#allocation11 + $0x298] sm:$0xff] }
  0xf6   :  { %v1606_v23 = vsub.f32 %v1350_v7, %v1478_v48  ;;  %v683_v22 = vmul.f32 %v555_v32, %v555_v32  ;;  %v336_v36 = vmul.f32 %v208_v59, %v208_v59  ;;  %v809_v14 = vadd.f32 %v808_v0, %v682_v24  ;;  %v557_v17 = vld [vmem:[#allocation6 + $0x1e0] sm:$0xff] }
  0xf7   :  { %v1251_v46 = vadd.f32 %v1250_v35, %v1124_v41  ;;  %v460_v21 = vadd.f32 %v459_v6, %v333_v20  ;;  %v1731_v41 = vmul.f32 %v1603_v15, %v1603_v15  ;;  %v2439_v52 = vmul.f32 %v1007_v29, %v1007_v29  ;;  %v212_v6 = vld [vmem:[#allocation3 + $0x328] sm:$0xff]  ;;  %v1483_v32 = vld [vmem:[#allocation11 + $0x2a0] sm:$0xff] }
  0xf8   :  { %v2441_v49 = vmul.f32 %v1008_v56, %v1008_v56  ;;  %v1607_v60 = vsub.f32 %v1351_v45, %v1479_v3  ;;  %v337_v11 = vmul.f32 %v209_v62, %v209_v62  ;;  %v1733_v35 = vmul.f32 %v1605_v33, %v1605_v33  ;;  %v213_v33 = vld [vmem:[#allocation3 + $0x330] sm:$0xff] }
  0xf9   :  { %v1252_v39 = vadd.f32 %v1251_v46, %v1125_v31  ;;  %v461_v19 = vadd.f32 %v460_v21, %v334_v12  ;;  %v1732_v31 = vmul.f32 %v1604_v2, %v1604_v2  ;;  %v1858_v4 = vadd.f32 %v1857_v61, %v1731_v41  ;;  %v1011_v46 = vld [vmem:[#allocation8 + $0x3f8] sm:$0xff]  ;;  %v1355_v2 = vld [vmem:[#allocation9 + $0x2a0] sm:$0xff]  ;;  %v1356_v41 = vld [vmem:[#allocation9 + $0x2a8] sm:$0xff] }
  0xfa   :  { %v1608_v15 = vsub.f32 %v1352_v40, %v1480_v54  ;;  %v1734_v30 = vmul.f32 %v1606_v23, %v1606_v23  ;;  %v684_v20 = vmul.f32 %v556_v34, %v556_v34  ;;  %v338_v53 = vmul.f32 %v210_v51, %v210_v51  ;;  %v1484_v61 = vld [vmem:[#allocation11 + $0x2a8] sm:$0xff]  ;;  %v1485_v34 = vld [vmem:[#allocation11 + $0x2b0] sm:$0xff] }
  0xfb   :  { %v1253_v58 = vadd.f32 %v1252_v39, %v1126_v13  ;;  %v1010_v13 = vld [vmem:[#allocation8 + $0x3f0] sm:$0xff]  ;;  %v462_v27 = vadd.f32 %v461_v19, %v335_v8  ;;  %v810_v55 = vadd.f32 %v809_v14, %v683_v22  ;;  %v2445_v37 = vmul.f32 %v1009_v43, %v1009_v43  ;;  %v558_v39 = vld [vmem:[#allocation6 + $0x1e8] sm:$0xff] }
  0xfc   :  { %v2447_v24 = vmul.f32 %v1010_v13, %v1010_v13  ;;  %v339_v7 = vmul.f32 %v211_v47, %v211_v47  ;;  %v1735_v0 = vmul.f32 %v1607_v60, %v1607_v60  ;;  %v1610_v56 = vsub.f32 %v1354_v38, %v1482_v44  ;;  %v215_v60 = vld [vmem:[#allocation3 + $0x340] sm:$0xff] }
  0xfd   :  { %v1254_v42 = vadd.f32 %v1253_v58, %v2423_v9  ;;  %v463_v63 = vadd.f32 %v462_v27, %v336_v36  ;;  %v1859_v9 = vadd.f32 %v1858_v4, %v1732_v31  ;;  %v1736_v8 = vmul.f32 %v1608_v15, %v1608_v15  ;;  %v559_v58 = vld [vmem:[#allocation6 + $0x1f0] sm:$0xff]  ;;  %v214_v36 = vld [vmem:[#allocation3 + $0x338] sm:$0xff] }
  0xfe   :  { %v685_v21 = vmul.f32 %v557_v17, %v557_v17  ;;  %v340_v45 = vmul.f32 %v212_v6, %v212_v6  ;;  %v811_v62 = vadd.f32 %v810_v55, %v684_v20  ;;  %v2451_v23 = vmul.f32 %v1011_v46, %v1011_v46  ;;  %v1357_v31 = vld [vmem:[#allocation9 + $0x2b0] sm:$0xff]  ;;  %v562_v55 = vld [vmem:[#allocation6 + $0x208] sm:$0xff] }
  0xff   :  { %v1255_v1 = vadd.f32 %v1254_v42, %v2425_v5  ;;  %v1609_v5 = vsub.f32 %v1353_v50, %v1481_v25  ;;  %v464_v48 = vadd.f32 %v463_v63, %v337_v11  ;;  %v1860_v29 = vadd.f32 %v1859_v9, %v1733_v35  ;;  %v560_v42 = vld [vmem:[#allocation6 + $0x1f8] sm:$0xff]  ;;  %v1487_v9 = vld [vmem:[#allocation11 + $0x2c0] sm:$0xff]  ;;  %v217_v6 = vld [vmem:[#allocation3 + $0x350] sm:$0xff] }
 0x100   :  { %v1611_v19 = vsub.f32 %v1355_v2, %v1483_v32  ;;  %v686_v40 = vmul.f32 %v558_v39, %v558_v39  ;;  %v341_v54 = vmul.f32 %v213_v33, %v213_v33  ;;  %v1612_v13 = vsub.f32 %v1356_v41, %v1484_v61  ;;  %v1358_v35 = vld [vmem:[#allocation9 + $0x2b8] sm:$0xff]  ;;  %v563_v39 = vld [vmem:[#allocation6 + $0x210] sm:$0xff] }
 0x101   :  { %v1256_v12 = vadd.f32 %v1255_v1, %v2427_v28  ;;  %v465_v3 = vadd.f32 %v464_v48, %v338_v53  ;;  %v1861_v28 = vadd.f32 %v1860_v29, %v1734_v30  ;;  %v1737_v14 = vmul.f32 %v1609_v5, %v1609_v5  ;;  %v561_v1 = vld [vmem:[#allocation6 + $0x200] sm:$0xff]  ;;  %v216_v30 = vld [vmem:[#allocation3 + $0x348] sm:$0xff]  ;;  %v1489_v61 = vld [vmem:[#allocation11 + $0x2d0] sm:$0xff] }
 0x102   :  { %v1738_v11 = vmul.f32 %v1610_v56, %v1610_v56  ;;  %v687_v27 = vmul.f32 %v559_v58, %v559_v58  ;;  %v342_v50 = vmul.f32 %v214_v36, %v214_v36  ;;  %v812_v47 = vadd.f32 %v811_v62, %v685_v21  ;;  %v218_v56 = vld [vmem:[#allocation3 + $0x358] sm:$0xff]  ;;  %v219_v36 = vld [vmem:[#allocation3 + $0x360] sm:$0xff] }
 0x103   :  { %v1257_v59 = vadd.f32 %v1256_v12, %v2429_v26  ;;  %v466_v26 = vadd.f32 %v465_v3, %v339_v7  ;;  %v1862_v43 = vadd.f32 %v1861_v28, %v1735_v0  ;;  %v1613_v20 = vsub.f32 %v1357_v31, %v1485_v34  ;;  %v1488_v0 = vld [vmem:[#allocation11 + $0x2c8] sm:$0xff]  ;;  %v564_v58 = vld [vmem:[#allocation6 + $0x218] sm:$0xff] }
 0x104   :  { %v1739_v53 = vmul.f32 %v1611_v19, %v1611_v19  ;;  %v688_v63 = vmul.f32 %v560_v42, %v560_v42  ;;  %v343_v38 = vmul.f32 %v215_v60, %v215_v60  ;;  %v813_v46 = vadd.f32 %v812_v47, %v686_v40  ;;  %v1490_v34 = vld [vmem:[#allocation11 + $0x2d8] sm:$0xff]  ;;  %v220_v60 = vld [vmem:[#allocation3 + $0x368] sm:$0xff] }
 0x105   :  { %v1258_v22 = vadd.f32 %v1257_v59, %v2431_v16  ;;  %v467_v25 = vadd.f32 %v466_v26, %v340_v45  ;;  %v1486_v16 = vld [vmem:[#allocation11 + $0x2b8] sm:$0xff]  ;;  %v1863_v4 = vadd.f32 %v1862_v43, %v1736_v8  ;;  %v1740_v7 = vmul.f32 %v1612_v13, %v1612_v13  ;;  %v565_v43 = vld [vmem:[#allocation6 + $0x220] sm:$0xff] }
 0x106   :  { %v1614_v5 = vsub.f32 %v1358_v35, %v1486_v16  ;;  %v689_v48 = vmul.f32 %v561_v1, %v561_v1  ;;  %v344_v2 = vmul.f32 %v216_v30, %v216_v30  ;;  %v814_v59 = vadd.f32 %v813_v46, %v687_v27  ;;  %v1491_v35 = vld [vmem:[#allocation11 + $0x2e0] sm:$0xff] }
 0x107   :  { %v1259_v51 = vadd.f32 %v1258_v22, %v2433_v57  ;;  %v468_v44 = vadd.f32 %v467_v25, %v341_v54  ;;  %v1359_v57 = vld [vmem:[#allocation9 + $0x2c0] sm:$0xff]  ;;  %v1864_v17 = vadd.f32 %v1863_v4, %v1737_v14  ;;  %v1741_v21 = vmul.f32 %v1613_v20, %v1613_v20  ;;  %v566_v4 = vld [vmem:[#allocation6 + $0x228] sm:$0xff] }
 0x108   :  { %v1615_v8 = vsub.f32 %v1359_v57, %v1487_v9  ;;  %v690_v45 = vmul.f32 %v562_v55, %v562_v55  ;;  %v345_v3 = vmul.f32 %v217_v6, %v217_v6  ;;  %v815_v62 = vadd.f32 %v814_v59, %v688_v63  ;;  %v1365_v59 = vld [vmem:[#allocation9 + $0x2f0] sm:$0xff] }
 0x109   :  { %v1260_v15 = vadd.f32 %v1259_v51, %v2435_v18  ;;  %v469_v32 = vadd.f32 %v468_v44, %v342_v50  ;;  %v1360_v18 = vld [vmem:[#allocation9 + $0x2c8] sm:$0xff]  ;;  %v1865_v29 = vadd.f32 %v1864_v17, %v1738_v11  ;;  %v1742_v40 = vmul.f32 %v1614_v5, %v1614_v5  ;;  %v567_v44 = vld [vmem:[#allocation6 + $0x230] sm:$0xff]  ;;  %v222_v17 = vld [vmem:[#allocation3 + $0x378] sm:$0xff] }
 0x10a   :  { %v1616_v19 = vsub.f32 %v1360_v18, %v1488_v0  ;;  %v691_v54 = vmul.f32 %v563_v39, %v563_v39  ;;  %v346_v26 = vmul.f32 %v218_v56, %v218_v56  ;;  %v816_v42 = vadd.f32 %v815_v62, %v689_v48  ;;  %v1492_v48 = vld [vmem:[#allocation11 + $0x2e8] sm:$0xff] }
 0x10b   :  { %v1261_v12 = vadd.f32 %v1260_v15, %v2437_v10  ;;  %v470_v41 = vadd.f32 %v469_v32, %v343_v38  ;;  %v1361_v10 = vld [vmem:[#allocation9 + $0x2d0] sm:$0xff]  ;;  %v1866_v28 = vadd.f32 %v1865_v29, %v1739_v53  ;;  %v1743_v11 = vmul.f32 %v1615_v8, %v1615_v8  ;;  %v223_v32 = vld [vmem:[#allocation3 + $0x380] sm:$0xff] }
 0x10c   :  { %v1617_v13 = vsub.f32 %v1361_v10, %v1489_v61  ;;  %v692_v27 = vmul.f32 %v564_v58, %v564_v58  ;;  %v347_v50 = vmul.f32 %v219_v36, %v219_v36  ;;  %v817_v1 = vadd.f32 %v816_v42, %v690_v45  ;;  %v221_v15 = vld [vmem:[#allocation3 + $0x370] sm:$0xff]  ;;  %v1366_v61 = vld [vmem:[#allocation9 + $0x2f8] sm:$0xff] }
 0x10d   :  { %v1262_v33 = vadd.f32 %v1261_v12, %v2439_v52  ;;  %v471_v31 = vadd.f32 %v470_v41, %v344_v2  ;;  %v1362_v52 = vld [vmem:[#allocation9 + $0x2d8] sm:$0xff]  ;;  %v1867_v14 = vadd.f32 %v1866_v28, %v1740_v7  ;;  %v1744_v20 = vmul.f32 %v1616_v19, %v1616_v19  ;;  %v1364_v7 = vld [vmem:[#allocation9 + $0x2e8] sm:$0xff] }
 0x10e   :  { %v1618_v30 = vsub.f32 %v1362_v52, %v1490_v34  ;;  %v693_v53 = vmul.f32 %v565_v43, %v565_v43  ;;  %v348_v63 = vmul.f32 %v220_v60, %v220_v60  ;;  %v818_v57 = vadd.f32 %v817_v1, %v691_v54  ;;  %v1494_v28 = vld [vmem:[#allocation11 + $0x2f8] sm:$0xff] }
 0x10f   :  { %v1263_v22 = vadd.f32 %v1262_v33, %v2441_v49  ;;  %v472_v25 = vadd.f32 %v471_v31, %v345_v3  ;;  %v1363_v49 = vld [vmem:[#allocation9 + $0x2e0] sm:$0xff]  ;;  %v1868_v16 = vadd.f32 %v1867_v14, %v1741_v21  ;;  %v1745_v46 = vmul.f32 %v1617_v13, %v1617_v13  ;;  %v1493_v33 = vld [vmem:[#allocation11 + $0x2f0] sm:$0xff]  ;;  %v224_v21 = vld [vmem:[#allocation3 + $0x388] sm:$0xff] }
 0x110   :  { %v1619_v55 = vsub.f32 %v1363_v49, %v1491_v35  ;;  %v694_v12 = vmul.f32 %v566_v4, %v566_v4  ;;  %v349_v6 = vmul.f32 %v221_v15, %v221_v15  ;;  %v819_v2 = vadd.f32 %v818_v57, %v692_v27  ;;  %v1495_v31 = vld [vmem:[#allocation11 + $0x300] sm:$0xff]  ;;  %v226_v14 = vld [vmem:[#allocation3 + $0x398] sm:$0xff]  ;;  %v1496_v27 = vld [vmem:[#allocation11 + $0x308] sm:$0xff] }
 0x111   :  { %v1264_v51 = vadd.f32 %v1263_v22, %v2445_v37  ;;  %v473_v38 = vadd.f32 %v472_v25, %v346_v26  ;;  %v1869_v37 = vadd.f32 %v1868_v16, %v1742_v40  ;;  %v1746_v18 = vmul.f32 %v1618_v30, %v1618_v30  ;;  %v225_v22 = vld [vmem:[#allocation3 + $0x390] sm:$0xff]  ;;  %v1367_v26 = vld [vmem:[#allocation9 + $0x300] sm:$0xff]  ;;  %v570_v16 = vld [vmem:[#allocation6 + $0x248] sm:$0xff] }
 0x112   :  { %v695_v0 = vmul.f32 %v567_v44, %v567_v44  ;;  %v350_v29 = vmul.f32 %v222_v17, %v222_v17  ;;  %v820_v8 = vadd.f32 %v819_v2, %v693_v53  ;;  %v1620_v45 = vsub.f32 %v1364_v7, %v1492_v48  ;;  %v227_v25 = vld [vmem:[#allocation3 + $0x3a0] sm:$0xff]  ;;  %v1497_v15 = vld [vmem:[#allocation11 + $0x310] sm:$0xff]  ;;  %v228_v53 = vld [vmem:[#allocation3 + $0x3a8] sm:$0xff] }
 0x113   :  { %v1265_v47 = vadd.f32 %v1264_v51, %v2447_v24  ;;  %v474_v5 = vadd.f32 %v473_v38, %v347_v50  ;;  %v1870_v24 = vadd.f32 %v1869_v37, %v1743_v11  ;;  %v1747_v3 = vmul.f32 %v1619_v55, %v1619_v55  ;;  %v569_v51 = vld [vmem:[#allocation6 + $0x240] sm:$0xff]  ;;  %v1368_v11 = vld [vmem:[#allocation9 + $0x308] sm:$0xff]  ;;  %v571_v44 = vld [vmem:[#allocation6 + $0x250] sm:$0xff] }
 0x114   :  { %v351_v41 = vmul.f32 %v223_v32, %v223_v32  ;;  %v821_v62 = vadd.f32 %v820_v8, %v694_v12  ;;  %v1621_v36 = vsub.f32 %v1365_v59, %v1493_v33  ;;  %v352_v40 = vmul.f32 %v224_v21, %v224_v21  ;;  %v1370_v17 = vld [vmem:[#allocation9 + $0x318] sm:$0xff]  ;;  %v229_v12 = vld [vmem:[#allocation3 + $0x3b0] sm:$0xff]  ;;  %v1371_v32 = vld [vmem:[#allocation9 + $0x320] sm:$0xff] }
 0x115   :  { %v1266_v9 = vadd.f32 %v1265_v47, %v2451_v23  ;;  %v475_v39 = vadd.f32 %v474_v5, %v348_v63  ;;  %v1871_v56 = vadd.f32 %v1870_v24, %v1744_v20  ;;  %v568_v23 = vld [vmem:[#allocation6 + $0x238] sm:$0xff]  ;;  %v1622_v43 = vsub.f32 %v1366_v61, %v1494_v28  ;;  %v1369_v47 = vld [vmem:[#allocation9 + $0x310] sm:$0xff]  ;;  %v231_v61 = vld [vmem:[#allocation3 + $0x3c0] sm:$0xff] }
 0x116   :  { %v696_v19 = vmul.f32 %v568_v23, %v568_v23  ;;  %v822_v34 = vadd.f32 %v821_v62, %v695_v0  ;;  %v1748_v42 = vmul.f32 %v1620_v45, %v1620_v45  ;;  %v353_v60 = vmul.f32 %v225_v22, %v225_v22  ;;  %v1498_v55 = vld [vmem:[#allocation11 + $0x318] sm:$0xff]  ;;  %v573_v23 = vld [vmem:[#allocation6 + $0x260] sm:$0xff]  ;;  %v1372_v45 = vld [vmem:[#allocation9 + $0x328] sm:$0xff] }
 0x117   :  { %1944 = vadd.xlane.f32.xlu1 %v1266_v9  ;;  %v476_v10 = vadd.f32 %v475_v39, %v349_v6  ;;  %v1872_v58 = vadd.f32 %v1871_v56, %v1745_v46  ;;  %v1623_v49 = vsub.f32 %v1367_v26, %v1495_v31  ;;  %v1749_v35 = vmul.f32 %v1621_v36, %v1621_v36  ;;  %v572_v48 = vld [vmem:[#allocation6 + $0x258] sm:$0xff]  ;;  %v574_v22 = vld [vmem:[#allocation6 + $0x268] sm:$0xff] }
 0x118   :  { %v354_v4 = vmul.f32 %v226_v14, %v226_v14  ;;  %v697_v30 = vmul.f32 %v569_v51, %v569_v51  ;;  %v823_v20 = vadd.f32 %v822_v34, %v696_v19  ;;  %v1624_v63 = vsub.f32 %v1368_v11, %v1496_v27  ;;  %v230_v39 = vld [vmem:[#allocation3 + $0x3b8] sm:$0xff] }
 0x119   :  { %v477_v54 = vadd.f32 %v476_v10, %v350_v29  ;;  %v1873_v52 = vadd.f32 %v1872_v58, %v1746_v18  ;;  %v1750_v38 = vmul.f32 %v1622_v43, %v1622_v43  ;;  %v355_v57 = vmul.f32 %v227_v25, %v227_v25  ;;  %v1499_v18 = vld [vmem:[#allocation11 + $0x320] sm:$0xff]  ;;  %v1502_v11 = vld [vmem:[#allocation11 + $0x338] sm:$0xff]  ;;  %v233_v25 = vld [vmem:[#allocation3 + $0x3d0] sm:$0xff] }
 0x11a   :  { %v698_v46 = vmul.f32 %v570_v16, %v570_v16  ;;  %v1625_v6 = vsub.f32 %v1369_v47, %v1497_v15  ;;  %v1751_v5 = vmul.f32 %v1623_v49, %v1623_v49  ;;  %v356_v24 = vmul.f32 %v228_v53, %v228_v53  ;;  %v1375_v15 = vld [vmem:[#allocation9 + $0x340] sm:$0xff] }
 0x11b   :  { %v478_v13 = vadd.f32 %v477_v54, %v351_v41  ;;  %v1874_v50 = vadd.f32 %v1873_v52, %v1747_v3  ;;  %v699_v0 = vmul.f32 %v571_v44, %v571_v44  ;;  %v824_v29 = vadd.f32 %v823_v20, %v697_v30  ;;  %v1500_v3 = vld [vmem:[#allocation11 + $0x328] sm:$0xff]  ;;  %v1501_v54 = vld [vmem:[#allocation11 + $0x330] sm:$0xff]  ;;  %v1503_v30 = vld [vmem:[#allocation11 + $0x340] sm:$0xff] }
 0x11c   :  { %v1626_v59 = vsub.f32 %v1370_v17, %v1498_v55  ;;  %v1752_v33 = vmul.f32 %v1624_v63, %v1624_v63  ;;  %v357_v8 = vmul.f32 %v229_v12, %v229_v12  ;;  %v700_v41 = vmul.f32 %v572_v48, %v572_v48  ;;  %v232_v52 = vld [vmem:[#allocation3 + $0x3c8] sm:$0xff]  ;;  %v234_v63 = vld [vmem:[#allocation3 + $0x3d8] sm:$0xff] }
 0x11d   :  { %v479_v1 = vadd.f32 %v478_v13, %v352_v40  ;;  %v1875_v37 = vadd.f32 %v1874_v50, %v1748_v42  ;;  %v825_v10 = vadd.f32 %v824_v29, %v698_v46  ;;  %v1627_v28 = vsub.f32 %v1371_v32, %v1499_v18  ;;  %v1373_v40 = vld [vmem:[#allocation9 + $0x330] sm:$0xff]  ;;  %v1374_v13 = vld [vmem:[#allocation9 + $0x338] sm:$0xff]  ;;  %v1376_v55 = vld [vmem:[#allocation9 + $0x348] sm:$0xff] }
 0x11e   :  { %v1753_v58 = vmul.f32 %v1625_v6, %v1625_v6  ;;  %v358_v36 = vmul.f32 %v230_v39, %v230_v39  ;;  %v701_v26 = vmul.f32 %v573_v23, %v573_v23  ;;  %v1628_v34 = vsub.f32 %v1372_v45, %v1500_v3  ;;  %v575_v42 = vld [vmem:[#allocation6 + $0x270] sm:$0xff]  ;;  %v1504_v46 = vld [vmem:[#allocation11 + $0x348] sm:$0xff] }
 0x11f   :  { %v480_v9 = vadd.f32 %v479_v1, %v353_v60  ;;  %v1876_v7 = vadd.f32 %v1875_v37, %v1749_v35  ;;  %v826_v31 = vadd.f32 %v825_v10, %v699_v0  ;;  %v1754_v14 = vmul.f32 %v1626_v59, %v1626_v59  ;;  %v1377_v0 = vld [vmem:[#allocation9 + $0x350] sm:$0xff]  ;;  %v1506_v10 = vld [vmem:[#allocation11 + $0x358] sm:$0xff] }
 0x120   :  { %v359_v51 = vmul.f32 %v231_v61, %v231_v61  ;;  %v702_v27 = vmul.f32 %v574_v22, %v574_v22  ;;  %v1629_v49 = vsub.f32 %v1373_v40, %v1501_v54  ;;  %v1755_v35 = vmul.f32 %v1627_v28, %v1627_v28  ;;  %v1505_v29 = vld [vmem:[#allocation11 + $0x350] sm:$0xff] }
 0x121   :  { %v481_v2 = vadd.f32 %v480_v9, %v354_v4  ;;  %v1877_v56 = vadd.f32 %v1876_v7, %v1750_v38  ;;  %v827_v50 = vadd.f32 %v826_v31, %v700_v41  ;;  %v576_v4 = vld [vmem:[#allocation6 + $0x278] sm:$0xff]  ;;  %v360_v1 = vmul.f32 %v232_v52, %v232_v52  ;;  %v1507_v31 = vld [vmem:[#allocation11 + $0x360] sm:$0xff] }
 0x122   :  { %v703_v20 = vmul.f32 %v575_v42, %v575_v42  ;;  %v1630_v38 = vsub.f32 %v1374_v13, %v1502_v11  ;;  %v1756_v37 = vmul.f32 %v1628_v34, %v1628_v34  ;;  %v361_v9 = vmul.f32 %v233_v25, %v233_v25  ;;  %v1378_v41 = vld [vmem:[#allocation9 + $0x358] sm:$0xff] }
 0x123   :  { %v482_v21 = vadd.f32 %v481_v2, %v355_v57  ;;  %v1878_v62 = vadd.f32 %v1877_v56, %v1751_v5  ;;  %v828_v53 = vadd.f32 %v827_v50, %v701_v26  ;;  %v577_v57 = vld [vmem:[#allocation6 + $0x280] sm:$0xff]  ;;  %v704_v12 = vmul.f32 %v576_v4, %v576_v4  ;;  %v578_v2 = vld [vmem:[#allocation6 + $0x288] sm:$0xff] }
 0x124   :  { %v235_v5 = vld [vmem:[#allocation3 + $0x3e0] sm:$0xff]  ;;  %v1631_v7 = vsub.f32 %v1375_v15, %v1503_v30  ;;  %v1757_v48 = vmul.f32 %v1629_v49, %v1629_v49  ;;  %v362_v32 = vmul.f32 %v234_v63, %v234_v63  ;;  %v705_v39 = vmul.f32 %v577_v57, %v577_v57  ;;  %v1508_v50 = vld [vmem:[#allocation11 + $0x368] sm:$0xff]  ;;  %v1381_v30 = vld [vmem:[#allocation9 + $0x370] sm:$0xff] }
 0x125   :  { %v483_v19 = vadd.f32 %v482_v21, %v356_v24  ;;  %v1879_v43 = vadd.f32 %v1878_v62, %v1752_v33  ;;  %v829_v6 = vadd.f32 %v828_v53, %v702_v27  ;;  %v236_v33 = vld [vmem:[#allocation3 + $0x3e8] sm:$0xff]  ;;  %v1632_v56 = vsub.f32 %v1376_v55, %v1504_v46  ;;  %v579_v21 = vld [vmem:[#allocation6 + $0x290] sm:$0xff]  ;;  %v1379_v26 = vld [vmem:[#allocation9 + $0x360] sm:$0xff] }
 0x126   :  { %v1758_v23 = vmul.f32 %v1630_v38, %v1630_v38  ;;  %v363_v45 = vmul.f32 %v235_v5, %v235_v5  ;;  %v706_v61 = vmul.f32 %v578_v2, %v578_v2  ;;  %v1633_v62 = vsub.f32 %v1377_v0, %v1505_v29  ;;  %v1380_v27 = vld [vmem:[#allocation9 + $0x368] sm:$0xff]  ;;  %v583_v57 = vld [vmem:[#allocation6 + $0x2b0] sm:$0xff]  ;;  %v1510_v55 = vld [vmem:[#allocation11 + $0x378] sm:$0xff] }
 0x127   :  { %v484_v60 = vadd.f32 %v483_v19, %v357_v8  ;;  %v1880_v16 = vadd.f32 %v1879_v43, %v1753_v58  ;;  %v830_v59 = vadd.f32 %v829_v6, %v703_v20  ;;  %v237_v58 = vld [vmem:[#allocation3 + $0x3f0] sm:$0xff]  ;;  %v1759_v22 = vmul.f32 %v1631_v7, %v1631_v7  ;;  %v580_v19 = vld [vmem:[#allocation6 + $0x298] sm:$0xff]  ;;  %v1383_v2 = vld [vmem:[#allocation9 + $0x380] sm:$0xff] }
 0x128   :  { %v364_v40 = vmul.f32 %v236_v33, %v236_v33  ;;  %v707_v52 = vmul.f32 %v579_v21, %v579_v21  ;;  %v1634_v43 = vsub.f32 %v1378_v41, %v1506_v10  ;;  %v1760_v42 = vmul.f32 %v1632_v56, %v1632_v56  ;;  %v1509_v20 = vld [vmem:[#allocation11 + $0x370] sm:$0xff]  ;;  %v585_v33 = vld [vmem:[#allocation6 + $0x2c0] sm:$0xff]  ;;  %v1384_v56 = vld [vmem:[#allocation9 + $0x388] sm:$0xff] }
 0x129   :  { %v485_v47 = vadd.f32 %v484_v60, %v358_v36  ;;  %v1881_v44 = vadd.f32 %v1880_v16, %v1754_v14  ;;  %v831_v28 = vadd.f32 %v830_v59, %v704_v12  ;;  %v238_v14 = vld [vmem:[#allocation3 + $0x3f8] sm:$0xff]  ;;  %v581_v60 = vld [vmem:[#allocation6 + $0x2a0] sm:$0xff]  ;;  %v365_v13 = vmul.f32 %v237_v58, %v237_v58  ;;  %v586_v10 = vld [vmem:[#allocation6 + $0x2c8] sm:$0xff] }
 0x12a   :  { %v708_v25 = vmul.f32 %v580_v19, %v580_v19  ;;  %v1761_v16 = vmul.f32 %v1633_v62, %v1633_v62  ;;  %v709_v53 = vmul.f32 %v581_v60, %v581_v60  ;;  %v1636_v38 = vsub.f32 %v1380_v27, %v1508_v50  ;;  %v1515_v60 = vld [vmem:[#allocation11 + $0x3a0] sm:$0xff] }
 0x12b   :  { %v486_v17 = vadd.f32 %v485_v47, %v359_v51  ;;  %v1882_v24 = vadd.f32 %v1881_v44, %v1755_v35  ;;  %v832_v34 = vadd.f32 %v831_v28, %v705_v39  ;;  %v1635_v35 = vsub.f32 %v1379_v26, %v1507_v31  ;;  %v1513_v28 = vld [vmem:[#allocation11 + $0x390] sm:$0xff]  ;;  %v1514_v26 = vld [vmem:[#allocation11 + $0x398] sm:$0xff] }
 0x12c   :  { %v366_v47 = vmul.f32 %v238_v14, %v238_v14  ;;  %v1637_v6 = vsub.f32 %v1381_v30, %v1509_v20  ;;  %v1764_v39 = vmul.f32 %v1636_v38, %v1636_v38  ;;  %v713_v58 = vmul.f32 %v585_v33, %v585_v33  ;;  %v590_v20 = vld [vmem:[#allocation6 + $0x2e8] sm:$0xff]  ;;  %v593_v33 = vld [vmem:[#allocation6 + $0x300] sm:$0xff] }
 0x12d   :  { %v487_v18 = vadd.f32 %v486_v17, %v360_v1  ;;  %v1883_v8 = vadd.f32 %v1882_v24, %v1756_v37  ;;  %v833_v49 = vadd.f32 %v832_v34, %v706_v61  ;;  %v582_v1 = vld [vmem:[#allocation6 + $0x2a8] sm:$0xff]  ;;  %v1762_v37 = vmul.f32 %v1634_v43, %v1634_v43  ;;  %v1382_v17 = vld [vmem:[#allocation9 + $0x378] sm:$0xff]  ;;  %v1385_v61 = vld [vmem:[#allocation9 + $0x390] sm:$0xff] }
 0x12e   :  { %v710_v46 = vmul.f32 %v582_v1, %v582_v1  ;;  %v1763_v5 = vmul.f32 %v1635_v35, %v1635_v35  ;;  %v1638_v29 = vsub.f32 %v1382_v17, %v1510_v55  ;;  %v714_v31 = vmul.f32 %v586_v10, %v586_v10  ;;  %v1388_v35 = vld [vmem:[#allocation9 + $0x3a8] sm:$0xff]  ;;  %v591_v17 = vld [vmem:[#allocation6 + $0x2f0] sm:$0xff]  ;;  %v1390_v55 = vld [vmem:[#allocation9 + $0x3b8] sm:$0xff] }
 0x12f   :  { %v488_v3 = vadd.f32 %v487_v18, %v361_v9  ;;  %v1884_v36 = vadd.f32 %v1883_v8, %v1757_v48  ;;  %v834_v63 = vadd.f32 %v833_v49, %v707_v52  ;;  %v584_v48 = vld [vmem:[#allocation6 + $0x2b8] sm:$0xff]  ;;  %v711_v18 = vmul.f32 %v583_v57, %v583_v57  ;;  %v589_v49 = vld [vmem:[#allocation6 + $0x2e0] sm:$0xff]  ;;  %v594_v10 = vld [vmem:[#allocation6 + $0x308] sm:$0xff] }
 0x130   :  { %v712_v8 = vmul.f32 %v584_v48, %v584_v48  ;;  %v1641_v34 = vsub.f32 %v1385_v61, %v1513_v28  ;;  %v717_v38 = vmul.f32 %v589_v49, %v589_v49  ;;  %v1393_v61 = vld [vmem:[#allocation9 + $0x3d0] sm:$0xff]  ;;  %v597_v49 = vld [vmem:[#allocation6 + $0x320] sm:$0xff] }
 0x131   :  { %v489_v54 = vadd.f32 %v488_v3, %v362_v32  ;;  %v1885_v51 = vadd.f32 %v1884_v36, %v1758_v23  ;;  %v835_v12 = vadd.f32 %v834_v63, %v708_v25  ;;  %v1511_v32 = vld [vmem:[#allocation11 + $0x380] sm:$0xff]  ;;  %v1512_v23 = vld [vmem:[#allocation11 + $0x388] sm:$0xff]  ;;  %v1765_v3 = vmul.f32 %v1637_v6, %v1637_v6  ;;  %v1517_v63 = vld [vmem:[#allocation11 + $0x3b0] sm:$0xff] }
 0x132   :  { %v1766_v36 = vmul.f32 %v1638_v29, %v1638_v29  ;;  %v1521_v28 = vld [vmem:[#allocation11 + $0x3d0] sm:$0xff] }
 0x133   :  { %v490_v11 = vadd.f32 %v489_v54, %v363_v45  ;;  %v1886_v4 = vadd.f32 %v1885_v51, %v1759_v22  ;;  %v836_v0 = vadd.f32 %v835_v12, %v709_v53  ;;  %v1639_v45 = vsub.f32 %v1383_v2, %v1511_v32  ;;  %v1386_v54 = vld [vmem:[#allocation9 + $0x398] sm:$0xff]  ;;  %v1387_v51 = vld [vmem:[#allocation9 + $0x3a0] sm:$0xff]  ;;  %v1389_v53 = vld [vmem:[#allocation9 + $0x3b0] sm:$0xff] }
 0x134   :  { %v1640_v22 = vsub.f32 %v1384_v56, %v1512_v23  ;;  %v1642_v27 = vsub.f32 %v1386_v54, %v1514_v26  ;;  %v718_v12 = vmul.f32 %v590_v20, %v590_v20  ;;  %v1391_v2 = vld [vmem:[#allocation9 + $0x3c0] sm:$0xff]  ;;  %v1392_v56 = vld [vmem:[#allocation9 + $0x3c8] sm:$0xff]  ;;  %v1394_v54 = vld [vmem:[#allocation9 + $0x3d8] sm:$0xff] }
 0x135   :  { %v491_v15 = vadd.f32 %v490_v11, %v364_v40  ;;  %v1887_v44 = vadd.f32 %v1886_v4, %v1760_v42  ;;  %v837_v21 = vadd.f32 %v836_v0, %v710_v46  ;;  %v587_v40 = vld [vmem:[#allocation6 + $0x2d0] sm:$0xff]  ;;  %v1767_v14 = vmul.f32 %v1639_v45, %v1639_v45  ;;  %v588_v42 = vld [vmem:[#allocation6 + $0x2d8] sm:$0xff]  ;;  %v1519_v32 = vld [vmem:[#allocation11 + $0x3c0] sm:$0xff] }
 0x136   :  { %v1768_v50 = vmul.f32 %v1640_v22, %v1640_v22  ;;  %v716_v4 = vmul.f32 %v588_v42, %v588_v42  ;;  %v1770_v57 = vmul.f32 %v1642_v27, %v1642_v27  ;;  %v1518_v46 = vld [vmem:[#allocation11 + $0x3b8] sm:$0xff]  ;;  %v1520_v23 = vld [vmem:[#allocation11 + $0x3c8] sm:$0xff]  ;;  %v1647_v45 = vsub.f32 %v1391_v2, %v1519_v32 }
 0x137   :  { %v492_v9 = vadd.f32 %v491_v15, %v365_v13  ;;  %v1888_v7 = vadd.f32 %v1887_v44, %v1761_v16  ;;  %v838_v62 = vadd.f32 %v837_v21, %v711_v18  ;;  %v715_v13 = vmul.f32 %v587_v40, %v587_v40  ;;  %v1516_v16 = vld [vmem:[#allocation11 + $0x3a8] sm:$0xff]  ;;  %v595_v40 = vld [vmem:[#allocation6 + $0x310] sm:$0xff]  ;;  %v1522_v26 = vld [vmem:[#allocation11 + $0x3d8] sm:$0xff] }
 0x138   :  { %v1769_v15 = vmul.f32 %v1641_v34, %v1641_v34  ;;  %v1644_v44 = vsub.f32 %v1388_v35, %v1516_v16  ;;  %v719_v18 = vmul.f32 %v591_v17, %v591_v17  ;;  %v1646_v29 = vsub.f32 %v1390_v55, %v1518_v46  ;;  %v596_v42 = vld [vmem:[#allocation6 + $0x318] sm:$0xff]  ;;  %v1396_v35 = vld [vmem:[#allocation9 + $0x3e8] sm:$0xff]  ;;  %v599_v17 = vld [vmem:[#allocation6 + $0x330] sm:$0xff] }
 0x139   :  { %v493_v24 = vadd.f32 %v492_v9, %v366_v47  ;;  %v1889_v59 = vadd.f32 %v1888_v7, %v1762_v37  ;;  %v839_v52 = vadd.f32 %v838_v62, %v712_v8  ;;  %v1643_v47 = vsub.f32 %v1387_v51, %v1515_v60  ;;  %v1395_v51 = vld [vmem:[#allocation9 + $0x3e0] sm:$0xff]  ;;  %v1524_v16 = vld [vmem:[#allocation11 + $0x3e8] sm:$0xff]  ;;  %v1398_v55 = vld [vmem:[#allocation9 + $0x3f8] sm:$0xff] }
 0x13a   :  { %v1648_v22 = vsub.f32 %v1392_v56, %v1520_v23  ;;  %v1649_v34 = vsub.f32 %v1393_v61, %v1521_v28  ;;  %v1523_v60 = vld [vmem:[#allocation11 + $0x3e0] sm:$0xff]  ;;  %v1650_v27 = vsub.f32 %v1394_v54, %v1522_v26  ;;  %v598_v20 = vld [vmem:[#allocation6 + $0x328] sm:$0xff]  ;;  %v1526_v46 = vld [vmem:[#allocation11 + $0x3f8] sm:$0xff]  ;;  %v727_v2 = vmul.f32 %v599_v17, %v599_v17 }
 0x13b   :  { %1918 = vadd.xlane.f32.xlu0 %v493_v24  ;;  %v1890_v41 = vadd.f32 %v1889_v59, %v1763_v5  ;;  %v840_v11 = vadd.f32 %v839_v52, %v713_v58  ;;  %v1645_v5 = vsub.f32 %v1389_v53, %v1517_v63  ;;  %v1771_v7 = vmul.f32 %v1643_v47, %v1643_v47  ;;  %v592_v24 = vld [vmem:[#allocation6 + $0x2f8] sm:$0xff]  ;;  %v1397_v53 = vld [vmem:[#allocation9 + $0x3f0] sm:$0xff] }
 0x13c   :  { %v720_v8 = vmul.f32 %v592_v24, %v592_v24  ;;  %v721_v58 = vmul.f32 %v593_v33, %v593_v33  ;;  %v1651_v47 = vsub.f32 %v1395_v51, %v1523_v60  ;;  %v1525_v63 = vld [vmem:[#allocation11 + $0x3f0] sm:$0xff]  ;;  %v600_v24 = vld [vmem:[#allocation6 + $0x338] sm:$0xff] }
 0x13d   :  { %v1891_v19 = vadd.f32 %v1890_v41, %v1764_v39  ;;  %v841_v1 = vadd.f32 %v840_v11, %v714_v31  ;;  %v1772_v39 = vmul.f32 %v1644_v44, %v1644_v44  ;;  %v722_v31 = vmul.f32 %v594_v10, %v594_v10  ;;  %v603_v10 = vld [vmem:[#allocation6 + $0x350] sm:$0xff]  ;;  %v608_v51 = vld [vmem:[#allocation6 + $0x378] sm:$0xff] }
 0x13e   :  { %v1652_v44 = vsub.f32 %v1396_v35, %v1524_v16  ;;  %v611_v16 = vld [vmem:[#allocation6 + $0x390] sm:$0xff] }
 0x13f   :  { %v1892_v43 = vadd.f32 %v1891_v19, %v1765_v3  ;;  %v842_v37 = vadd.f32 %v841_v1, %v715_v13  ;;  %v1773_v3 = vmul.f32 %v1645_v5, %v1645_v5  ;;  %v723_v13 = vmul.f32 %v595_v40, %v595_v40  ;;  %v605_v40 = vld [vmem:[#allocation6 + $0x360] sm:$0xff] }
 0x140   :  { %v1653_v5 = vsub.f32 %v1397_v53, %v1525_v63 }
 0x141   :  { %v1893_v25 = vadd.f32 %v1892_v43, %v1766_v36  ;;  %v843_v6 = vadd.f32 %v842_v37, %v716_v4  ;;  %v1774_v36 = vmul.f32 %v1646_v29, %v1646_v29  ;;  %v724_v4 = vmul.f32 %v596_v42, %v596_v42 }
 0x142   :  { %v1781_v56 = vmul.f32 %v1653_v5, %v1653_v5 }
 0x143   :  { %v1894_v30 = vadd.f32 %v1893_v25, %v1767_v14  ;;  %v844_v0 = vadd.f32 %v843_v6, %v717_v38  ;;  %v1775_v14 = vmul.f32 %v1647_v45, %v1647_v45  ;;  %v725_v38 = vmul.f32 %v597_v49, %v597_v49 }
 0x145   :  { %v1895_v9 = vadd.f32 %v1894_v30, %v1768_v50  ;;  %v845_v21 = vadd.f32 %v844_v0, %v718_v12  ;;  %v1776_v50 = vmul.f32 %v1648_v22, %v1648_v22  ;;  %v726_v12 = vmul.f32 %v598_v20, %v598_v20  ;;  %v613_v20 = vld [vmem:[#allocation6 + $0x3a0] sm:$0xff] }
 0x146   :  { %v1780_v0 = vmul.f32 %v1652_v44, %v1652_v44  ;;  %v731_v22 = vmul.f32 %v603_v10, %v603_v10 }
 0x147   :  { %v1896_v48 = vadd.f32 %v1895_v9, %v1769_v15  ;;  %v846_v62 = vadd.f32 %v845_v21, %v719_v18  ;;  %v1777_v15 = vmul.f32 %v1649_v34, %v1649_v34  ;;  %v1654_v18 = vsub.f32 %v1398_v55, %v1526_v46  ;;  %v616_v55 = vld [vmem:[#allocation6 + $0x3b8] sm:$0xff] }
 0x148   :  { %v744_v5 = vmul.f32 %v616_v55, %v616_v55 }
 0x149   :  { %v1897_v59 = vadd.f32 %v1896_v48, %v1770_v57  ;;  %v847_v52 = vadd.f32 %v846_v62, %v720_v8  ;;  %v1778_v57 = vmul.f32 %v1650_v27, %v1650_v27  ;;  %v602_v8 = vld [vmem:[#allocation6 + $0x348] sm:$0xff]  ;;  %v604_v62 = vld [vmem:[#allocation6 + $0x358] sm:$0xff]  ;;  %v736_v27 = vmul.f32 %v608_v51, %v608_v51 }
 0x14a   :  { %v730_v61 = vmul.f32 %v602_v8, %v602_v8  ;;  %v732_v54 = vmul.f32 %v604_v62, %v604_v62  ;;  %v622_v8 = vld [vmem:[#allocation6 + $0x3e8] sm:$0xff] }
 0x14b   :  { %v1898_v41 = vadd.f32 %v1897_v59, %v1771_v7  ;;  %v848_v11 = vadd.f32 %v847_v52, %v721_v58  ;;  %v1779_v7 = vmul.f32 %v1651_v47, %v1651_v47  ;;  %v728_v59 = vmul.f32 %v600_v24, %v600_v24  ;;  %v612_v47 = vld [vmem:[#allocation6 + $0x398] sm:$0xff] }
 0x14c   :  { %v733_v52 = vmul.f32 %v605_v40, %v605_v40  ;;  %v740_v53 = vmul.f32 %v612_v47, %v612_v47 }
 0x14d   :  { %v1899_v19 = vadd.f32 %v1898_v41, %v1772_v39  ;;  %v849_v1 = vadd.f32 %v848_v11, %v722_v31  ;;  %v601_v39 = vld [vmem:[#allocation6 + $0x340] sm:$0xff]  ;;  %v606_v31 = vld [vmem:[#allocation6 + $0x368] sm:$0xff] }
 0x14e   :  { %v729_v21 = vmul.f32 %v601_v39, %v601_v39  ;;  %v609_v11 = vld [vmem:[#allocation6 + $0x380] sm:$0xff] }
 0x14f   :  { %v1900_v43 = vadd.f32 %v1899_v19, %v1773_v3  ;;  %v850_v37 = vadd.f32 %v849_v1, %v723_v13  ;;  %v1782_v3 = vmul.f32 %v1654_v18, %v1654_v18  ;;  %v737_v49 = vmul.f32 %v609_v11, %v609_v11 }
 0x151   :  { %v1901_v25 = vadd.f32 %v1900_v43, %v1774_v36  ;;  %v851_v6 = vadd.f32 %v850_v37, %v724_v4  ;;  %v734_v43 = vmul.f32 %v606_v31, %v606_v31  ;;  %v741_v37 = vmul.f32 %v613_v20, %v613_v20 }
 0x153   :  { %v1902_v30 = vadd.f32 %v1901_v25, %v1775_v14  ;;  %v852_v32 = vadd.f32 %v851_v6, %v725_v38  ;;  %v607_v14 = vld [vmem:[#allocation6 + $0x370] sm:$0xff]  ;;  %v610_v25 = vld [vmem:[#allocation6 + $0x388] sm:$0xff]  ;;  %v617_v6 = vld [vmem:[#allocation6 + $0x3c0] sm:$0xff] }
 0x154   :  { %v735_v60 = vmul.f32 %v607_v14, %v607_v14  ;;  %v738_v4 = vmul.f32 %v610_v25, %v610_v25  ;;  %v614_v38 = vld [vmem:[#allocation6 + $0x3a8] sm:$0xff]  ;;  %v745_v24 = vmul.f32 %v617_v6, %v617_v6 }
 0x155   :  { %v1903_v9 = vadd.f32 %v1902_v30, %v1776_v50  ;;  %v853_v33 = vadd.f32 %v852_v32, %v726_v12  ;;  %v619_v32 = vld [vmem:[#allocation6 + $0x3d0] sm:$0xff] }
 0x156   :  { %v747_v39 = vmul.f32 %v619_v32, %v619_v32 }
 0x157   :  { %v1904_v48 = vadd.f32 %v1903_v9, %v1777_v15  ;;  %v854_v45 = vadd.f32 %v853_v33, %v727_v2  ;;  %v739_v15 = vmul.f32 %v611_v16, %v611_v16  ;;  %v742_v9 = vmul.f32 %v614_v38, %v614_v38  ;;  %v621_v33 = vld [vmem:[#allocation6 + $0x3e0] sm:$0xff] }
 0x159   :  { %v1905_v29 = vadd.f32 %v1904_v48, %v1778_v57  ;;  %v855_v28 = vadd.f32 %v854_v45, %v728_v59  ;;  %v615_v57 = vld [vmem:[#allocation6 + $0x3b0] sm:$0xff]  ;;  %v618_v48 = vld [vmem:[#allocation6 + $0x3c8] sm:$0xff] }
 0x15a   :  { %v743_v46 = vmul.f32 %v615_v57, %v615_v57  ;;  %v746_v18 = vmul.f32 %v618_v48, %v618_v48 }
 0x15b   :  { %v1906_v23 = vadd.f32 %v1905_v29, %v1779_v7  ;;  %v856_v36 = vadd.f32 %v855_v28, %v729_v21  ;;  %v620_v29 = vld [vmem:[#allocation6 + $0x3d8] sm:$0xff]  ;;  %v749_v21 = vmul.f32 %v621_v33, %v621_v33 }
 0x15d   :  { %v1907_v41 = vadd.f32 %v1906_v23, %v1780_v0  ;;  %v857_v26 = vadd.f32 %v856_v36, %v730_v61  ;;  %v624_v61 = vld [vmem:[#allocation6 + $0x3f8] sm:$0xff] }
 0x15e   :  { %v752_v62 = vmul.f32 %v624_v61, %v624_v61 }
 0x15f   :  { %v1908_v58 = vadd.f32 %v1907_v41, %v1781_v56  ;;  %v858_v34 = vadd.f32 %v857_v26, %v731_v22  ;;  %v748_v56 = vmul.f32 %v620_v29, %v620_v29  ;;  %v750_v41 = vmul.f32 %v622_v8, %v622_v8 }
 0x161   :  { %v1909_v19 = vadd.f32 %v1908_v58, %v1782_v3  ;;  %v859_v42 = vadd.f32 %v858_v34, %v732_v54  ;;  %v623_v3 = vld [vmem:[#allocation6 + $0x3f0] sm:$0xff] }
 0x162   :  { %v751_v28 = vmul.f32 %v623_v3, %v623_v3 }
 0x163   :  { %1957 = vadd.xlane.f32.xlu1 %v1909_v19  ;;  %v860_v13 = vadd.f32 %v859_v42, %v733_v52 }
 0x165   :  { %v861_v50 = vadd.f32 %v860_v13, %v734_v43 }
 0x167   :  { %v862_v35 = vadd.f32 %v861_v50, %v735_v60 }
 0x169   :  { %v863_v1 = vadd.f32 %v862_v35, %v736_v27 }
 0x16b   :  { %v864_v30 = vadd.f32 %v863_v1, %v737_v49 }
 0x16d   :  { %v865_v63 = vadd.f32 %v864_v30, %v738_v4 }
 0x16f   :  { %v866_v44 = vadd.f32 %v865_v63, %v739_v15 }
 0x171   :  { %v867_v17 = vadd.f32 %v866_v44, %v740_v53 }
 0x173   :  { %v868_v12 = vadd.f32 %v867_v17, %v741_v37 }
 0x175   :  { %v869_v7 = vadd.f32 %v868_v12, %v742_v9 }
 0x177   :  { %v870_v2 = vadd.f32 %v869_v7, %v743_v46 }
 0x179   :  { %v871_v0 = vadd.f32 %v870_v2, %v744_v5 }
 0x17b   :  { %v872_v59 = vadd.f32 %v871_v0, %v745_v24 }
 0x17d   :  { %v873_v23 = vadd.f32 %v872_v59, %v746_v18 }
 0x17f   :  { %v874_v45 = vadd.f32 %v873_v23, %v747_v39 }
 0x181   :  { %v875_v10 = vadd.f32 %v874_v45, %v748_v56 }
 0x183   :  { %v876_v58 = vadd.f32 %v875_v10, %v749_v21 }
 0x185   :  { %v877_v22 = vadd.f32 %v876_v58, %v750_v41 }
 0x187   :  { %v878_v36 = vadd.f32 %v877_v22, %v751_v28 }
 0x189   :  { %v879_v19 = vadd.f32 %v878_v36, %v752_v62 }
 0x18a   :  { %v1945_v43 = vpop.xlane.xlu1 %1944 }
 0x18b   :  { %1931 = vadd.xlane.f32.xlu0 %v879_v19  ;;  %v1946_v60 = vrot.slane %v1945_v43, 4 }
 0x18d   :  { %v1947_v11 = vadd.f32 %v1946_v60, %v1945_v43 }
 0x18f   :  { %v1948_v25 = vrot.slane %v1947_v11, 2 }
 0x191   :  { %v1949_v4 = vadd.f32 %v1948_v25, %v1947_v11 }
 0x193   :  { %v1950_v30 = vrot.slane %v1949_v4, 1 }
 0x195   :  { %v1951_v38 = vadd.f32 %v1950_v30, %v1949_v4 }
 0x1ae   :  { %v1919_v40 = vpop.xlane.xlu0 %1918 }
 0x1af   :  { %v1920_v54 = vrot.slane %v1919_v40, 4 }
 0x1b1   :  { %v1921_v26 = vadd.f32 %v1920_v54, %v1919_v40 }
 0x1b3   :  { %v1922_v31 = vrot.slane %v1921_v26, 2 }
 0x1b5   :  { %v1923_v52 = vadd.f32 %v1922_v31, %v1921_v26 }
 0x1b7   :  { %v1924_v34 = vrot.slane %v1923_v52, 1 }
 0x1b9   :  { %v1925_v14 = vadd.f32 %v1924_v34, %v1923_v52 }
 0x1bb   :  { %1986 = vpush %v1925_v14 }
 0x1d6   :  { %v1958_v42 = vpop.xlane.xlu1 %1957 }
 0x1d7   :  { %v1959_v51 = vrot.slane %v1958_v42, 4 }
 0x1d9   :  { %v1960_v13 = vadd.f32 %v1959_v51, %v1958_v42 }
 0x1db   :  { %v1961_v27 = vrot.slane %v1960_v13, 2 }
 0x1dd   :  { %v1962_v16 = vadd.f32 %v1961_v27, %v1960_v13 }
 0x1df   :  { %v1963_v15 = vrot.slane %v1962_v16, 1 }
 0x1e1   :  { %v1964_v63 = vadd.f32 %v1963_v15, %v1962_v16 }
 0x1ec   :  { %s1987_s2 = spop %1986 }
 0x1ed   :  { %1928 = sst [smem:[#allocation12]] %s1987_s2 }
 0x1fe   :  { %v1932_v50 = vpop.xlane.xlu0 %1931 }
 0x1ff   :  { %v1933_v49 = vrot.slane %v1932_v50, 4 }
 0x201   :  { %v1934_v35 = vadd.f32 %v1933_v49, %v1932_v50 }
 0x203   :  { %v1935_v1 = vrot.slane %v1934_v35, 2 }
 0x205   :  { %v1936_v47 = vadd.f32 %v1935_v1, %v1934_v35 }
 0x207   :  { %v1937_v20 = vrot.slane %v1936_v47, 1 }
 0x209   :  { %v1938_v53 = vadd.f32 %v1937_v20, %v1936_v47 }
 0x20b   :  { %1988 = vpush %v1938_v53 }
 0x20c   :  { %1990 = vpush %v1951_v38 }
 0x20d   :  { %1992 = vpush %v1964_v63 }
 0x23c   :  { %s1989_s19 = spop %1988 }
 0x23d   :  { %1941 = sst [smem:[#allocation12 + $0x1]] %s1989_s19  ;;  %s1991_s20 = spop %1990 }
 0x23e   :  { %1954 = sst [smem:[#allocation12 + $0x2]] %s1991_s20  ;;  %s1993_s21 = spop %1992 }
 0x23f   :  { %1967 = sst [smem:[#allocation12 + $0x3]] %s1993_s21 }
 0x240   :  { %1976 = dma.smem_to_hbm %s2149_s22, 16, %s1974_s18, [#allocation5]  }
 0x241   :  { %2140 = dma.done.wait [#allocation5], 16  }
 0x242   :  { %2141 = vsyncadd [#allocation5], 4294967280 }
 0x243   :  { %1981 = sfence }
 0x244   :  { %1982 = vsyncpa [#allocation4], 1 }
 0x245   :  { %1983 = vsyncpa [#allocation7], 1 }
 0x246   :  { %1984 = vsyncpa [#allocation10], 1 }
 0x247   :  { %1985 = vsyncpa [#allocation5], 1 }

</bundles_post_ra>
